<compile_context>
chip_gen: v7x
topology: tpu7x:2x2x1
jax: 0.10.0
libtpu: 0.0.40
codegen_flags: <defaults>
</compile_context>

<pallas_src>
import functools
import math

import jax
import jax.numpy as jnp
from jax.experimental import pallas as pl
from jax.experimental.pallas import tpu as pltpu

CPAD = 128  # lane-dense classifier output width (>= num_classes, multiple of 128)


# ----------------------------- fused Pallas kernel -----------------------------

def _ner_forward_kernel(
        tok_ref,                                   # (B*S,) int32 scalar-prefetch ref (SMEM)
        emb_ref, pe_ref, negmask_ref,              # VMEM: (V,1,D), (S,D), (B,S)
        wqkv_ref, bqkv_ref, wo_ref, bo_ref,        # per-layer attention weights
        w1_ref, b1_ref, w2_ref, b2_ref,            # per-layer FFN weights
        g1_ref, be1_ref, g2_ref, be2_ref,          # per-layer LayerNorm params
        lin_w_ref, lin_b_ref, cls_w_ref, cls_b_ref,
        o_ref,                                     # (B, S, CPAD) output
        x_scratch,                                 # (B*S, D) f32 VMEM scratch
        *, B, S, n_layers, n_heads, eps):
    D = pe_ref.shape[-1]
    Dh = D // n_heads

    # ---- in-kernel embedding gather + positional encoding (dropout = identity, eval) ----
    pe = pe_ref[...]                               # (S, D)
    for b in range(B):
        for s in range(S):
            tok = tok_ref[b * S + s]               # scalar token id from SMEM
            row = emb_ref[tok] + pe[s:s + 1, :]    # (1, D): dynamic leading-axis gather
            x_scratch[pl.ds(b * S + s, 1), :] = row
    x = x_scratch[...]                             # (B*S, D) — batch folded into rows

    # ---- additive key-padding masks; (S, S) broadcast hoisted out of all loops ----
    nm = negmask_ref[...]                          # (B, S): 0.0 keep / -1e30 pad
    masks = [jnp.broadcast_to(nm[b:b + 1, :], (S, S)) for b in range(B)]

    def layernorm(v, g, beta):
        mu = jnp.mean(v, axis=-1, keepdims=True)
        var = jnp.mean(jnp.square(v - mu), axis=-1, keepdims=True)
        return (v - mu) * jax.lax.rsqrt(var + eps) * g + beta

    # ---- post-norm TransformerEncoder layers (PyTorch default), statically unrolled ----
    for l in range(n_layers):
        # Fused QKV projection over all B*S rows (1/sqrt(Dh) pre-folded into the Q columns).
        qkv = jnp.dot(x, wqkv_ref[l], preferred_element_type=jnp.float32) + bqkv_ref[l]

        # Multi-head attention: heads unrolled, outputs lane-concatenated, then ONE
        # (B*S, D) @ (D, D) out-projection matmul (no per-head folded matmuls).
        per_batch = []
        for b in range(B):
            qkv_b = qkv[b * S:(b + 1) * S, :]                     # (S, 3D)
            heads = []
            for h in range(n_heads):
                qh = qkv_b[:, h * Dh:(h + 1) * Dh]                # (S, Dh)
                kh = qkv_b[:, D + h * Dh:D + (h + 1) * Dh]        # (S, Dh)
                vh = qkv_b[:, 2 * D + h * Dh:2 * D + (h + 1) * Dh]
                sc = jax.lax.dot_general(qh, kh, (((1,), (1,)), ((), ())),
                                         preferred_element_type=jnp.float32)  # (S, S)
                sc = sc + masks[b]                                 # key-padding mask
                sc = sc - jnp.max(sc, axis=-1, keepdims=True)
                p = jnp.exp(sc)
                # approx reciprocal (EUP slot); softmax rows sum to ~1 (inference tolerance).
                p = p * pl.reciprocal(jnp.sum(p, axis=-1, keepdims=True), approx=True)
                heads.append(jnp.dot(p, vh, preferred_element_type=jnp.float32))  # (S, Dh)
            per_batch.append(jnp.concatenate(heads, axis=-1))      # (S, D)
        attn_cat = jnp.concatenate(per_batch, axis=0)              # (B*S, D)
        attn = jnp.dot(attn_cat, wo_ref[l],
                       preferred_element_type=jnp.float32) + bo_ref[l]

        x1 = layernorm(x + attn, g1_ref[l], be1_ref[l])            # residual + LN1

        ffh = jnp.dot(x1, w1_ref[l], preferred_element_type=jnp.float32) + b1_ref[l]
        ffh = jnp.maximum(ffh, 0.0)                                # ReLU
        ffo = jnp.dot(ffh, w2_ref[l], preferred_element_type=jnp.float32) + b2_ref[l]

        x = layernorm(x1 + ffo, g2_ref[l], be2_ref[l])             # residual + LN2

    # ---- head: relu(linear(x)) -> classifier (pre-padded to CPAD=128 output lanes) ----
    hid = jnp.dot(x, lin_w_ref[...], preferred_element_type=jnp.float32) + lin_b_ref[...]
    hid = jnp.maximum(hid, 0.0)
    y = jnp.dot(hid, cls_w_ref[...], preferred_element_type=jnp.float32) + cls_b_ref[...]
    for b in range(B):
        o_ref[b] = y[b * S:(b + 1) * S, :]          # (S, 128) lane-dense, unmasked stores


# ----------------------------- params / glue -----------------------------

def make_positional_encoding(seq_len, d_model):
    # Exactly mirrors the PyTorch PositionalEncoding construction (cos at even, sin at odd).
    pos = jnp.arange(seq_len, dtype=jnp.float32).reshape(-1, 1)
    dims = jnp.arange(d_model, dtype=jnp.float32).reshape(1, -1)
    angles = pos / (10000.0 ** (2.0 * dims / d_model))
    pe = jnp.zeros((seq_len, d_model), jnp.float32)
    pe = pe.at[:, ::2].set(jnp.cos(angles[:, ::2]))
    pe = pe.at[:, 1::2].set(jnp.sin(angles[:, 1::2]))
    return pe


def init_params(key, vocab, D, ff, n_layers, n_classes, n_heads, max_len):
    keys = iter(jax.random.split(key, 8))

    def u(shape, scale=0.1):
        return jax.random.uniform(next(keys), shape, jnp.float32, -scale, scale)

    # Fold the 1/sqrt(Dh) attention scale into the Q slice ONCE at init (free per-call).
    Dh = D // n_heads
    scale = 1.0 / math.sqrt(Dh)
    in_proj_w = u((n_layers, D, 3 * D)).at[:, :, :D].multiply(scale)
    in_proj_b = jnp.zeros((n_layers, 1, 3 * D), jnp.float32).at[:, :, :D].multiply(scale)

    # Classifier weights zero-padded to CPAD output lanes; wrapper slices back to n_classes.
    cls_w = jnp.zeros((D, CPAD), jnp.float32).at[:, :n_classes].set(u((D, n_classes)))
    cls_b = jnp.zeros((1, CPAD), jnp.float32)

    return {
        # Embedding stored as (vocab, 1, D): untiled leading gather axis for in-kernel lookup.
        "emb": u((vocab, D)).reshape(vocab, 1, D),
        "pe": make_positional_encoding(max_len, D),
        # Per-layer weights stacked on a leading layer axis (biases 2D for clean broadcast).
        "in_proj_w": in_proj_w,
        "in_proj_b": in_proj_b,
        "out_proj_w": u((n_layers, D, D)),
        "out_proj_b": jnp.zeros((n_layers, 1, D), jnp.float32),
        "ff1_w": u((n_layers, D, ff)),
        "ff1_b": jnp.zeros((n_layers, 1, ff), jnp.float32),
        "ff2_w": u((n_layers, ff, D)),
        "ff2_b": jnp.zeros((n_layers, 1, D), jnp.float32),
        "ln1_g": jnp.ones((n_layers, 1, D), jnp.float32),
        "ln1_b": jnp.zeros((n_layers, 1, D), jnp.float32),
        "ln2_g": jnp.ones((n_layers, 1, D), jnp.float32),
        "ln2_b": jnp.zeros((n_layers, 1, D), jnp.float32),
        "lin_w": u((D, D)),
        "lin_b": jnp.zeros((1, D), jnp.float32),
        "cls_w": cls_w,
        "cls_b": cls_b,
    }


def forward(params, tokens, padding_mask, *, n_heads, n_layers, n_classes):
    B, S = tokens.shape
    D = params["pe"].shape[1]

    # Only remaining per-call non-kernel op: bool key_padding_mask -> additive f32 mask.
    # (Kept outside so arbitrary masks remain supported, matching the PyTorch signature.)
    negmask = jnp.where(padding_mask, -1e30, 0.0).astype(jnp.float32)      # (B, S)

    vmem_args = [
        params["emb"], params["pe"], negmask,
        params["in_proj_w"], params["in_proj_b"],
        params["out_proj_w"], params["out_proj_b"],
        params["ff1_w"], params["ff1_b"], params["ff2_w"], params["ff2_b"],
        params["ln1_g"], params["ln1_b"], params["ln2_g"], params["ln2_b"],
        params["lin_w"], params["lin_b"], params["cls_w"], params["cls_b"],
    ]

    # Full-array VMEM-resident specs (fits easily here; at scaled-up D/ff/L move the layer
    # axis into the grid and/or cast to bf16 — v7x scoped VMEM is only 32 MiB by default).
    def full_spec(arr):
        nd = arr.ndim
        return pl.BlockSpec(arr.shape, lambda i, *_: (0,) * nd)

    kernel = functools.partial(_ner_forward_kernel, B=B, S=S,
                               n_layers=n_layers, n_heads=n_heads, eps=1e-5)

    y = pl.pallas_call(
        kernel,
        out_shape=jax.ShapeDtypeStruct((B, S, CPAD), jnp.float32),
        grid_spec=pltpu.PrefetchScalarGridSpec(
            num_scalar_prefetch=1,                 # token ids -> SMEM
            grid=(1,),                             # batch folded into rows; single step
            in_specs=[full_spec(a) for a in vmem_args],
            out_specs=pl.BlockSpec((B, S, CPAD), lambda i, *_: (0, 0, 0)),
            scratch_shapes=[pltpu.VMEM((B * S, D), jnp.float32)],
        ),
        compiler_params=pltpu.CompilerParams(dimension_semantics=("arbitrary",)),
    )(tokens.reshape(-1), *vmem_args)

    return y[:, :, :n_classes]


# ----------------------------- main -----------------------------

if __name__ == "__main__":
    CONFIG = dict(
        num_classes=6,
        num_of_transformer_layers=2,
        transformer_embedding_dim=32,
        attention_heads=4,
        transformer_ff_dim=64,
        vocab_size=50,
        max_len=8,
    )
    B, S = 2, CONFIG["max_len"]
    D = CONFIG["transformer_embedding_dim"]
    H = CONFIG["attention_heads"]
    L = CONFIG["num_of_transformer_layers"]
    C = CONFIG["num_classes"]

    key = jax.random.PRNGKey(0)
    k_param, k_tok = jax.random.split(key)

    params = init_params(
        k_param,
        vocab=CONFIG["vocab_size"],
        D=D,
        ff=CONFIG["transformer_ff_dim"],
        n_layers=L,
        n_classes=C,
        n_heads=H,
        max_len=S,
    )

    tokens = jax.random.randint(k_tok, (B, S), 0, CONFIG["vocab_size"], dtype=jnp.int32)
    lengths = jnp.array([S, 5], dtype=jnp.int32)
    padding_mask = jnp.arange(S)[None, :] >= lengths[:, None]   # (B, S) bool, True = pad

    fwd = jax.jit(functools.partial(forward, n_heads=H, n_layers=L, n_classes=C))
    y_pred = fwd(params, tokens, padding_mask)
    y_pred = jax.block_until_ready(y_pred)

    assert y_pred.shape == (B, S, C), y_pred.shape
    assert bool(jnp.all(jnp.isfinite(y_pred)))
    print("KERNEL_OK")
</pallas_src>

<mosaic_0001>
module attributes {stable_mosaic.version = 11 : i64} {
  func.func @_ner_forward_kernel(%arg0: i32, %arg1: memref<16xi32, #tpu.memory_space<smem>>, %arg2: memref<50x1x32xf32, #tpu.memory_space<vmem>>, %arg3: memref<8x32xf32, #tpu.memory_space<vmem>>, %arg4: memref<2x8xf32, #tpu.memory_space<vmem>>, %arg5: memref<2x32x96xf32, #tpu.memory_space<vmem>>, %arg6: memref<2x1x96xf32, #tpu.memory_space<vmem>>, %arg7: memref<2x32x32xf32, #tpu.memory_space<vmem>>, %arg8: memref<2x1x32xf32, #tpu.memory_space<vmem>>, %arg9: memref<2x32x64xf32, #tpu.memory_space<vmem>>, %arg10: memref<2x1x64xf32, #tpu.memory_space<vmem>>, %arg11: memref<2x64x32xf32, #tpu.memory_space<vmem>>, %arg12: memref<2x1x32xf32, #tpu.memory_space<vmem>>, %arg13: memref<2x1x32xf32, #tpu.memory_space<vmem>>, %arg14: memref<2x1x32xf32, #tpu.memory_space<vmem>>, %arg15: memref<2x1x32xf32, #tpu.memory_space<vmem>>, %arg16: memref<2x1x32xf32, #tpu.memory_space<vmem>>, %arg17: memref<32x32xf32, #tpu.memory_space<vmem>>, %arg18: memref<1x32xf32, #tpu.memory_space<vmem>>, %arg19: memref<32x128xf32, #tpu.memory_space<vmem>>, %arg20: memref<1x128xf32, #tpu.memory_space<vmem>>, %arg21: memref<2x8x128xf32, #tpu.memory_space<vmem>>, %arg22: memref<16x32xf32, #tpu.memory_space<vmem>>) attributes {dimension_semantics = [#tpu.dimension_semantics<arbitrary>], iteration_bounds = array<i64: 1>, scalar_prefetch = 1 : i64, scratch_operands = 1 : i64, tpu.core_type = #tpu.core_type<tc>, window_params = [{pipeline_mode = #tpu.pipeline_mode<synchronous>, transform_indices = @transform_0, window_bounds = array<i64: 50, 1, 32>}, {pipeline_mode = #tpu.pipeline_mode<synchronous>, transform_indices = @transform_1, window_bounds = array<i64: 8, 32>}, {pipeline_mode = #tpu.pipeline_mode<synchronous>, transform_indices = @transform_2, window_bounds = array<i64: 2, 8>}, {pipeline_mode = #tpu.pipeline_mode<synchronous>, transform_indices = @transform_3, window_bounds = array<i64: 2, 32, 96>}, {pipeline_mode = #tpu.pipeline_mode<synchronous>, transform_indices = @transform_4, window_bounds = array<i64: 2, 1, 96>}, {pipeline_mode = #tpu.pipeline_mode<synchronous>, transform_indices = @transform_5, window_bounds = array<i64: 2, 32, 32>}, {pipeline_mode = #tpu.pipeline_mode<synchronous>, transform_indices = @transform_6, window_bounds = array<i64: 2, 1, 32>}, {pipeline_mode = #tpu.pipeline_mode<synchronous>, transform_indices = @transform_7, window_bounds = array<i64: 2, 32, 64>}, {pipeline_mode = #tpu.pipeline_mode<synchronous>, transform_indices = @transform_8, window_bounds = array<i64: 2, 1, 64>}, {pipeline_mode = #tpu.pipeline_mode<synchronous>, transform_indices = @transform_9, window_bounds = array<i64: 2, 64, 32>}, {pipeline_mode = #tpu.pipeline_mode<synchronous>, transform_indices = @transform_10, window_bounds = array<i64: 2, 1, 32>}, {pipeline_mode = #tpu.pipeline_mode<synchronous>, transform_indices = @transform_11, window_bounds = array<i64: 2, 1, 32>}, {pipeline_mode = #tpu.pipeline_mode<synchronous>, transform_indices = @transform_12, window_bounds = array<i64: 2, 1, 32>}, {pipeline_mode = #tpu.pipeline_mode<synchronous>, transform_indices = @transform_13, window_bounds = array<i64: 2, 1, 32>}, {pipeline_mode = #tpu.pipeline_mode<synchronous>, transform_indices = @transform_14, window_bounds = array<i64: 2, 1, 32>}, {pipeline_mode = #tpu.pipeline_mode<synchronous>, transform_indices = @transform_15, window_bounds = array<i64: 32, 32>}, {pipeline_mode = #tpu.pipeline_mode<synchronous>, transform_indices = @transform_16, window_bounds = array<i64: 1, 32>}, {pipeline_mode = #tpu.pipeline_mode<synchronous>, transform_indices = @transform_17, window_bounds = array<i64: 32, 128>}, {pipeline_mode = #tpu.pipeline_mode<synchronous>, transform_indices = @transform_18, window_bounds = array<i64: 1, 128>}, {pipeline_mode = #tpu.pipeline_mode<synchronous>, transform_indices = @transform_19, window_bounds = array<i64: 2, 8, 128>}]} {
    %c0 = arith.constant 0 : index
    %c0_0 = arith.constant 0 : index
    %0 = vector.load %arg3[%c0, %c0_0] : memref<8x32xf32, #tpu.memory_space<vmem>>, vector<8x32xf32>
    %c0_1 = arith.constant 0 : index
    %1 = memref.load %arg1[%c0_1] : memref<16xi32, #tpu.memory_space<smem>>
    %2 = arith.index_cast %1 : i32 to index
    %c0_2 = arith.constant 0 : index
    %c0_3 = arith.constant 0 : index
    %3 = vector.load %arg2[%2, %c0_2, %c0_3] : memref<50x1x32xf32, #tpu.memory_space<vmem>>, vector<1x1x32xf32>
    %4 = vector.shape_cast %3 : vector<1x1x32xf32> to vector<1x32xf32>
    %5 = vector.extract_strided_slice %0 {offsets = [0, 0], sizes = [1, 32], strides = [1, 1]} : vector<8x32xf32> to vector<1x32xf32>
    %6 = arith.addf %4, %5 : vector<1x32xf32>
    %c0_4 = arith.constant 0 : index
    %c0_5 = arith.constant 0 : index
    %7 = vector.load %arg22[%c0_4, %c0_5] : memref<16x32xf32, #tpu.memory_space<vmem>>, vector<1x32xf32>
    tpu.vector_store %arg22[%c0_4, %c0_5], %6 {strides = array<i32>} : memref<16x32xf32, #tpu.memory_space<vmem>>, vector<1x32xf32>,
    %c1 = arith.constant 1 : index
    %8 = memref.load %arg1[%c1] : memref<16xi32, #tpu.memory_space<smem>>
    %9 = arith.index_cast %8 : i32 to index
    %c0_6 = arith.constant 0 : index
    %c0_7 = arith.constant 0 : index
    %10 = vector.load %arg2[%9, %c0_6, %c0_7] : memref<50x1x32xf32, #tpu.memory_space<vmem>>, vector<1x1x32xf32>
    %11 = vector.shape_cast %10 : vector<1x1x32xf32> to vector<1x32xf32>
    %12 = vector.extract_strided_slice %0 {offsets = [1, 0], sizes = [1, 32], strides = [1, 1]} : vector<8x32xf32> to vector<1x32xf32>
    %13 = arith.addf %11, %12 : vector<1x32xf32>
    %c1_8 = arith.constant 1 : index
    %c0_9 = arith.constant 0 : index
    %14 = vector.load %arg22[%c1_8, %c0_9] : memref<16x32xf32, #tpu.memory_space<vmem>>, vector<1x32xf32>
    tpu.vector_store %arg22[%c1_8, %c0_9], %13 {strides = array<i32>} : memref<16x32xf32, #tpu.memory_space<vmem>>, vector<1x32xf32>,
    %c2 = arith.constant 2 : index
    %15 = memref.load %arg1[%c2] : memref<16xi32, #tpu.memory_space<smem>>
    %16 = arith.index_cast %15 : i32 to index
    %c0_10 = arith.constant 0 : index
    %c0_11 = arith.constant 0 : index
    %17 = vector.load %arg2[%16, %c0_10, %c0_11] : memref<50x1x32xf32, #tpu.memory_space<vmem>>, vector<1x1x32xf32>
    %18 = vector.shape_cast %17 : vector<1x1x32xf32> to vector<1x32xf32>
    %19 = vector.extract_strided_slice %0 {offsets = [2, 0], sizes = [1, 32], strides = [1, 1]} : vector<8x32xf32> to vector<1x32xf32>
    %20 = arith.addf %18, %19 : vector<1x32xf32>
    %c2_12 = arith.constant 2 : index
    %c0_13 = arith.constant 0 : index
    %21 = vector.load %arg22[%c2_12, %c0_13] : memref<16x32xf32, #tpu.memory_space<vmem>>, vector<1x32xf32>
    tpu.vector_store %arg22[%c2_12, %c0_13], %20 {strides = array<i32>} : memref<16x32xf32, #tpu.memory_space<vmem>>, vector<1x32xf32>,
    %c3 = arith.constant 3 : index
    %22 = memref.load %arg1[%c3] : memref<16xi32, #tpu.memory_space<smem>>
    %23 = arith.index_cast %22 : i32 to index
    %c0_14 = arith.constant 0 : index
    %c0_15 = arith.constant 0 : index
    %24 = vector.load %arg2[%23, %c0_14, %c0_15] : memref<50x1x32xf32, #tpu.memory_space<vmem>>, vector<1x1x32xf32>
    %25 = vector.shape_cast %24 : vector<1x1x32xf32> to vector<1x32xf32>
    %26 = vector.extract_strided_slice %0 {offsets = [3, 0], sizes = [1, 32], strides = [1, 1]} : vector<8x32xf32> to vector<1x32xf32>
    %27 = arith.addf %25, %26 : vector<1x32xf32>
    %c3_16 = arith.constant 3 : index
    %c0_17 = arith.constant 0 : index
    %28 = vector.load %arg22[%c3_16, %c0_17] : memref<16x32xf32, #tpu.memory_space<vmem>>, vector<1x32xf32>
    tpu.vector_store %arg22[%c3_16, %c0_17], %27 {strides = array<i32>} : memref<16x32xf32, #tpu.memory_space<vmem>>, vector<1x32xf32>,
    %c4 = arith.constant 4 : index
    %29 = memref.load %arg1[%c4] : memref<16xi32, #tpu.memory_space<smem>>
    %30 = arith.index_cast %29 : i32 to index
    %c0_18 = arith.constant 0 : index
    %c0_19 = arith.constant 0 : index
    %31 = vector.load %arg2[%30, %c0_18, %c0_19] : memref<50x1x32xf32, #tpu.memory_space<vmem>>, vector<1x1x32xf32>
    %32 = vector.shape_cast %31 : vector<1x1x32xf32> to vector<1x32xf32>
    %33 = vector.extract_strided_slice %0 {offsets = [4, 0], sizes = [1, 32], strides = [1, 1]} : vector<8x32xf32> to vector<1x32xf32>
    %34 = arith.addf %32, %33 : vector<1x32xf32>
    %c4_20 = arith.constant 4 : index
    %c0_21 = arith.constant 0 : index
    %35 = vector.load %arg22[%c4_20, %c0_21] : memref<16x32xf32, #tpu.memory_space<vmem>>, vector<1x32xf32>
    tpu.vector_store %arg22[%c4_20, %c0_21], %34 {strides = array<i32>} : memref<16x32xf32, #tpu.memory_space<vmem>>, vector<1x32xf32>,
    %c5 = arith.constant 5 : index
    %36 = memref.load %arg1[%c5] : memref<16xi32, #tpu.memory_space<smem>>
    %37 = arith.index_cast %36 : i32 to index
    %c0_22 = arith.constant 0 : index
    %c0_23 = arith.constant 0 : index
    %38 = vector.load %arg2[%37, %c0_22, %c0_23] : memref<50x1x32xf32, #tpu.memory_space<vmem>>, vector<1x1x32xf32>
    %39 = vector.shape_cast %38 : vector<1x1x32xf32> to vector<1x32xf32>
    %40 = vector.extract_strided_slice %0 {offsets = [5, 0], sizes = [1, 32], strides = [1, 1]} : vector<8x32xf32> to vector<1x32xf32>
    %41 = arith.addf %39, %40 : vector<1x32xf32>
    %c5_24 = arith.constant 5 : index
    %c0_25 = arith.constant 0 : index
    %42 = vector.load %arg22[%c5_24, %c0_25] : memref<16x32xf32, #tpu.memory_space<vmem>>, vector<1x32xf32>
    tpu.vector_store %arg22[%c5_24, %c0_25], %41 {strides = array<i32>} : memref<16x32xf32, #tpu.memory_space<vmem>>, vector<1x32xf32>,
    %c6 = arith.constant 6 : index
    %43 = memref.load %arg1[%c6] : memref<16xi32, #tpu.memory_space<smem>>
    %44 = arith.index_cast %43 : i32 to index
    %c0_26 = arith.constant 0 : index
    %c0_27 = arith.constant 0 : index
    %45 = vector.load %arg2[%44, %c0_26, %c0_27] : memref<50x1x32xf32, #tpu.memory_space<vmem>>, vector<1x1x32xf32>
    %46 = vector.shape_cast %45 : vector<1x1x32xf32> to vector<1x32xf32>
    %47 = vector.extract_strided_slice %0 {offsets = [6, 0], sizes = [1, 32], strides = [1, 1]} : vector<8x32xf32> to vector<1x32xf32>
    %48 = arith.addf %46, %47 : vector<1x32xf32>
    %c6_28 = arith.constant 6 : index
    %c0_29 = arith.constant 0 : index
    %49 = vector.load %arg22[%c6_28, %c0_29] : memref<16x32xf32, #tpu.memory_space<vmem>>, vector<1x32xf32>
    tpu.vector_store %arg22[%c6_28, %c0_29], %48 {strides = array<i32>} : memref<16x32xf32, #tpu.memory_space<vmem>>, vector<1x32xf32>,
    %c7 = arith.constant 7 : index
    %50 = memref.load %arg1[%c7] : memref<16xi32, #tpu.memory_space<smem>>
    %51 = arith.index_cast %50 : i32 to index
    %c0_30 = arith.constant 0 : index
    %c0_31 = arith.constant 0 : index
    %52 = vector.load %arg2[%51, %c0_30, %c0_31] : memref<50x1x32xf32, #tpu.memory_space<vmem>>, vector<1x1x32xf32>
    %53 = vector.shape_cast %52 : vector<1x1x32xf32> to vector<1x32xf32>
    %54 = vector.extract_strided_slice %0 {offsets = [7, 0], sizes = [1, 32], strides = [1, 1]} : vector<8x32xf32> to vector<1x32xf32>
    %55 = arith.addf %53, %54 : vector<1x32xf32>
    %c7_32 = arith.constant 7 : index
    %c0_33 = arith.constant 0 : index
    %56 = vector.load %arg22[%c7_32, %c0_33] : memref<16x32xf32, #tpu.memory_space<vmem>>, vector<1x32xf32>
    tpu.vector_store %arg22[%c7_32, %c0_33], %55 {strides = array<i32>} : memref<16x32xf32, #tpu.memory_space<vmem>>, vector<1x32xf32>,
    %c8 = arith.constant 8 : index
    %57 = memref.load %arg1[%c8] : memref<16xi32, #tpu.memory_space<smem>>
    %58 = arith.index_cast %57 : i32 to index
    %c0_34 = arith.constant 0 : index
    %c0_35 = arith.constant 0 : index
    %59 = vector.load %arg2[%58, %c0_34, %c0_35] : memref<50x1x32xf32, #tpu.memory_space<vmem>>, vector<1x1x32xf32>
    %60 = vector.shape_cast %59 : vector<1x1x32xf32> to vector<1x32xf32>
    %61 = vector.extract_strided_slice %0 {offsets = [0, 0], sizes = [1, 32], strides = [1, 1]} : vector<8x32xf32> to vector<1x32xf32>
    %62 = arith.addf %60, %61 : vector<1x32xf32>
    %c8_36 = arith.constant 8 : index
    %c0_37 = arith.constant 0 : index
    %63 = vector.load %arg22[%c8_36, %c0_37] : memref<16x32xf32, #tpu.memory_space<vmem>>, vector<1x32xf32>
    tpu.vector_store %arg22[%c8_36, %c0_37], %62 {strides = array<i32>} : memref<16x32xf32, #tpu.memory_space<vmem>>, vector<1x32xf32>,
    %c9 = arith.constant 9 : index
    %64 = memref.load %arg1[%c9] : memref<16xi32, #tpu.memory_space<smem>>
    %65 = arith.index_cast %64 : i32 to index
    %c0_38 = arith.constant 0 : index
    %c0_39 = arith.constant 0 : index
    %66 = vector.load %arg2[%65, %c0_38, %c0_39] : memref<50x1x32xf32, #tpu.memory_space<vmem>>, vector<1x1x32xf32>
    %67 = vector.shape_cast %66 : vector<1x1x32xf32> to vector<1x32xf32>
    %68 = vector.extract_strided_slice %0 {offsets = [1, 0], sizes = [1, 32], strides = [1, 1]} : vector<8x32xf32> to vector<1x32xf32>
    %69 = arith.addf %67, %68 : vector<1x32xf32>
    %c9_40 = arith.constant 9 : index
    %c0_41 = arith.constant 0 : index
    %70 = vector.load %arg22[%c9_40, %c0_41] : memref<16x32xf32, #tpu.memory_space<vmem>>, vector<1x32xf32>
    tpu.vector_store %arg22[%c9_40, %c0_41], %69 {strides = array<i32>} : memref<16x32xf32, #tpu.memory_space<vmem>>, vector<1x32xf32>,
    %c10 = arith.constant 10 : index
    %71 = memref.load %arg1[%c10] : memref<16xi32, #tpu.memory_space<smem>>
    %72 = arith.index_cast %71 : i32 to index
    %c0_42 = arith.constant 0 : index
    %c0_43 = arith.constant 0 : index
    %73 = vector.load %arg2[%72, %c0_42, %c0_43] : memref<50x1x32xf32, #tpu.memory_space<vmem>>, vector<1x1x32xf32>
    %74 = vector.shape_cast %73 : vector<1x1x32xf32> to vector<1x32xf32>
    %75 = vector.extract_strided_slice %0 {offsets = [2, 0], sizes = [1, 32], strides = [1, 1]} : vector<8x32xf32> to vector<1x32xf32>
    %76 = arith.addf %74, %75 : vector<1x32xf32>
    %c10_44 = arith.constant 10 : index
    %c0_45 = arith.constant 0 : index
    %77 = vector.load %arg22[%c10_44, %c0_45] : memref<16x32xf32, #tpu.memory_space<vmem>>, vector<1x32xf32>
    tpu.vector_store %arg22[%c10_44, %c0_45], %76 {strides = array<i32>} : memref<16x32xf32, #tpu.memory_space<vmem>>, vector<1x32xf32>,
    %c11 = arith.constant 11 : index
    %78 = memref.load %arg1[%c11] : memref<16xi32, #tpu.memory_space<smem>>
    %79 = arith.index_cast %78 : i32 to index
    %c0_46 = arith.constant 0 : index
    %c0_47 = arith.constant 0 : index
    %80 = vector.load %arg2[%79, %c0_46, %c0_47] : memref<50x1x32xf32, #tpu.memory_space<vmem>>, vector<1x1x32xf32>
    %81 = vector.shape_cast %80 : vector<1x1x32xf32> to vector<1x32xf32>
    %82 = vector.extract_strided_slice %0 {offsets = [3, 0], sizes = [1, 32], strides = [1, 1]} : vector<8x32xf32> to vector<1x32xf32>
    %83 = arith.addf %81, %82 : vector<1x32xf32>
    %c11_48 = arith.constant 11 : index
    %c0_49 = arith.constant 0 : index
    %84 = vector.load %arg22[%c11_48, %c0_49] : memref<16x32xf32, #tpu.memory_space<vmem>>, vector<1x32xf32>
    tpu.vector_store %arg22[%c11_48, %c0_49], %83 {strides = array<i32>} : memref<16x32xf32, #tpu.memory_space<vmem>>, vector<1x32xf32>,
    %c12 = arith.constant 12 : index
    %85 = memref.load %arg1[%c12] : memref<16xi32, #tpu.memory_space<smem>>
    %86 = arith.index_cast %85 : i32 to index
    %c0_50 = arith.constant 0 : index
    %c0_51 = arith.constant 0 : index
    %87 = vector.load %arg2[%86, %c0_50, %c0_51] : memref<50x1x32xf32, #tpu.memory_space<vmem>>, vector<1x1x32xf32>
    %88 = vector.shape_cast %87 : vector<1x1x32xf32> to vector<1x32xf32>
    %89 = vector.extract_strided_slice %0 {offsets = [4, 0], sizes = [1, 32], strides = [1, 1]} : vector<8x32xf32> to vector<1x32xf32>
    %90 = arith.addf %88, %89 : vector<1x32xf32>
    %c12_52 = arith.constant 12 : index
    %c0_53 = arith.constant 0 : index
    %91 = vector.load %arg22[%c12_52, %c0_53] : memref<16x32xf32, #tpu.memory_space<vmem>>, vector<1x32xf32>
    tpu.vector_store %arg22[%c12_52, %c0_53], %90 {strides = array<i32>} : memref<16x32xf32, #tpu.memory_space<vmem>>, vector<1x32xf32>,
    %c13 = arith.constant 13 : index
    %92 = memref.load %arg1[%c13] : memref<16xi32, #tpu.memory_space<smem>>
    %93 = arith.index_cast %92 : i32 to index
    %c0_54 = arith.constant 0 : index
    %c0_55 = arith.constant 0 : index
    %94 = vector.load %arg2[%93, %c0_54, %c0_55] : memref<50x1x32xf32, #tpu.memory_space<vmem>>, vector<1x1x32xf32>
    %95 = vector.shape_cast %94 : vector<1x1x32xf32> to vector<1x32xf32>
    %96 = vector.extract_strided_slice %0 {offsets = [5, 0], sizes = [1, 32], strides = [1, 1]} : vector<8x32xf32> to vector<1x32xf32>
    %97 = arith.addf %95, %96 : vector<1x32xf32>
    %c13_56 = arith.constant 13 : index
    %c0_57 = arith.constant 0 : index
    %98 = vector.load %arg22[%c13_56, %c0_57] : memref<16x32xf32, #tpu.memory_space<vmem>>, vector<1x32xf32>
    tpu.vector_store %arg22[%c13_56, %c0_57], %97 {strides = array<i32>} : memref<16x32xf32, #tpu.memory_space<vmem>>, vector<1x32xf32>,
    %c14 = arith.constant 14 : index
    %99 = memref.load %arg1[%c14] : memref<16xi32, #tpu.memory_space<smem>>
    %100 = arith.index_cast %99 : i32 to index
    %c0_58 = arith.constant 0 : index
    %c0_59 = arith.constant 0 : index
    %101 = vector.load %arg2[%100, %c0_58, %c0_59] : memref<50x1x32xf32, #tpu.memory_space<vmem>>, vector<1x1x32xf32>
    %102 = vector.shape_cast %101 : vector<1x1x32xf32> to vector<1x32xf32>
    %103 = vector.extract_strided_slice %0 {offsets = [6, 0], sizes = [1, 32], strides = [1, 1]} : vector<8x32xf32> to vector<1x32xf32>
    %104 = arith.addf %102, %103 : vector<1x32xf32>
    %c14_60 = arith.constant 14 : index
    %c0_61 = arith.constant 0 : index
    %105 = vector.load %arg22[%c14_60, %c0_61] : memref<16x32xf32, #tpu.memory_space<vmem>>, vector<1x32xf32>
    tpu.vector_store %arg22[%c14_60, %c0_61], %104 {strides = array<i32>} : memref<16x32xf32, #tpu.memory_space<vmem>>, vector<1x32xf32>,
    %c15 = arith.constant 15 : index
    %106 = memref.load %arg1[%c15] : memref<16xi32, #tpu.memory_space<smem>>
    %107 = arith.index_cast %106 : i32 to index
    %c0_62 = arith.constant 0 : index
    %c0_63 = arith.constant 0 : index
    %108 = vector.load %arg2[%107, %c0_62, %c0_63] : memref<50x1x32xf32, #tpu.memory_space<vmem>>, vector<1x1x32xf32>
    %109 = vector.shape_cast %108 : vector<1x1x32xf32> to vector<1x32xf32>
    %110 = vector.extract_strided_slice %0 {offsets = [7, 0], sizes = [1, 32], strides = [1, 1]} : vector<8x32xf32> to vector<1x32xf32>
    %111 = arith.addf %109, %110 : vector<1x32xf32>
    %c15_64 = arith.constant 15 : index
    %c0_65 = arith.constant 0 : index
    %112 = vector.load %arg22[%c15_64, %c0_65] : memref<16x32xf32, #tpu.memory_space<vmem>>, vector<1x32xf32>
    tpu.vector_store %arg22[%c15_64, %c0_65], %111 {strides = array<i32>} : memref<16x32xf32, #tpu.memory_space<vmem>>, vector<1x32xf32>,
    %c0_66 = arith.constant 0 : index
    %c0_67 = arith.constant 0 : index
    %113 = vector.load %arg22[%c0_66, %c0_67] : memref<16x32xf32, #tpu.memory_space<vmem>>, vector<16x32xf32>
    %c0_68 = arith.constant 0 : index
    %c0_69 = arith.constant 0 : index
    %114 = vector.load %arg4[%c0_68, %c0_69] : memref<2x8xf32, #tpu.memory_space<vmem>>, vector<2x8xf32>
    %115 = vector.extract_strided_slice %114 {offsets = [0, 0], sizes = [1, 8], strides = [1, 1]} : vector<2x8xf32> to vector<1x8xf32>
    %116 = vector.shape_cast %115 : vector<1x8xf32> to vector<1x8xf32>
    %117 = vector.broadcast %116 : vector<1x8xf32> to vector<8x8xf32>
    %118 = vector.extract_strided_slice %114 {offsets = [1, 0], sizes = [1, 8], strides = [1, 1]} : vector<2x8xf32> to vector<1x8xf32>
    %119 = vector.shape_cast %118 : vector<1x8xf32> to vector<1x8xf32>
    %120 = vector.broadcast %119 : vector<1x8xf32> to vector<8x8xf32>
    %c0_70 = arith.constant 0 : index
    %c0_71 = arith.constant 0 : index
    %c0_72 = arith.constant 0 : index
    %121 = vector.load %arg5[%c0_70, %c0_71, %c0_72] : memref<2x32x96xf32, #tpu.memory_space<vmem>>, vector<1x32x96xf32>
    %122 = vector.shape_cast %121 : vector<1x32x96xf32> to vector<32x96xf32>
    %cst = arith.constant dense<0.000000e+00> : vector<16x96xf32>
    %123 = tpu.matmul %113, %122, %cst {dimension_numbers = #tpu.dot_dimension_numbers<[1], [0], [0], [1], [0, 0, 1, 1], [], []>} : vector<16x32xf32>, vector<32x96xf32>, vector<16x96xf32> -> vector<16x96xf32>
    %c0_73 = arith.constant 0 : index
    %c0_74 = arith.constant 0 : index
    %c0_75 = arith.constant 0 : index
    %124 = vector.load %arg6[%c0_73, %c0_74, %c0_75] : memref<2x1x96xf32, #tpu.memory_space<vmem>>, vector<1x1x96xf32>
    %125 = vector.shape_cast %124 : vector<1x1x96xf32> to vector<1x96xf32>
    %126 = vector.broadcast %125 : vector<1x96xf32> to vector<16x96xf32>
    %127 = arith.addf %123, %126 : vector<16x96xf32>
    %128 = vector.extract_strided_slice %127 {offsets = [0, 0], sizes = [8, 96], strides = [1, 1]} : vector<16x96xf32> to vector<8x96xf32>
    %129 = vector.extract_strided_slice %128 {offsets = [0, 0], sizes = [8, 8], strides = [1, 1]} : vector<8x96xf32> to vector<8x8xf32>
    %130 = vector.extract_strided_slice %128 {offsets = [0, 32], sizes = [8, 8], strides = [1, 1]} : vector<8x96xf32> to vector<8x8xf32>
    %131 = vector.extract_strided_slice %128 {offsets = [0, 64], sizes = [8, 8], strides = [1, 1]} : vector<8x96xf32> to vector<8x8xf32>
    %cst_76 = arith.constant dense<0.000000e+00> : vector<8x8xf32>
    %132 = tpu.matmul %129, %130, %cst_76 {dimension_numbers = #tpu.dot_dimension_numbers<[1], [1], [0], [0], [0, 0, 1, 0], [], []>} : vector<8x8xf32>, vector<8x8xf32>, vector<8x8xf32> -> vector<8x8xf32>
    %133 = arith.addf %132, %117 : vector<8x8xf32>
    %cst_77 = arith.constant dense<0xFF800000> : vector<8xf32>
    %134 = vector.multi_reduction <maximumf>, %133, %cst_77 [1] : vector<8x8xf32> to vector<8xf32>
    %135 = vector.shape_cast %134 : vector<8xf32> to vector<8x1xf32>
    %136 = vector.broadcast %135 : vector<8x1xf32> to vector<8x8xf32>
    %137 = arith.subf %133, %136 : vector<8x8xf32>
    %138 = math.exp %137 : vector<8x8xf32>
    %cst_78 = arith.constant dense<0.000000e+00> : vector<8xf32>
    %139 = vector.multi_reduction <add>, %138, %cst_78 [1] : vector<8x8xf32> to vector<8xf32>
    %140 = vector.shape_cast %139 : vector<8xf32> to vector<8x1xf32>
    %141 = tpu.reciprocal %140 {approx = true} : vector<8x1xf32> -> vector<8x1xf32>
    %142 = vector.broadcast %141 : vector<8x1xf32> to vector<8x8xf32>
    %143 = arith.mulf %138, %142 : vector<8x8xf32>
    %cst_79 = arith.constant dense<0.000000e+00> : vector<8x8xf32>
    %144 = tpu.matmul %143, %131, %cst_79 {dimension_numbers = #tpu.dot_dimension_numbers<[1], [0], [0], [1], [0, 0, 1, 1], [], []>} : vector<8x8xf32>, vector<8x8xf32>, vector<8x8xf32> -> vector<8x8xf32>
    %145 = vector.extract_strided_slice %128 {offsets = [0, 8], sizes = [8, 8], strides = [1, 1]} : vector<8x96xf32> to vector<8x8xf32>
    %146 = vector.extract_strided_slice %128 {offsets = [0, 40], sizes = [8, 8], strides = [1, 1]} : vector<8x96xf32> to vector<8x8xf32>
    %147 = vector.extract_strided_slice %128 {offsets = [0, 72], sizes = [8, 8], strides = [1, 1]} : vector<8x96xf32> to vector<8x8xf32>
    %cst_80 = arith.constant dense<0.000000e+00> : vector<8x8xf32>
    %148 = tpu.matmul %145, %146, %cst_80 {dimension_numbers = #tpu.dot_dimension_numbers<[1], [1], [0], [0], [0, 0, 1, 0], [], []>} : vector<8x8xf32>, vector<8x8xf32>, vector<8x8xf32> -> vector<8x8xf32>
    %149 = arith.addf %148, %117 : vector<8x8xf32>
    %cst_81 = arith.constant dense<0xFF800000> : vector<8xf32>
    %150 = vector.multi_reduction <maximumf>, %149, %cst_81 [1] : vector<8x8xf32> to vector<8xf32>
    %151 = vector.shape_cast %150 : vector<8xf32> to vector<8x1xf32>
    %152 = vector.broadcast %151 : vector<8x1xf32> to vector<8x8xf32>
    %153 = arith.subf %149, %152 : vector<8x8xf32>
    %154 = math.exp %153 : vector<8x8xf32>
    %cst_82 = arith.constant dense<0.000000e+00> : vector<8xf32>
    %155 = vector.multi_reduction <add>, %154, %cst_82 [1] : vector<8x8xf32> to vector<8xf32>
    %156 = vector.shape_cast %155 : vector<8xf32> to vector<8x1xf32>
    %157 = tpu.reciprocal %156 {approx = true} : vector<8x1xf32> -> vector<8x1xf32>
    %158 = vector.broadcast %157 : vector<8x1xf32> to vector<8x8xf32>
    %159 = arith.mulf %154, %158 : vector<8x8xf32>
    %cst_83 = arith.constant dense<0.000000e+00> : vector<8x8xf32>
    %160 = tpu.matmul %159, %147, %cst_83 {dimension_numbers = #tpu.dot_dimension_numbers<[1], [0], [0], [1], [0, 0, 1, 1], [], []>} : vector<8x8xf32>, vector<8x8xf32>, vector<8x8xf32> -> vector<8x8xf32>
    %161 = vector.extract_strided_slice %128 {offsets = [0, 16], sizes = [8, 8], strides = [1, 1]} : vector<8x96xf32> to vector<8x8xf32>
    %162 = vector.extract_strided_slice %128 {offsets = [0, 48], sizes = [8, 8], strides = [1, 1]} : vector<8x96xf32> to vector<8x8xf32>
    %163 = vector.extract_strided_slice %128 {offsets = [0, 80], sizes = [8, 8], strides = [1, 1]} : vector<8x96xf32> to vector<8x8xf32>
    %cst_84 = arith.constant dense<0.000000e+00> : vector<8x8xf32>
    %164 = tpu.matmul %161, %162, %cst_84 {dimension_numbers = #tpu.dot_dimension_numbers<[1], [1], [0], [0], [0, 0, 1, 0], [], []>} : vector<8x8xf32>, vector<8x8xf32>, vector<8x8xf32> -> vector<8x8xf32>
    %165 = arith.addf %164, %117 : vector<8x8xf32>
    %cst_85 = arith.constant dense<0xFF800000> : vector<8xf32>
    %166 = vector.multi_reduction <maximumf>, %165, %cst_85 [1] : vector<8x8xf32> to vector<8xf32>
    %167 = vector.shape_cast %166 : vector<8xf32> to vector<8x1xf32>
    %168 = vector.broadcast %167 : vector<8x1xf32> to vector<8x8xf32>
    %169 = arith.subf %165, %168 : vector<8x8xf32>
    %170 = math.exp %169 : vector<8x8xf32>
    %cst_86 = arith.constant dense<0.000000e+00> : vector<8xf32>
    %171 = vector.multi_reduction <add>, %170, %cst_86 [1] : vector<8x8xf32> to vector<8xf32>
    %172 = vector.shape_cast %171 : vector<8xf32> to vector<8x1xf32>
    %173 = tpu.reciprocal %172 {approx = true} : vector<8x1xf32> -> vector<8x1xf32>
    %174 = vector.broadcast %173 : vector<8x1xf32> to vector<8x8xf32>
    %175 = arith.mulf %170, %174 : vector<8x8xf32>
    %cst_87 = arith.constant dense<0.000000e+00> : vector<8x8xf32>
    %176 = tpu.matmul %175, %163, %cst_87 {dimension_numbers = #tpu.dot_dimension_numbers<[1], [0], [0], [1], [0, 0, 1, 1], [], []>} : vector<8x8xf32>, vector<8x8xf32>, vector<8x8xf32> -> vector<8x8xf32>
    %177 = vector.extract_strided_slice %128 {offsets = [0, 24], sizes = [8, 8], strides = [1, 1]} : vector<8x96xf32> to vector<8x8xf32>
    %178 = vector.extract_strided_slice %128 {offsets = [0, 56], sizes = [8, 8], strides = [1, 1]} : vector<8x96xf32> to vector<8x8xf32>
    %179 = vector.extract_strided_slice %128 {offsets = [0, 88], sizes = [8, 8], strides = [1, 1]} : vector<8x96xf32> to vector<8x8xf32>
    %cst_88 = arith.constant dense<0.000000e+00> : vector<8x8xf32>
    %180 = tpu.matmul %177, %178, %cst_88 {dimension_numbers = #tpu.dot_dimension_numbers<[1], [1], [0], [0], [0, 0, 1, 0], [], []>} : vector<8x8xf32>, vector<8x8xf32>, vector<8x8xf32> -> vector<8x8xf32>
    %181 = arith.addf %180, %117 : vector<8x8xf32>
    %cst_89 = arith.constant dense<0xFF800000> : vector<8xf32>
    %182 = vector.multi_reduction <maximumf>, %181, %cst_89 [1] : vector<8x8xf32> to vector<8xf32>
    %183 = vector.shape_cast %182 : vector<8xf32> to vector<8x1xf32>
    %184 = vector.broadcast %183 : vector<8x1xf32> to vector<8x8xf32>
    %185 = arith.subf %181, %184 : vector<8x8xf32>
    %186 = math.exp %185 : vector<8x8xf32>
    %cst_90 = arith.constant dense<0.000000e+00> : vector<8xf32>
    %187 = vector.multi_reduction <add>, %186, %cst_90 [1] : vector<8x8xf32> to vector<8xf32>
    %188 = vector.shape_cast %187 : vector<8xf32> to vector<8x1xf32>
    %189 = tpu.reciprocal %188 {approx = true} : vector<8x1xf32> -> vector<8x1xf32>
    %190 = vector.broadcast %189 : vector<8x1xf32> to vector<8x8xf32>
    %191 = arith.mulf %186, %190 : vector<8x8xf32>
    %cst_91 = arith.constant dense<0.000000e+00> : vector<8x8xf32>
    %192 = tpu.matmul %191, %179, %cst_91 {dimension_numbers = #tpu.dot_dimension_numbers<[1], [0], [0], [1], [0, 0, 1, 1], [], []>} : vector<8x8xf32>, vector<8x8xf32>, vector<8x8xf32> -> vector<8x8xf32>
    %193 = tpu.concatenate %144, %160, %176, %192 in 1 : vector<8x8xf32>, vector<8x8xf32>, vector<8x8xf32>, vector<8x8xf32> -> vector<8x32xf32>
    %194 = vector.extract_strided_slice %127 {offsets = [8, 0], sizes = [8, 96], strides = [1, 1]} : vector<16x96xf32> to vector<8x96xf32>
    %195 = vector.extract_strided_slice %194 {offsets = [0, 0], sizes = [8, 8], strides = [1, 1]} : vector<8x96xf32> to vector<8x8xf32>
    %196 = vector.extract_strided_slice %194 {offsets = [0, 32], sizes = [8, 8], strides = [1, 1]} : vector<8x96xf32> to vector<8x8xf32>
    %197 = vector.extract_strided_slice %194 {offsets = [0, 64], sizes = [8, 8], strides = [1, 1]} : vector<8x96xf32> to vector<8x8xf32>
    %cst_92 = arith.constant dense<0.000000e+00> : vector<8x8xf32>
    %198 = tpu.matmul %195, %196, %cst_92 {dimension_numbers = #tpu.dot_dimension_numbers<[1], [1], [0], [0], [0, 0, 1, 0], [], []>} : vector<8x8xf32>, vector<8x8xf32>, vector<8x8xf32> -> vector<8x8xf32>
    %199 = arith.addf %198, %120 : vector<8x8xf32>
    %cst_93 = arith.constant dense<0xFF800000> : vector<8xf32>
    %200 = vector.multi_reduction <maximumf>, %199, %cst_93 [1] : vector<8x8xf32> to vector<8xf32>
    %201 = vector.shape_cast %200 : vector<8xf32> to vector<8x1xf32>
    %202 = vector.broadcast %201 : vector<8x1xf32> to vector<8x8xf32>
    %203 = arith.subf %199, %202 : vector<8x8xf32>
    %204 = math.exp %203 : vector<8x8xf32>
    %cst_94 = arith.constant dense<0.000000e+00> : vector<8xf32>
    %205 = vector.multi_reduction <add>, %204, %cst_94 [1] : vector<8x8xf32> to vector<8xf32>
    %206 = vector.shape_cast %205 : vector<8xf32> to vector<8x1xf32>
    %207 = tpu.reciprocal %206 {approx = true} : vector<8x1xf32> -> vector<8x1xf32>
    %208 = vector.broadcast %207 : vector<8x1xf32> to vector<8x8xf32>
    %209 = arith.mulf %204, %208 : vector<8x8xf32>
    %cst_95 = arith.constant dense<0.000000e+00> : vector<8x8xf32>
    %210 = tpu.matmul %209, %197, %cst_95 {dimension_numbers = #tpu.dot_dimension_numbers<[1], [0], [0], [1], [0, 0, 1, 1], [], []>} : vector<8x8xf32>, vector<8x8xf32>, vector<8x8xf32> -> vector<8x8xf32>
    %211 = vector.extract_strided_slice %194 {offsets = [0, 8], sizes = [8, 8], strides = [1, 1]} : vector<8x96xf32> to vector<8x8xf32>
    %212 = vector.extract_strided_slice %194 {offsets = [0, 40], sizes = [8, 8], strides = [1, 1]} : vector<8x96xf32> to vector<8x8xf32>
    %213 = vector.extract_strided_slice %194 {offsets = [0, 72], sizes = [8, 8], strides = [1, 1]} : vector<8x96xf32> to vector<8x8xf32>
    %cst_96 = arith.constant dense<0.000000e+00> : vector<8x8xf32>
    %214 = tpu.matmul %211, %212, %cst_96 {dimension_numbers = #tpu.dot_dimension_numbers<[1], [1], [0], [0], [0, 0, 1, 0], [], []>} : vector<8x8xf32>, vector<8x8xf32>, vector<8x8xf32> -> vector<8x8xf32>
    %215 = arith.addf %214, %120 : vector<8x8xf32>
    %cst_97 = arith.constant dense<0xFF800000> : vector<8xf32>
    %216 = vector.multi_reduction <maximumf>, %215, %cst_97 [1] : vector<8x8xf32> to vector<8xf32>
    %217 = vector.shape_cast %216 : vector<8xf32> to vector<8x1xf32>
    %218 = vector.broadcast %217 : vector<8x1xf32> to vector<8x8xf32>
    %219 = arith.subf %215, %218 : vector<8x8xf32>
    %220 = math.exp %219 : vector<8x8xf32>
    %cst_98 = arith.constant dense<0.000000e+00> : vector<8xf32>
    %221 = vector.multi_reduction <add>, %220, %cst_98 [1] : vector<8x8xf32> to vector<8xf32>
    %222 = vector.shape_cast %221 : vector<8xf32> to vector<8x1xf32>
    %223 = tpu.reciprocal %222 {approx = true} : vector<8x1xf32> -> vector<8x1xf32>
    %224 = vector.broadcast %223 : vector<8x1xf32> to vector<8x8xf32>
    %225 = arith.mulf %220, %224 : vector<8x8xf32>
    %cst_99 = arith.constant dense<0.000000e+00> : vector<8x8xf32>
    %226 = tpu.matmul %225, %213, %cst_99 {dimension_numbers = #tpu.dot_dimension_numbers<[1], [0], [0], [1], [0, 0, 1, 1], [], []>} : vector<8x8xf32>, vector<8x8xf32>, vector<8x8xf32> -> vector<8x8xf32>
    %227 = vector.extract_strided_slice %194 {offsets = [0, 16], sizes = [8, 8], strides = [1, 1]} : vector<8x96xf32> to vector<8x8xf32>
    %228 = vector.extract_strided_slice %194 {offsets = [0, 48], sizes = [8, 8], strides = [1, 1]} : vector<8x96xf32> to vector<8x8xf32>
    %229 = vector.extract_strided_slice %194 {offsets = [0, 80], sizes = [8, 8], strides = [1, 1]} : vector<8x96xf32> to vector<8x8xf32>
    %cst_100 = arith.constant dense<0.000000e+00> : vector<8x8xf32>
    %230 = tpu.matmul %227, %228, %cst_100 {dimension_numbers = #tpu.dot_dimension_numbers<[1], [1], [0], [0], [0, 0, 1, 0], [], []>} : vector<8x8xf32>, vector<8x8xf32>, vector<8x8xf32> -> vector<8x8xf32>
    %231 = arith.addf %230, %120 : vector<8x8xf32>
    %cst_101 = arith.constant dense<0xFF800000> : vector<8xf32>
    %232 = vector.multi_reduction <maximumf>, %231, %cst_101 [1] : vector<8x8xf32> to vector<8xf32>
    %233 = vector.shape_cast %232 : vector<8xf32> to vector<8x1xf32>
    %234 = vector.broadcast %233 : vector<8x1xf32> to vector<8x8xf32>
    %235 = arith.subf %231, %234 : vector<8x8xf32>
    %236 = math.exp %235 : vector<8x8xf32>
    %cst_102 = arith.constant dense<0.000000e+00> : vector<8xf32>
    %237 = vector.multi_reduction <add>, %236, %cst_102 [1] : vector<8x8xf32> to vector<8xf32>
    %238 = vector.shape_cast %237 : vector<8xf32> to vector<8x1xf32>
    %239 = tpu.reciprocal %238 {approx = true} : vector<8x1xf32> -> vector<8x1xf32>
    %240 = vector.broadcast %239 : vector<8x1xf32> to vector<8x8xf32>
    %241 = arith.mulf %236, %240 : vector<8x8xf32>
    %cst_103 = arith.constant dense<0.000000e+00> : vector<8x8xf32>
    %242 = tpu.matmul %241, %229, %cst_103 {dimension_numbers = #tpu.dot_dimension_numbers<[1], [0], [0], [1], [0, 0, 1, 1], [], []>} : vector<8x8xf32>, vector<8x8xf32>, vector<8x8xf32> -> vector<8x8xf32>
    %243 = vector.extract_strided_slice %194 {offsets = [0, 24], sizes = [8, 8], strides = [1, 1]} : vector<8x96xf32> to vector<8x8xf32>
    %244 = vector.extract_strided_slice %194 {offsets = [0, 56], sizes = [8, 8], strides = [1, 1]} : vector<8x96xf32> to vector<8x8xf32>
    %245 = vector.extract_strided_slice %194 {offsets = [0, 88], sizes = [8, 8], strides = [1, 1]} : vector<8x96xf32> to vector<8x8xf32>
    %cst_104 = arith.constant dense<0.000000e+00> : vector<8x8xf32>
    %246 = tpu.matmul %243, %244, %cst_104 {dimension_numbers = #tpu.dot_dimension_numbers<[1], [1], [0], [0], [0, 0, 1, 0], [], []>} : vector<8x8xf32>, vector<8x8xf32>, vector<8x8xf32> -> vector<8x8xf32>
    %247 = arith.addf %246, %120 : vector<8x8xf32>
    %cst_105 = arith.constant dense<0xFF800000> : vector<8xf32>
    %248 = vector.multi_reduction <maximumf>, %247, %cst_105 [1] : vector<8x8xf32> to vector<8xf32>
    %249 = vector.shape_cast %248 : vector<8xf32> to vector<8x1xf32>
    %250 = vector.broadcast %249 : vector<8x1xf32> to vector<8x8xf32>
    %251 = arith.subf %247, %250 : vector<8x8xf32>
    %252 = math.exp %251 : vector<8x8xf32>
    %cst_106 = arith.constant dense<0.000000e+00> : vector<8xf32>
    %253 = vector.multi_reduction <add>, %252, %cst_106 [1] : vector<8x8xf32> to vector<8xf32>
    %254 = vector.shape_cast %253 : vector<8xf32> to vector<8x1xf32>
    %255 = tpu.reciprocal %254 {approx = true} : vector<8x1xf32> -> vector<8x1xf32>
    %256 = vector.broadcast %255 : vector<8x1xf32> to vector<8x8xf32>
    %257 = arith.mulf %252, %256 : vector<8x8xf32>
    %cst_107 = arith.constant dense<0.000000e+00> : vector<8x8xf32>
    %258 = tpu.matmul %257, %245, %cst_107 {dimension_numbers = #tpu.dot_dimension_numbers<[1], [0], [0], [1], [0, 0, 1, 1], [], []>} : vector<8x8xf32>, vector<8x8xf32>, vector<8x8xf32> -> vector<8x8xf32>
    %259 = tpu.concatenate %210, %226, %242, %258 in 1 : vector<8x8xf32>, vector<8x8xf32>, vector<8x8xf32>, vector<8x8xf32> -> vector<8x32xf32>
    %260 = tpu.concatenate %193, %259 in 0 : vector<8x32xf32>, vector<8x32xf32> -> vector<16x32xf32>
    %c0_108 = arith.constant 0 : index
    %c0_109 = arith.constant 0 : index
    %c0_110 = arith.constant 0 : index
    %261 = vector.load %arg7[%c0_108, %c0_109, %c0_110] : memref<2x32x32xf32, #tpu.memory_space<vmem>>, vector<1x32x32xf32>
    %262 = vector.shape_cast %261 : vector<1x32x32xf32> to vector<32x32xf32>
    %cst_111 = arith.constant dense<0.000000e+00> : vector<16x32xf32>
    %263 = tpu.matmul %260, %262, %cst_111 {dimension_numbers = #tpu.dot_dimension_numbers<[1], [0], [0], [1], [0, 0, 1, 1], [], []>} : vector<16x32xf32>, vector<32x32xf32>, vector<16x32xf32> -> vector<16x32xf32>
    %c0_112 = arith.constant 0 : index
    %c0_113 = arith.constant 0 : index
    %c0_114 = arith.constant 0 : index
    %264 = vector.load %arg8[%c0_112, %c0_113, %c0_114] : memref<2x1x32xf32, #tpu.memory_space<vmem>>, vector<1x1x32xf32>
    %265 = vector.shape_cast %264 : vector<1x1x32xf32> to vector<1x32xf32>
    %266 = vector.broadcast %265 : vector<1x32xf32> to vector<16x32xf32>
    %267 = arith.addf %263, %266 : vector<16x32xf32>
    %268 = arith.addf %113, %267 : vector<16x32xf32>
    %c0_115 = arith.constant 0 : index
    %c0_116 = arith.constant 0 : index
    %c0_117 = arith.constant 0 : index
    %269 = vector.load %arg13[%c0_115, %c0_116, %c0_117] : memref<2x1x32xf32, #tpu.memory_space<vmem>>, vector<1x1x32xf32>
    %270 = vector.shape_cast %269 : vector<1x1x32xf32> to vector<1x32xf32>
    %c0_118 = arith.constant 0 : index
    %c0_119 = arith.constant 0 : index
    %c0_120 = arith.constant 0 : index
    %271 = vector.load %arg14[%c0_118, %c0_119, %c0_120] : memref<2x1x32xf32, #tpu.memory_space<vmem>>, vector<1x1x32xf32>
    %272 = vector.shape_cast %271 : vector<1x1x32xf32> to vector<1x32xf32>
    %cst_121 = arith.constant dense<0.000000e+00> : vector<16xf32>
    %273 = vector.multi_reduction <add>, %268, %cst_121 [1] : vector<16x32xf32> to vector<16xf32>
    %274 = vector.shape_cast %273 : vector<16xf32> to vector<16x1xf32>
    %cst_122 = arith.constant 3.200000e+01 : f32
    %275 = vector.broadcast %cst_122 : f32 to vector<16x1xf32>
    %276 = arith.divf %274, %275 : vector<16x1xf32>
    %277 = vector.broadcast %276 : vector<16x1xf32> to vector<16x32xf32>
    %278 = arith.subf %268, %277 : vector<16x32xf32>
    %279 = arith.mulf %278, %278 : vector<16x32xf32>
    %cst_123 = arith.constant dense<0.000000e+00> : vector<16xf32>
    %280 = vector.multi_reduction <add>, %279, %cst_123 [1] : vector<16x32xf32> to vector<16xf32>
    %281 = vector.shape_cast %280 : vector<16xf32> to vector<16x1xf32>
    %cst_124 = arith.constant 3.200000e+01 : f32
    %282 = vector.broadcast %cst_124 : f32 to vector<16x1xf32>
    %283 = arith.divf %281, %282 : vector<16x1xf32>
    %284 = vector.broadcast %276 : vector<16x1xf32> to vector<16x32xf32>
    %285 = arith.subf %268, %284 : vector<16x32xf32>
    %cst_125 = arith.constant 9.99999974E-6 : f32
    %286 = vector.broadcast %cst_125 : f32 to vector<16x1xf32>
    %287 = arith.addf %283, %286 : vector<16x1xf32>
    %288 = math.rsqrt %287 : vector<16x1xf32>
    %289 = vector.broadcast %288 : vector<16x1xf32> to vector<16x32xf32>
    %290 = arith.mulf %285, %289 : vector<16x32xf32>
    %291 = vector.broadcast %270 : vector<1x32xf32> to vector<16x32xf32>
    %292 = arith.mulf %290, %291 : vector<16x32xf32>
    %293 = vector.broadcast %272 : vector<1x32xf32> to vector<16x32xf32>
    %294 = arith.addf %292, %293 : vector<16x32xf32>
    %c0_126 = arith.constant 0 : index
    %c0_127 = arith.constant 0 : index
    %c0_128 = arith.constant 0 : index
    %295 = vector.load %arg9[%c0_126, %c0_127, %c0_128] : memref<2x32x64xf32, #tpu.memory_space<vmem>>, vector<1x32x64xf32>
    %296 = vector.shape_cast %295 : vector<1x32x64xf32> to vector<32x64xf32>
    %cst_129 = arith.constant dense<0.000000e+00> : vector<16x64xf32>
    %297 = tpu.matmul %294, %296, %cst_129 {dimension_numbers = #tpu.dot_dimension_numbers<[1], [0], [0], [1], [0, 0, 1, 1], [], []>} : vector<16x32xf32>, vector<32x64xf32>, vector<16x64xf32> -> vector<16x64xf32>
    %c0_130 = arith.constant 0 : index
    %c0_131 = arith.constant 0 : index
    %c0_132 = arith.constant 0 : index
    %298 = vector.load %arg10[%c0_130, %c0_131, %c0_132] : memref<2x1x64xf32, #tpu.memory_space<vmem>>, vector<1x1x64xf32>
    %299 = vector.shape_cast %298 : vector<1x1x64xf32> to vector<1x64xf32>
    %300 = vector.broadcast %299 : vector<1x64xf32> to vector<16x64xf32>
    %301 = arith.addf %297, %300 : vector<16x64xf32>
    %cst_133 = arith.constant 0.000000e+00 : f32
    %302 = vector.broadcast %cst_133 : f32 to vector<16x64xf32>
    %303 = arith.maximumf %301, %302 : vector<16x64xf32>
    %c0_134 = arith.constant 0 : index
    %c0_135 = arith.constant 0 : index
    %c0_136 = arith.constant 0 : index
    %304 = vector.load %arg11[%c0_134, %c0_135, %c0_136] : memref<2x64x32xf32, #tpu.memory_space<vmem>>, vector<1x64x32xf32>
    %305 = vector.shape_cast %304 : vector<1x64x32xf32> to vector<64x32xf32>
    %cst_137 = arith.constant dense<0.000000e+00> : vector<16x32xf32>
    %306 = tpu.matmul %303, %305, %cst_137 {dimension_numbers = #tpu.dot_dimension_numbers<[1], [0], [0], [1], [0, 0, 1, 1], [], []>} : vector<16x64xf32>, vector<64x32xf32>, vector<16x32xf32> -> vector<16x32xf32>
    %c0_138 = arith.constant 0 : index
    %c0_139 = arith.constant 0 : index
    %c0_140 = arith.constant 0 : index
    %307 = vector.load %arg12[%c0_138, %c0_139, %c0_140] : memref<2x1x32xf32, #tpu.memory_space<vmem>>, vector<1x1x32xf32>
    %308 = vector.shape_cast %307 : vector<1x1x32xf32> to vector<1x32xf32>
    %309 = vector.broadcast %308 : vector<1x32xf32> to vector<16x32xf32>
    %310 = arith.addf %306, %309 : vector<16x32xf32>
    %311 = arith.addf %294, %310 : vector<16x32xf32>
    %c0_141 = arith.constant 0 : index
    %c0_142 = arith.constant 0 : index
    %c0_143 = arith.constant 0 : index
    %312 = vector.load %arg15[%c0_141, %c0_142, %c0_143] : memref<2x1x32xf32, #tpu.memory_space<vmem>>, vector<1x1x32xf32>
    %313 = vector.shape_cast %312 : vector<1x1x32xf32> to vector<1x32xf32>
    %c0_144 = arith.constant 0 : index
    %c0_145 = arith.constant 0 : index
    %c0_146 = arith.constant 0 : index
    %314 = vector.load %arg16[%c0_144, %c0_145, %c0_146] : memref<2x1x32xf32, #tpu.memory_space<vmem>>, vector<1x1x32xf32>
    %315 = vector.shape_cast %314 : vector<1x1x32xf32> to vector<1x32xf32>
    %cst_147 = arith.constant dense<0.000000e+00> : vector<16xf32>
    %316 = vector.multi_reduction <add>, %311, %cst_147 [1] : vector<16x32xf32> to vector<16xf32>
    %317 = vector.shape_cast %316 : vector<16xf32> to vector<16x1xf32>
    %cst_148 = arith.constant 3.200000e+01 : f32
    %318 = vector.broadcast %cst_148 : f32 to vector<16x1xf32>
    %319 = arith.divf %317, %318 : vector<16x1xf32>
    %320 = vector.broadcast %319 : vector<16x1xf32> to vector<16x32xf32>
    %321 = arith.subf %311, %320 : vector<16x32xf32>
    %322 = arith.mulf %321, %321 : vector<16x32xf32>
    %cst_149 = arith.constant dense<0.000000e+00> : vector<16xf32>
    %323 = vector.multi_reduction <add>, %322, %cst_149 [1] : vector<16x32xf32> to vector<16xf32>
    %324 = vector.shape_cast %323 : vector<16xf32> to vector<16x1xf32>
    %cst_150 = arith.constant 3.200000e+01 : f32
    %325 = vector.broadcast %cst_150 : f32 to vector<16x1xf32>
    %326 = arith.divf %324, %325 : vector<16x1xf32>
    %327 = vector.broadcast %319 : vector<16x1xf32> to vector<16x32xf32>
    %328 = arith.subf %311, %327 : vector<16x32xf32>
    %cst_151 = arith.constant 9.99999974E-6 : f32
    %329 = vector.broadcast %cst_151 : f32 to vector<16x1xf32>
    %330 = arith.addf %326, %329 : vector<16x1xf32>
    %331 = math.rsqrt %330 : vector<16x1xf32>
    %332 = vector.broadcast %331 : vector<16x1xf32> to vector<16x32xf32>
    %333 = arith.mulf %328, %332 : vector<16x32xf32>
    %334 = vector.broadcast %313 : vector<1x32xf32> to vector<16x32xf32>
    %335 = arith.mulf %333, %334 : vector<16x32xf32>
    %336 = vector.broadcast %315 : vector<1x32xf32> to vector<16x32xf32>
    %337 = arith.addf %335, %336 : vector<16x32xf32>
    %c1_152 = arith.constant 1 : index
    %c0_153 = arith.constant 0 : index
    %c0_154 = arith.constant 0 : index
    %338 = vector.load %arg5[%c1_152, %c0_153, %c0_154] : memref<2x32x96xf32, #tpu.memory_space<vmem>>, vector<1x32x96xf32>
    %339 = vector.shape_cast %338 : vector<1x32x96xf32> to vector<32x96xf32>
    %cst_155 = arith.constant dense<0.000000e+00> : vector<16x96xf32>
    %340 = tpu.matmul %337, %339, %cst_155 {dimension_numbers = #tpu.dot_dimension_numbers<[1], [0], [0], [1], [0, 0, 1, 1], [], []>} : vector<16x32xf32>, vector<32x96xf32>, vector<16x96xf32> -> vector<16x96xf32>
    %c1_156 = arith.constant 1 : index
    %c0_157 = arith.constant 0 : index
    %c0_158 = arith.constant 0 : index
    %341 = vector.load %arg6[%c1_156, %c0_157, %c0_158] : memref<2x1x96xf32, #tpu.memory_space<vmem>>, vector<1x1x96xf32>
    %342 = vector.shape_cast %341 : vector<1x1x96xf32> to vector<1x96xf32>
    %343 = vector.broadcast %342 : vector<1x96xf32> to vector<16x96xf32>
    %344 = arith.addf %340, %343 : vector<16x96xf32>
    %345 = vector.extract_strided_slice %344 {offsets = [0, 0], sizes = [8, 96], strides = [1, 1]} : vector<16x96xf32> to vector<8x96xf32>
    %346 = vector.extract_strided_slice %345 {offsets = [0, 0], sizes = [8, 8], strides = [1, 1]} : vector<8x96xf32> to vector<8x8xf32>
    %347 = vector.extract_strided_slice %345 {offsets = [0, 32], sizes = [8, 8], strides = [1, 1]} : vector<8x96xf32> to vector<8x8xf32>
    %348 = vector.extract_strided_slice %345 {offsets = [0, 64], sizes = [8, 8], strides = [1, 1]} : vector<8x96xf32> to vector<8x8xf32>
    %cst_159 = arith.constant dense<0.000000e+00> : vector<8x8xf32>
    %349 = tpu.matmul %346, %347, %cst_159 {dimension_numbers = #tpu.dot_dimension_numbers<[1], [1], [0], [0], [0, 0, 1, 0], [], []>} : vector<8x8xf32>, vector<8x8xf32>, vector<8x8xf32> -> vector<8x8xf32>
    %350 = arith.addf %349, %117 : vector<8x8xf32>
    %cst_160 = arith.constant dense<0xFF800000> : vector<8xf32>
    %351 = vector.multi_reduction <maximumf>, %350, %cst_160 [1] : vector<8x8xf32> to vector<8xf32>
    %352 = vector.shape_cast %351 : vector<8xf32> to vector<8x1xf32>
    %353 = vector.broadcast %352 : vector<8x1xf32> to vector<8x8xf32>
    %354 = arith.subf %350, %353 : vector<8x8xf32>
    %355 = math.exp %354 : vector<8x8xf32>
    %cst_161 = arith.constant dense<0.000000e+00> : vector<8xf32>
    %356 = vector.multi_reduction <add>, %355, %cst_161 [1] : vector<8x8xf32> to vector<8xf32>
    %357 = vector.shape_cast %356 : vector<8xf32> to vector<8x1xf32>
    %358 = tpu.reciprocal %357 {approx = true} : vector<8x1xf32> -> vector<8x1xf32>
    %359 = vector.broadcast %358 : vector<8x1xf32> to vector<8x8xf32>
    %360 = arith.mulf %355, %359 : vector<8x8xf32>
    %cst_162 = arith.constant dense<0.000000e+00> : vector<8x8xf32>
    %361 = tpu.matmul %360, %348, %cst_162 {dimension_numbers = #tpu.dot_dimension_numbers<[1], [0], [0], [1], [0, 0, 1, 1], [], []>} : vector<8x8xf32>, vector<8x8xf32>, vector<8x8xf32> -> vector<8x8xf32>
    %362 = vector.extract_strided_slice %345 {offsets = [0, 8], sizes = [8, 8], strides = [1, 1]} : vector<8x96xf32> to vector<8x8xf32>
    %363 = vector.extract_strided_slice %345 {offsets = [0, 40], sizes = [8, 8], strides = [1, 1]} : vector<8x96xf32> to vector<8x8xf32>
    %364 = vector.extract_strided_slice %345 {offsets = [0, 72], sizes = [8, 8], strides = [1, 1]} : vector<8x96xf32> to vector<8x8xf32>
    %cst_163 = arith.constant dense<0.000000e+00> : vector<8x8xf32>
    %365 = tpu.matmul %362, %363, %cst_163 {dimension_numbers = #tpu.dot_dimension_numbers<[1], [1], [0], [0], [0, 0, 1, 0], [], []>} : vector<8x8xf32>, vector<8x8xf32>, vector<8x8xf32> -> vector<8x8xf32>
    %366 = arith.addf %365, %117 : vector<8x8xf32>
    %cst_164 = arith.constant dense<0xFF800000> : vector<8xf32>
    %367 = vector.multi_reduction <maximumf>, %366, %cst_164 [1] : vector<8x8xf32> to vector<8xf32>
    %368 = vector.shape_cast %367 : vector<8xf32> to vector<8x1xf32>
    %369 = vector.broadcast %368 : vector<8x1xf32> to vector<8x8xf32>
    %370 = arith.subf %366, %369 : vector<8x8xf32>
    %371 = math.exp %370 : vector<8x8xf32>
    %cst_165 = arith.constant dense<0.000000e+00> : vector<8xf32>
    %372 = vector.multi_reduction <add>, %371, %cst_165 [1] : vector<8x8xf32> to vector<8xf32>
    %373 = vector.shape_cast %372 : vector<8xf32> to vector<8x1xf32>
    %374 = tpu.reciprocal %373 {approx = true} : vector<8x1xf32> -> vector<8x1xf32>
    %375 = vector.broadcast %374 : vector<8x1xf32> to vector<8x8xf32>
    %376 = arith.mulf %371, %375 : vector<8x8xf32>
    %cst_166 = arith.constant dense<0.000000e+00> : vector<8x8xf32>
    %377 = tpu.matmul %376, %364, %cst_166 {dimension_numbers = #tpu.dot_dimension_numbers<[1], [0], [0], [1], [0, 0, 1, 1], [], []>} : vector<8x8xf32>, vector<8x8xf32>, vector<8x8xf32> -> vector<8x8xf32>
    %378 = vector.extract_strided_slice %345 {offsets = [0, 16], sizes = [8, 8], strides = [1, 1]} : vector<8x96xf32> to vector<8x8xf32>
    %379 = vector.extract_strided_slice %345 {offsets = [0, 48], sizes = [8, 8], strides = [1, 1]} : vector<8x96xf32> to vector<8x8xf32>
    %380 = vector.extract_strided_slice %345 {offsets = [0, 80], sizes = [8, 8], strides = [1, 1]} : vector<8x96xf32> to vector<8x8xf32>
    %cst_167 = arith.constant dense<0.000000e+00> : vector<8x8xf32>
    %381 = tpu.matmul %378, %379, %cst_167 {dimension_numbers = #tpu.dot_dimension_numbers<[1], [1], [0], [0], [0, 0, 1, 0], [], []>} : vector<8x8xf32>, vector<8x8xf32>, vector<8x8xf32> -> vector<8x8xf32>
    %382 = arith.addf %381, %117 : vector<8x8xf32>
    %cst_168 = arith.constant dense<0xFF800000> : vector<8xf32>
    %383 = vector.multi_reduction <maximumf>, %382, %cst_168 [1] : vector<8x8xf32> to vector<8xf32>
    %384 = vector.shape_cast %383 : vector<8xf32> to vector<8x1xf32>
    %385 = vector.broadcast %384 : vector<8x1xf32> to vector<8x8xf32>
    %386 = arith.subf %382, %385 : vector<8x8xf32>
    %387 = math.exp %386 : vector<8x8xf32>
    %cst_169 = arith.constant dense<0.000000e+00> : vector<8xf32>
    %388 = vector.multi_reduction <add>, %387, %cst_169 [1] : vector<8x8xf32> to vector<8xf32>
    %389 = vector.shape_cast %388 : vector<8xf32> to vector<8x1xf32>
    %390 = tpu.reciprocal %389 {approx = true} : vector<8x1xf32> -> vector<8x1xf32>
    %391 = vector.broadcast %390 : vector<8x1xf32> to vector<8x8xf32>
    %392 = arith.mulf %387, %391 : vector<8x8xf32>
    %cst_170 = arith.constant dense<0.000000e+00> : vector<8x8xf32>
    %393 = tpu.matmul %392, %380, %cst_170 {dimension_numbers = #tpu.dot_dimension_numbers<[1], [0], [0], [1], [0, 0, 1, 1], [], []>} : vector<8x8xf32>, vector<8x8xf32>, vector<8x8xf32> -> vector<8x8xf32>
    %394 = vector.extract_strided_slice %345 {offsets = [0, 24], sizes = [8, 8], strides = [1, 1]} : vector<8x96xf32> to vector<8x8xf32>
    %395 = vector.extract_strided_slice %345 {offsets = [0, 56], sizes = [8, 8], strides = [1, 1]} : vector<8x96xf32> to vector<8x8xf32>
    %396 = vector.extract_strided_slice %345 {offsets = [0, 88], sizes = [8, 8], strides = [1, 1]} : vector<8x96xf32> to vector<8x8xf32>
    %cst_171 = arith.constant dense<0.000000e+00> : vector<8x8xf32>
    %397 = tpu.matmul %394, %395, %cst_171 {dimension_numbers = #tpu.dot_dimension_numbers<[1], [1], [0], [0], [0, 0, 1, 0], [], []>} : vector<8x8xf32>, vector<8x8xf32>, vector<8x8xf32> -> vector<8x8xf32>
    %398 = arith.addf %397, %117 : vector<8x8xf32>
    %cst_172 = arith.constant dense<0xFF800000> : vector<8xf32>
    %399 = vector.multi_reduction <maximumf>, %398, %cst_172 [1] : vector<8x8xf32> to vector<8xf32>
    %400 = vector.shape_cast %399 : vector<8xf32> to vector<8x1xf32>
    %401 = vector.broadcast %400 : vector<8x1xf32> to vector<8x8xf32>
    %402 = arith.subf %398, %401 : vector<8x8xf32>
    %403 = math.exp %402 : vector<8x8xf32>
    %cst_173 = arith.constant dense<0.000000e+00> : vector<8xf32>
    %404 = vector.multi_reduction <add>, %403, %cst_173 [1] : vector<8x8xf32> to vector<8xf32>
    %405 = vector.shape_cast %404 : vector<8xf32> to vector<8x1xf32>
    %406 = tpu.reciprocal %405 {approx = true} : vector<8x1xf32> -> vector<8x1xf32>
    %407 = vector.broadcast %406 : vector<8x1xf32> to vector<8x8xf32>
    %408 = arith.mulf %403, %407 : vector<8x8xf32>
    %cst_174 = arith.constant dense<0.000000e+00> : vector<8x8xf32>
    %409 = tpu.matmul %408, %396, %cst_174 {dimension_numbers = #tpu.dot_dimension_numbers<[1], [0], [0], [1], [0, 0, 1, 1], [], []>} : vector<8x8xf32>, vector<8x8xf32>, vector<8x8xf32> -> vector<8x8xf32>
    %410 = tpu.concatenate %361, %377, %393, %409 in 1 : vector<8x8xf32>, vector<8x8xf32>, vector<8x8xf32>, vector<8x8xf32> -> vector<8x32xf32>
    %411 = vector.extract_strided_slice %344 {offsets = [8, 0], sizes = [8, 96], strides = [1, 1]} : vector<16x96xf32> to vector<8x96xf32>
    %412 = vector.extract_strided_slice %411 {offsets = [0, 0], sizes = [8, 8], strides = [1, 1]} : vector<8x96xf32> to vector<8x8xf32>
    %413 = vector.extract_strided_slice %411 {offsets = [0, 32], sizes = [8, 8], strides = [1, 1]} : vector<8x96xf32> to vector<8x8xf32>
    %414 = vector.extract_strided_slice %411 {offsets = [0, 64], sizes = [8, 8], strides = [1, 1]} : vector<8x96xf32> to vector<8x8xf32>
    %cst_175 = arith.constant dense<0.000000e+00> : vector<8x8xf32>
    %415 = tpu.matmul %412, %413, %cst_175 {dimension_numbers = #tpu.dot_dimension_numbers<[1], [1], [0], [0], [0, 0, 1, 0], [], []>} : vector<8x8xf32>, vector<8x8xf32>, vector<8x8xf32> -> vector<8x8xf32>
    %416 = arith.addf %415, %120 : vector<8x8xf32>
    %cst_176 = arith.constant dense<0xFF800000> : vector<8xf32>
    %417 = vector.multi_reduction <maximumf>, %416, %cst_176 [1] : vector<8x8xf32> to vector<8xf32>
    %418 = vector.shape_cast %417 : vector<8xf32> to vector<8x1xf32>
    %419 = vector.broadcast %418 : vector<8x1xf32> to vector<8x8xf32>
    %420 = arith.subf %416, %419 : vector<8x8xf32>
    %421 = math.exp %420 : vector<8x8xf32>
    %cst_177 = arith.constant dense<0.000000e+00> : vector<8xf32>
    %422 = vector.multi_reduction <add>, %421, %cst_177 [1] : vector<8x8xf32> to vector<8xf32>
    %423 = vector.shape_cast %422 : vector<8xf32> to vector<8x1xf32>
    %424 = tpu.reciprocal %423 {approx = true} : vector<8x1xf32> -> vector<8x1xf32>
    %425 = vector.broadcast %424 : vector<8x1xf32> to vector<8x8xf32>
    %426 = arith.mulf %421, %425 : vector<8x8xf32>
    %cst_178 = arith.constant dense<0.000000e+00> : vector<8x8xf32>
    %427 = tpu.matmul %426, %414, %cst_178 {dimension_numbers = #tpu.dot_dimension_numbers<[1], [0], [0], [1], [0, 0, 1, 1], [], []>} : vector<8x8xf32>, vector<8x8xf32>, vector<8x8xf32> -> vector<8x8xf32>
    %428 = vector.extract_strided_slice %411 {offsets = [0, 8], sizes = [8, 8], strides = [1, 1]} : vector<8x96xf32> to vector<8x8xf32>
    %429 = vector.extract_strided_slice %411 {offsets = [0, 40], sizes = [8, 8], strides = [1, 1]} : vector<8x96xf32> to vector<8x8xf32>
    %430 = vector.extract_strided_slice %411 {offsets = [0, 72], sizes = [8, 8], strides = [1, 1]} : vector<8x96xf32> to vector<8x8xf32>
    %cst_179 = arith.constant dense<0.000000e+00> : vector<8x8xf32>
    %431 = tpu.matmul %428, %429, %cst_179 {dimension_numbers = #tpu.dot_dimension_numbers<[1], [1], [0], [0], [0, 0, 1, 0], [], []>} : vector<8x8xf32>, vector<8x8xf32>, vector<8x8xf32> -> vector<8x8xf32>
    %432 = arith.addf %431, %120 : vector<8x8xf32>
    %cst_180 = arith.constant dense<0xFF800000> : vector<8xf32>
    %433 = vector.multi_reduction <maximumf>, %432, %cst_180 [1] : vector<8x8xf32> to vector<8xf32>
    %434 = vector.shape_cast %433 : vector<8xf32> to vector<8x1xf32>
    %435 = vector.broadcast %434 : vector<8x1xf32> to vector<8x8xf32>
    %436 = arith.subf %432, %435 : vector<8x8xf32>
    %437 = math.exp %436 : vector<8x8xf32>
    %cst_181 = arith.constant dense<0.000000e+00> : vector<8xf32>
    %438 = vector.multi_reduction <add>, %437, %cst_181 [1] : vector<8x8xf32> to vector<8xf32>
    %439 = vector.shape_cast %438 : vector<8xf32> to vector<8x1xf32>
    %440 = tpu.reciprocal %439 {approx = true} : vector<8x1xf32> -> vector<8x1xf32>
    %441 = vector.broadcast %440 : vector<8x1xf32> to vector<8x8xf32>
    %442 = arith.mulf %437, %441 : vector<8x8xf32>
    %cst_182 = arith.constant dense<0.000000e+00> : vector<8x8xf32>
    %443 = tpu.matmul %442, %430, %cst_182 {dimension_numbers = #tpu.dot_dimension_numbers<[1], [0], [0], [1], [0, 0, 1, 1], [], []>} : vector<8x8xf32>, vector<8x8xf32>, vector<8x8xf32> -> vector<8x8xf32>
    %444 = vector.extract_strided_slice %411 {offsets = [0, 16], sizes = [8, 8], strides = [1, 1]} : vector<8x96xf32> to vector<8x8xf32>
    %445 = vector.extract_strided_slice %411 {offsets = [0, 48], sizes = [8, 8], strides = [1, 1]} : vector<8x96xf32> to vector<8x8xf32>
    %446 = vector.extract_strided_slice %411 {offsets = [0, 80], sizes = [8, 8], strides = [1, 1]} : vector<8x96xf32> to vector<8x8xf32>
    %cst_183 = arith.constant dense<0.000000e+00> : vector<8x8xf32>
    %447 = tpu.matmul %444, %445, %cst_183 {dimension_numbers = #tpu.dot_dimension_numbers<[1], [1], [0], [0], [0, 0, 1, 0], [], []>} : vector<8x8xf32>, vector<8x8xf32>, vector<8x8xf32> -> vector<8x8xf32>
    %448 = arith.addf %447, %120 : vector<8x8xf32>
    %cst_184 = arith.constant dense<0xFF800000> : vector<8xf32>
    %449 = vector.multi_reduction <maximumf>, %448, %cst_184 [1] : vector<8x8xf32> to vector<8xf32>
    %450 = vector.shape_cast %449 : vector<8xf32> to vector<8x1xf32>
    %451 = vector.broadcast %450 : vector<8x1xf32> to vector<8x8xf32>
    %452 = arith.subf %448, %451 : vector<8x8xf32>
    %453 = math.exp %452 : vector<8x8xf32>
    %cst_185 = arith.constant dense<0.000000e+00> : vector<8xf32>
    %454 = vector.multi_reduction <add>, %453, %cst_185 [1] : vector<8x8xf32> to vector<8xf32>
    %455 = vector.shape_cast %454 : vector<8xf32> to vector<8x1xf32>
    %456 = tpu.reciprocal %455 {approx = true} : vector<8x1xf32> -> vector<8x1xf32>
    %457 = vector.broadcast %456 : vector<8x1xf32> to vector<8x8xf32>
    %458 = arith.mulf %453, %457 : vector<8x8xf32>
    %cst_186 = arith.constant dense<0.000000e+00> : vector<8x8xf32>
    %459 = tpu.matmul %458, %446, %cst_186 {dimension_numbers = #tpu.dot_dimension_numbers<[1], [0], [0], [1], [0, 0, 1, 1], [], []>} : vector<8x8xf32>, vector<8x8xf32>, vector<8x8xf32> -> vector<8x8xf32>
    %460 = vector.extract_strided_slice %411 {offsets = [0, 24], sizes = [8, 8], strides = [1, 1]} : vector<8x96xf32> to vector<8x8xf32>
    %461 = vector.extract_strided_slice %411 {offsets = [0, 56], sizes = [8, 8], strides = [1, 1]} : vector<8x96xf32> to vector<8x8xf32>
    %462 = vector.extract_strided_slice %411 {offsets = [0, 88], sizes = [8, 8], strides = [1, 1]} : vector<8x96xf32> to vector<8x8xf32>
    %cst_187 = arith.constant dense<0.000000e+00> : vector<8x8xf32>
    %463 = tpu.matmul %460, %461, %cst_187 {dimension_numbers = #tpu.dot_dimension_numbers<[1], [1], [0], [0], [0, 0, 1, 0], [], []>} : vector<8x8xf32>, vector<8x8xf32>, vector<8x8xf32> -> vector<8x8xf32>
    %464 = arith.addf %463, %120 : vector<8x8xf32>
    %cst_188 = arith.constant dense<0xFF800000> : vector<8xf32>
    %465 = vector.multi_reduction <maximumf>, %464, %cst_188 [1] : vector<8x8xf32> to vector<8xf32>
    %466 = vector.shape_cast %465 : vector<8xf32> to vector<8x1xf32>
    %467 = vector.broadcast %466 : vector<8x1xf32> to vector<8x8xf32>
    %468 = arith.subf %464, %467 : vector<8x8xf32>
    %469 = math.exp %468 : vector<8x8xf32>
    %cst_189 = arith.constant dense<0.000000e+00> : vector<8xf32>
    %470 = vector.multi_reduction <add>, %469, %cst_189 [1] : vector<8x8xf32> to vector<8xf32>
    %471 = vector.shape_cast %470 : vector<8xf32> to vector<8x1xf32>
    %472 = tpu.reciprocal %471 {approx = true} : vector<8x1xf32> -> vector<8x1xf32>
    %473 = vector.broadcast %472 : vector<8x1xf32> to vector<8x8xf32>
    %474 = arith.mulf %469, %473 : vector<8x8xf32>
    %cst_190 = arith.constant dense<0.000000e+00> : vector<8x8xf32>
    %475 = tpu.matmul %474, %462, %cst_190 {dimension_numbers = #tpu.dot_dimension_numbers<[1], [0], [0], [1], [0, 0, 1, 1], [], []>} : vector<8x8xf32>, vector<8x8xf32>, vector<8x8xf32> -> vector<8x8xf32>
    %476 = tpu.concatenate %427, %443, %459, %475 in 1 : vector<8x8xf32>, vector<8x8xf32>, vector<8x8xf32>, vector<8x8xf32> -> vector<8x32xf32>
    %477 = tpu.concatenate %410, %476 in 0 : vector<8x32xf32>, vector<8x32xf32> -> vector<16x32xf32>
    %c1_191 = arith.constant 1 : index
    %c0_192 = arith.constant 0 : index
    %c0_193 = arith.constant 0 : index
    %478 = vector.load %arg7[%c1_191, %c0_192, %c0_193] : memref<2x32x32xf32, #tpu.memory_space<vmem>>, vector<1x32x32xf32>
    %479 = vector.shape_cast %478 : vector<1x32x32xf32> to vector<32x32xf32>
    %cst_194 = arith.constant dense<0.000000e+00> : vector<16x32xf32>
    %480 = tpu.matmul %477, %479, %cst_194 {dimension_numbers = #tpu.dot_dimension_numbers<[1], [0], [0], [1], [0, 0, 1, 1], [], []>} : vector<16x32xf32>, vector<32x32xf32>, vector<16x32xf32> -> vector<16x32xf32>
    %c1_195 = arith.constant 1 : index
    %c0_196 = arith.constant 0 : index
    %c0_197 = arith.constant 0 : index
    %481 = vector.load %arg8[%c1_195, %c0_196, %c0_197] : memref<2x1x32xf32, #tpu.memory_space<vmem>>, vector<1x1x32xf32>
    %482 = vector.shape_cast %481 : vector<1x1x32xf32> to vector<1x32xf32>
    %483 = vector.broadcast %482 : vector<1x32xf32> to vector<16x32xf32>
    %484 = arith.addf %480, %483 : vector<16x32xf32>
    %485 = arith.addf %337, %484 : vector<16x32xf32>
    %c1_198 = arith.constant 1 : index
    %c0_199 = arith.constant 0 : index
    %c0_200 = arith.constant 0 : index
    %486 = vector.load %arg13[%c1_198, %c0_199, %c0_200] : memref<2x1x32xf32, #tpu.memory_space<vmem>>, vector<1x1x32xf32>
    %487 = vector.shape_cast %486 : vector<1x1x32xf32> to vector<1x32xf32>
    %c1_201 = arith.constant 1 : index
    %c0_202 = arith.constant 0 : index
    %c0_203 = arith.constant 0 : index
    %488 = vector.load %arg14[%c1_201, %c0_202, %c0_203] : memref<2x1x32xf32, #tpu.memory_space<vmem>>, vector<1x1x32xf32>
    %489 = vector.shape_cast %488 : vector<1x1x32xf32> to vector<1x32xf32>
    %cst_204 = arith.constant dense<0.000000e+00> : vector<16xf32>
    %490 = vector.multi_reduction <add>, %485, %cst_204 [1] : vector<16x32xf32> to vector<16xf32>
    %491 = vector.shape_cast %490 : vector<16xf32> to vector<16x1xf32>
    %cst_205 = arith.constant 3.200000e+01 : f32
    %492 = vector.broadcast %cst_205 : f32 to vector<16x1xf32>
    %493 = arith.divf %491, %492 : vector<16x1xf32>
    %494 = vector.broadcast %493 : vector<16x1xf32> to vector<16x32xf32>
    %495 = arith.subf %485, %494 : vector<16x32xf32>
    %496 = arith.mulf %495, %495 : vector<16x32xf32>
    %cst_206 = arith.constant dense<0.000000e+00> : vector<16xf32>
    %497 = vector.multi_reduction <add>, %496, %cst_206 [1] : vector<16x32xf32> to vector<16xf32>
    %498 = vector.shape_cast %497 : vector<16xf32> to vector<16x1xf32>
    %cst_207 = arith.constant 3.200000e+01 : f32
    %499 = vector.broadcast %cst_207 : f32 to vector<16x1xf32>
    %500 = arith.divf %498, %499 : vector<16x1xf32>
    %501 = vector.broadcast %493 : vector<16x1xf32> to vector<16x32xf32>
    %502 = arith.subf %485, %501 : vector<16x32xf32>
    %cst_208 = arith.constant 9.99999974E-6 : f32
    %503 = vector.broadcast %cst_208 : f32 to vector<16x1xf32>
    %504 = arith.addf %500, %503 : vector<16x1xf32>
    %505 = math.rsqrt %504 : vector<16x1xf32>
    %506 = vector.broadcast %505 : vector<16x1xf32> to vector<16x32xf32>
    %507 = arith.mulf %502, %506 : vector<16x32xf32>
    %508 = vector.broadcast %487 : vector<1x32xf32> to vector<16x32xf32>
    %509 = arith.mulf %507, %508 : vector<16x32xf32>
    %510 = vector.broadcast %489 : vector<1x32xf32> to vector<16x32xf32>
    %511 = arith.addf %509, %510 : vector<16x32xf32>
    %c1_209 = arith.constant 1 : index
    %c0_210 = arith.constant 0 : index
    %c0_211 = arith.constant 0 : index
    %512 = vector.load %arg9[%c1_209, %c0_210, %c0_211] : memref<2x32x64xf32, #tpu.memory_space<vmem>>, vector<1x32x64xf32>
    %513 = vector.shape_cast %512 : vector<1x32x64xf32> to vector<32x64xf32>
    %cst_212 = arith.constant dense<0.000000e+00> : vector<16x64xf32>
    %514 = tpu.matmul %511, %513, %cst_212 {dimension_numbers = #tpu.dot_dimension_numbers<[1], [0], [0], [1], [0, 0, 1, 1], [], []>} : vector<16x32xf32>, vector<32x64xf32>, vector<16x64xf32> -> vector<16x64xf32>
    %c1_213 = arith.constant 1 : index
    %c0_214 = arith.constant 0 : index
    %c0_215 = arith.constant 0 : index
    %515 = vector.load %arg10[%c1_213, %c0_214, %c0_215] : memref<2x1x64xf32, #tpu.memory_space<vmem>>, vector<1x1x64xf32>
    %516 = vector.shape_cast %515 : vector<1x1x64xf32> to vector<1x64xf32>
    %517 = vector.broadcast %516 : vector<1x64xf32> to vector<16x64xf32>
    %518 = arith.addf %514, %517 : vector<16x64xf32>
    %cst_216 = arith.constant 0.000000e+00 : f32
    %519 = vector.broadcast %cst_216 : f32 to vector<16x64xf32>
    %520 = arith.maximumf %518, %519 : vector<16x64xf32>
    %c1_217 = arith.constant 1 : index
    %c0_218 = arith.constant 0 : index
    %c0_219 = arith.constant 0 : index
    %521 = vector.load %arg11[%c1_217, %c0_218, %c0_219] : memref<2x64x32xf32, #tpu.memory_space<vmem>>, vector<1x64x32xf32>
    %522 = vector.shape_cast %521 : vector<1x64x32xf32> to vector<64x32xf32>
    %cst_220 = arith.constant dense<0.000000e+00> : vector<16x32xf32>
    %523 = tpu.matmul %520, %522, %cst_220 {dimension_numbers = #tpu.dot_dimension_numbers<[1], [0], [0], [1], [0, 0, 1, 1], [], []>} : vector<16x64xf32>, vector<64x32xf32>, vector<16x32xf32> -> vector<16x32xf32>
    %c1_221 = arith.constant 1 : index
    %c0_222 = arith.constant 0 : index
    %c0_223 = arith.constant 0 : index
    %524 = vector.load %arg12[%c1_221, %c0_222, %c0_223] : memref<2x1x32xf32, #tpu.memory_space<vmem>>, vector<1x1x32xf32>
    %525 = vector.shape_cast %524 : vector<1x1x32xf32> to vector<1x32xf32>
    %526 = vector.broadcast %525 : vector<1x32xf32> to vector<16x32xf32>
    %527 = arith.addf %523, %526 : vector<16x32xf32>
    %528 = arith.addf %511, %527 : vector<16x32xf32>
    %c1_224 = arith.constant 1 : index
    %c0_225 = arith.constant 0 : index
    %c0_226 = arith.constant 0 : index
    %529 = vector.load %arg15[%c1_224, %c0_225, %c0_226] : memref<2x1x32xf32, #tpu.memory_space<vmem>>, vector<1x1x32xf32>
    %530 = vector.shape_cast %529 : vector<1x1x32xf32> to vector<1x32xf32>
    %c1_227 = arith.constant 1 : index
    %c0_228 = arith.constant 0 : index
    %c0_229 = arith.constant 0 : index
    %531 = vector.load %arg16[%c1_227, %c0_228, %c0_229] : memref<2x1x32xf32, #tpu.memory_space<vmem>>, vector<1x1x32xf32>
    %532 = vector.shape_cast %531 : vector<1x1x32xf32> to vector<1x32xf32>
    %cst_230 = arith.constant dense<0.000000e+00> : vector<16xf32>
    %533 = vector.multi_reduction <add>, %528, %cst_230 [1] : vector<16x32xf32> to vector<16xf32>
    %534 = vector.shape_cast %533 : vector<16xf32> to vector<16x1xf32>
    %cst_231 = arith.constant 3.200000e+01 : f32
    %535 = vector.broadcast %cst_231 : f32 to vector<16x1xf32>
    %536 = arith.divf %534, %535 : vector<16x1xf32>
    %537 = vector.broadcast %536 : vector<16x1xf32> to vector<16x32xf32>
    %538 = arith.subf %528, %537 : vector<16x32xf32>
    %539 = arith.mulf %538, %538 : vector<16x32xf32>
    %cst_232 = arith.constant dense<0.000000e+00> : vector<16xf32>
    %540 = vector.multi_reduction <add>, %539, %cst_232 [1] : vector<16x32xf32> to vector<16xf32>
    %541 = vector.shape_cast %540 : vector<16xf32> to vector<16x1xf32>
    %cst_233 = arith.constant 3.200000e+01 : f32
    %542 = vector.broadcast %cst_233 : f32 to vector<16x1xf32>
    %543 = arith.divf %541, %542 : vector<16x1xf32>
    %544 = vector.broadcast %536 : vector<16x1xf32> to vector<16x32xf32>
    %545 = arith.subf %528, %544 : vector<16x32xf32>
    %cst_234 = arith.constant 9.99999974E-6 : f32
    %546 = vector.broadcast %cst_234 : f32 to vector<16x1xf32>
    %547 = arith.addf %543, %546 : vector<16x1xf32>
    %548 = math.rsqrt %547 : vector<16x1xf32>
    %549 = vector.broadcast %548 : vector<16x1xf32> to vector<16x32xf32>
    %550 = arith.mulf %545, %549 : vector<16x32xf32>
    %551 = vector.broadcast %530 : vector<1x32xf32> to vector<16x32xf32>
    %552 = arith.mulf %550, %551 : vector<16x32xf32>
    %553 = vector.broadcast %532 : vector<1x32xf32> to vector<16x32xf32>
    %554 = arith.addf %552, %553 : vector<16x32xf32>
    %c0_235 = arith.constant 0 : index
    %c0_236 = arith.constant 0 : index
    %555 = vector.load %arg17[%c0_235, %c0_236] : memref<32x32xf32, #tpu.memory_space<vmem>>, vector<32x32xf32>
    %cst_237 = arith.constant dense<0.000000e+00> : vector<16x32xf32>
    %556 = tpu.matmul %554, %555, %cst_237 {dimension_numbers = #tpu.dot_dimension_numbers<[1], [0], [0], [1], [0, 0, 1, 1], [], []>} : vector<16x32xf32>, vector<32x32xf32>, vector<16x32xf32> -> vector<16x32xf32>
    %c0_238 = arith.constant 0 : index
    %c0_239 = arith.constant 0 : index
    %557 = vector.load %arg18[%c0_238, %c0_239] : memref<1x32xf32, #tpu.memory_space<vmem>>, vector<1x32xf32>
    %558 = vector.broadcast %557 : vector<1x32xf32> to vector<16x32xf32>
    %559 = arith.addf %556, %558 : vector<16x32xf32>
    %cst_240 = arith.constant 0.000000e+00 : f32
    %560 = vector.broadcast %cst_240 : f32 to vector<16x32xf32>
    %561 = arith.maximumf %559, %560 : vector<16x32xf32>
    %c0_241 = arith.constant 0 : index
    %c0_242 = arith.constant 0 : index
    %562 = vector.load %arg19[%c0_241, %c0_242] : memref<32x128xf32, #tpu.memory_space<vmem>>, vector<32x128xf32>
    %cst_243 = arith.constant dense<0.000000e+00> : vector<16x128xf32>
    %563 = tpu.matmul %561, %562, %cst_243 {dimension_numbers = #tpu.dot_dimension_numbers<[1], [0], [0], [1], [0, 0, 1, 1], [], []>} : vector<16x32xf32>, vector<32x128xf32>, vector<16x128xf32> -> vector<16x128xf32>
    %c0_244 = arith.constant 0 : index
    %c0_245 = arith.constant 0 : index
    %564 = vector.load %arg20[%c0_244, %c0_245] : memref<1x128xf32, #tpu.memory_space<vmem>>, vector<1x128xf32>
    %565 = vector.broadcast %564 : vector<1x128xf32> to vector<16x128xf32>
    %566 = arith.addf %563, %565 : vector<16x128xf32>
    %567 = vector.extract_strided_slice %566 {offsets = [0, 0], sizes = [8, 128], strides = [1, 1]} : vector<16x128xf32> to vector<8x128xf32>
    %c0_246 = arith.constant 0 : index
    %c0_247 = arith.constant 0 : index
    %c0_248 = arith.constant 0 : index
    %568 = vector.load %arg21[%c0_246, %c0_247, %c0_248] : memref<2x8x128xf32, #tpu.memory_space<vmem>>, vector<1x8x128xf32>
    %569 = vector.shape_cast %568 : vector<1x8x128xf32> to vector<8x128xf32>
    %570 = vector.shape_cast %567 : vector<8x128xf32> to vector<1x8x128xf32>
    tpu.vector_store %arg21[%c0_246, %c0_247, %c0_248], %570 {strides = array<i32>} : memref<2x8x128xf32, #tpu.memory_space<vmem>>, vector<1x8x128xf32>,
    %571 = vector.extract_strided_slice %566 {offsets = [8, 0], sizes = [8, 128], strides = [1, 1]} : vector<16x128xf32> to vector<8x128xf32>
    %c1_249 = arith.constant 1 : index
    %c0_250 = arith.constant 0 : index
    %c0_251 = arith.constant 0 : index
    %572 = vector.load %arg21[%c1_249, %c0_250, %c0_251] : memref<2x8x128xf32, #tpu.memory_space<vmem>>, vector<1x8x128xf32>
    %573 = vector.shape_cast %572 : vector<1x8x128xf32> to vector<8x128xf32>
    %574 = vector.shape_cast %571 : vector<8x128xf32> to vector<1x8x128xf32>
    tpu.vector_store %arg21[%c1_249, %c0_250, %c0_251], %574 {strides = array<i32>} : memref<2x8x128xf32, #tpu.memory_space<vmem>>, vector<1x8x128xf32>,
    return
  }
  func.func @transform_0(%arg0: i32, %arg1: memref<16xi32, #tpu.memory_space<smem>>) -> (i32, i32, i32) {
    %c0_i32 = arith.constant 0 : i32
    %c0_i32_0 = arith.constant 0 : i32
    %c0_i32_1 = arith.constant 0 : i32
    %c0_i32_2 = arith.constant 0 : i32
    return %c0_i32, %c0_i32_0, %c0_i32_1 : i32, i32, i32
  }
  func.func @transform_1(%arg0: i32, %arg1: memref<16xi32, #tpu.memory_space<smem>>) -> (i32, i32) {
    %c0_i32 = arith.constant 0 : i32
    %c0_i32_0 = arith.constant 0 : i32
    %c0_i32_1 = arith.constant 0 : i32
    return %c0_i32, %c0_i32_0 : i32, i32
  }
  func.func @transform_2(%arg0: i32, %arg1: memref<16xi32, #tpu.memory_space<smem>>) -> (i32, i32) {
    %c0_i32 = arith.constant 0 : i32
    %c0_i32_0 = arith.constant 0 : i32
    %c0_i32_1 = arith.constant 0 : i32
    return %c0_i32, %c0_i32_0 : i32, i32
  }
  func.func @transform_3(%arg0: i32, %arg1: memref<16xi32, #tpu.memory_space<smem>>) -> (i32, i32, i32) {
    %c0_i32 = arith.constant 0 : i32
    %c0_i32_0 = arith.constant 0 : i32
    %c0_i32_1 = arith.constant 0 : i32
    %c0_i32_2 = arith.constant 0 : i32
    return %c0_i32, %c0_i32_0, %c0_i32_1 : i32, i32, i32
  }
  func.func @transform_4(%arg0: i32, %arg1: memref<16xi32, #tpu.memory_space<smem>>) -> (i32, i32, i32) {
    %c0_i32 = arith.constant 0 : i32
    %c0_i32_0 = arith.constant 0 : i32
    %c0_i32_1 = arith.constant 0 : i32
    %c0_i32_2 = arith.constant 0 : i32
    return %c0_i32, %c0_i32_0, %c0_i32_1 : i32, i32, i32
  }
  func.func @transform_5(%arg0: i32, %arg1: memref<16xi32, #tpu.memory_space<smem>>) -> (i32, i32, i32) {
    %c0_i32 = arith.constant 0 : i32
    %c0_i32_0 = arith.constant 0 : i32
    %c0_i32_1 = arith.constant 0 : i32
    %c0_i32_2 = arith.constant 0 : i32
    return %c0_i32, %c0_i32_0, %c0_i32_1 : i32, i32, i32
  }
  func.func @transform_6(%arg0: i32, %arg1: memref<16xi32, #tpu.memory_space<smem>>) -> (i32, i32, i32) {
    %c0_i32 = arith.constant 0 : i32
    %c0_i32_0 = arith.constant 0 : i32
    %c0_i32_1 = arith.constant 0 : i32
    %c0_i32_2 = arith.constant 0 : i32
    return %c0_i32, %c0_i32_0, %c0_i32_1 : i32, i32, i32
  }
  func.func @transform_7(%arg0: i32, %arg1: memref<16xi32, #tpu.memory_space<smem>>) -> (i32, i32, i32) {
    %c0_i32 = arith.constant 0 : i32
    %c0_i32_0 = arith.constant 0 : i32
    %c0_i32_1 = arith.constant 0 : i32
    %c0_i32_2 = arith.constant 0 : i32
    return %c0_i32, %c0_i32_0, %c0_i32_1 : i32, i32, i32
  }
  func.func @transform_8(%arg0: i32, %arg1: memref<16xi32, #tpu.memory_space<smem>>) -> (i32, i32, i32) {
    %c0_i32 = arith.constant 0 : i32
    %c0_i32_0 = arith.constant 0 : i32
    %c0_i32_1 = arith.constant 0 : i32
    %c0_i32_2 = arith.constant 0 : i32
    return %c0_i32, %c0_i32_0, %c0_i32_1 : i32, i32, i32
  }
  func.func @transform_9(%arg0: i32, %arg1: memref<16xi32, #tpu.memory_space<smem>>) -> (i32, i32, i32) {
    %c0_i32 = arith.constant 0 : i32
    %c0_i32_0 = arith.constant 0 : i32
    %c0_i32_1 = arith.constant 0 : i32
    %c0_i32_2 = arith.constant 0 : i32
    return %c0_i32, %c0_i32_0, %c0_i32_1 : i32, i32, i32
  }
  func.func @transform_10(%arg0: i32, %arg1: memref<16xi32, #tpu.memory_space<smem>>) -> (i32, i32, i32) {
    %c0_i32 = arith.constant 0 : i32
    %c0_i32_0 = arith.constant 0 : i32
    %c0_i32_1 = arith.constant 0 : i32
    %c0_i32_2 = arith.constant 0 : i32
    return %c0_i32, %c0_i32_0, %c0_i32_1 : i32, i32, i32
  }
  func.func @transform_11(%arg0: i32, %arg1: memref<16xi32, #tpu.memory_space<smem>>) -> (i32, i32, i32) {
    %c0_i32 = arith.constant 0 : i32
    %c0_i32_0 = arith.constant 0 : i32
    %c0_i32_1 = arith.constant 0 : i32
    %c0_i32_2 = arith.constant 0 : i32
    return %c0_i32, %c0_i32_0, %c0_i32_1 : i32, i32, i32
  }
  func.func @transform_12(%arg0: i32, %arg1: memref<16xi32, #tpu.memory_space<smem>>) -> (i32, i32, i32) {
    %c0_i32 = arith.constant 0 : i32
    %c0_i32_0 = arith.constant 0 : i32
    %c0_i32_1 = arith.constant 0 : i32
    %c0_i32_2 = arith.constant 0 : i32
    return %c0_i32, %c0_i32_0, %c0_i32_1 : i32, i32, i32
  }
  func.func @transform_13(%arg0: i32, %arg1: memref<16xi32, #tpu.memory_space<smem>>) -> (i32, i32, i32) {
    %c0_i32 = arith.constant 0 : i32
    %c0_i32_0 = arith.constant 0 : i32
    %c0_i32_1 = arith.constant 0 : i32
    %c0_i32_2 = arith.constant 0 : i32
    return %c0_i32, %c0_i32_0, %c0_i32_1 : i32, i32, i32
  }
  func.func @transform_14(%arg0: i32, %arg1: memref<16xi32, #tpu.memory_space<smem>>) -> (i32, i32, i32) {
    %c0_i32 = arith.constant 0 : i32
    %c0_i32_0 = arith.constant 0 : i32
    %c0_i32_1 = arith.constant 0 : i32
    %c0_i32_2 = arith.constant 0 : i32
    return %c0_i32, %c0_i32_0, %c0_i32_1 : i32, i32, i32
  }
  func.func @transform_15(%arg0: i32, %arg1: memref<16xi32, #tpu.memory_space<smem>>) -> (i32, i32) {
    %c0_i32 = arith.constant 0 : i32
    %c0_i32_0 = arith.constant 0 : i32
    %c0_i32_1 = arith.constant 0 : i32
    return %c0_i32, %c0_i32_0 : i32, i32
  }
  func.func @transform_16(%arg0: i32, %arg1: memref<16xi32, #tpu.memory_space<smem>>) -> (i32, i32) {
    %c0_i32 = arith.constant 0 : i32
    %c0_i32_0 = arith.constant 0 : i32
    %c0_i32_1 = arith.constant 0 : i32
    return %c0_i32, %c0_i32_0 : i32, i32
  }
  func.func @transform_17(%arg0: i32, %arg1: memref<16xi32, #tpu.memory_space<smem>>) -> (i32, i32) {
    %c0_i32 = arith.constant 0 : i32
    %c0_i32_0 = arith.constant 0 : i32
    %c0_i32_1 = arith.constant 0 : i32
    return %c0_i32, %c0_i32_0 : i32, i32
  }
  func.func @transform_18(%arg0: i32, %arg1: memref<16xi32, #tpu.memory_space<smem>>) -> (i32, i32) {
    %c0_i32 = arith.constant 0 : i32
    %c0_i32_0 = arith.constant 0 : i32
    %c0_i32_1 = arith.constant 0 : i32
    return %c0_i32, %c0_i32_0 : i32, i32
  }
  func.func @transform_19(%arg0: i32, %arg1: memref<16xi32, #tpu.memory_space<smem>>) -> (i32, i32, i32) {
    %c0_i32 = arith.constant 0 : i32
    %c0_i32_0 = arith.constant 0 : i32
    %c0_i32_1 = arith.constant 0 : i32
    %c0_i32_2 = arith.constant 0 : i32
    return %c0_i32, %c0_i32_0, %c0_i32_1 : i32, i32, i32
  }
}

</mosaic_0001>

<bundles_post_ra>
// kernel: forward.1
= control target key start
LH: loop header
LB: loop body
LE: loop exit
PB: predicated region body
PF: predicated region fallthrough
CT: control target
= control target key end

     0   :  { %s5792_s0 = inlined_call_operand.vmem [shape: s32[16], index: 0, kind: input, shape index: {}]   ;;  %s5793_s1 = inlined_call_operand.vmem [shape: f32[50,1,32], index: 1, kind: input, shape index: {}]   ;;  %s5794_s2 = inlined_call_operand.vmem [shape: f32[8,32], index: 2, kind: input, shape index: {}]   ;;  %s5795_s3 = inlined_call_operand.vmem [shape: f32[2,8], index: 3, kind: input, shape index: {}]   ;;  %s5796_s4 = inlined_call_operand.vmem [shape: f32[2,32,96], index: 4, kind: input, shape index: {}]   ;;  %s5797_s5 = inlined_call_operand.vmem [shape: f32[2,1,96], index: 5, kind: input, shape index: {}]   ;;  %s5798_s6 = inlined_call_operand.vmem [shape: f32[2,32,32], index: 6, kind: input, shape index: {}]   ;;  %s5799_s7 = inlined_call_operand.vmem [shape: f32[2,1,32], index: 7, kind: input, shape index: {}]   ;;  %s5800_s8 = inlined_call_operand.vmem [shape: f32[2,32,64], index: 8, kind: input, shape index: {}]   ;;  %s5801_s9 = inlined_call_operand.vmem [shape: f32[2,1,64], index: 9, kind: input, shape index: {}]   ;;  %s5802_s10 = inlined_call_operand.vmem [shape: f32[2,64,32], index: 10, kind: input, shape index: {}]   ;;  %s5803_s11 = inlined_call_operand.vmem [shape: f32[2,1,32], index: 11, kind: input, shape index: {}]   ;;  %s5804_s12 = inlined_call_operand.vmem [shape: f32[2,1,32], index: 12, kind: input, shape index: {}]   ;;  %s5805_s13 = inlined_call_operand.vmem [shape: f32[2,1,32], index: 13, kind: input, shape index: {}]   ;;  %s5806_s14 = inlined_call_operand.vmem [shape: f32[2,1,32], index: 14, kind: input, shape index: {}]   ;;  %s5807_s15 = inlined_call_operand.vmem [shape: f32[2,1,32], index: 15, kind: input, shape index: {}]   ;;  %s5808_s16 = inlined_call_operand.vmem [shape: f32[32,32], index: 16, kind: input, shape index: {}]   ;;  %s5809_s17 = inlined_call_operand.vmem [shape: f32[1,32], index: 17, kind: input, shape index: {}]   ;;  %s5810_s18 = inlined_call_operand.hbm [shape: f32[32,128], index: 18, kind: input, shape index: {}]   ;;  %s5811_s19 = inlined_call_operand.hbm [shape: f32[1,128], index: 19, kind: input, shape index: {}]   ;;  %s5812_s20 = inlined_call_operand.vmem [shape: f32[2,8,128], index: 20, kind: output, shape index: {}]  }
   0x1   :  { %5827 = sst [smem:[#allocation12_spill]] %s5792_s0 }
   0x2   :  { %5828 = sst [smem:[#allocation13_spill]] %s5793_s1  ;;  %s5841_s23 = sld [smem:[#allocation12_spill]] }
   0x3   :  { %5829 = sst [smem:[#allocation14_spill]] %s5794_s2 }
   0x4   :  { %5830 = sst [smem:[#allocation15_spill]] %s5795_s3 }
   0x5   :  { %5831 = sst [smem:[#allocation16_spill]] %s5796_s4 }
   0x6   :  { %5832 = sst [smem:[#allocation17_spill]] %s5801_s9 }
   0x7   :  { %5833 = sst [smem:[#allocation18_spill]] %s5803_s11 }
   0x8   :  { %5834 = sst [smem:[#allocation19_spill]] %s5804_s12 }
   0x9   :  { %5835 = sst [smem:[#allocation20_spill]] %s5805_s13 }
   0xa   :  { %5836 = sst [smem:[#allocation21_spill]] %s5806_s14  ;;  %s25_s14 = sshll.u32 %s5841_s23, 4  ;;  %s26_s14 = int_to_ptr.vmem [resolvable:$true] %s25_s14 }
   0xb   :  { %5837 = sst [smem:[#allocation22_spill]] %s5807_s15  ;;  %s4847_s24 = scalar_lea.vmem %s26_s14, 16 }
   0xc   :  { %5838 = sst [smem:[#allocation23_spill]] %s5808_s16  ;;  %p4848_p0 = scmp.ne.s32.totalorder %s26_s14, %s4847_s24 }
   0xd   :  { %5839 = sst [smem:[#allocation24_spill]] %s5809_s17  ;;  %p4852_p1 = scmp.lt.s32.totalorder %s26_s14, %s26_s14 }
   0xe   :  { %5840 = sst [smem:[#allocation25_spill]] %s5812_s20  ;;  %p4853_p2 = scmp.lt.s32.totalorder %s4847_s24, %s4847_s24 }
  0x10   :  { %p4854_p3 = por %p4853_p2, %p4852_p1 }
  0x12   :  { %p4855_p4 = pnand %p4854_p3, %p4848_p0 }
  0x14   :  { %4858 = shalt.err (!%p4855_p4)  }
  0x15   :  { %s4909_s2 = smov [#allocation4]  }
  0x16   :  { %28 = dma.vmem_to_smem %s26_s14, 16, %s4909_s2, [#allocation3] }
  0x17   :  { %4903 = dma.done.wait [#allocation3], 16 }
  0x18   :  { %4904 = vsyncadd [#allocation3], 4294967280 }
  0x19   :  { %30 = sfence }
  0x1a   :  { %31 = vsyncpa [#allocation6], 0 }
  0x1b   :  { %32 = vsyncpa [#allocation8], 0  ;;  %s4910_s25 = smov [#allocation5]   ;;  %s4859_s28 = scalar_lea.hbm %s5810_s18, 512 }
  0x1c   :  { %s72_s3 = sshll.u32 %s4910_s25, 4  ;;  %p4860_p5 = scmp.ne.s32.totalorder %s5810_s18, %s4859_s28  ;;  %s73_s3 = int_to_ptr.vmem [resolvable:$true] %s72_s3 }
  0x1d   :  { %p4863_p6 = scmp.lt.u32.totalorder %s4859_s28, %s5810_s18 }
  0x1f   :  { %p4865_p7 = pnand %p4863_p6, %p4860_p5 }
  0x21   :  { %4868 = shalt.err (!%p4865_p7)
}
  0x22   :  { %s4869_s14 = scalar_lea.vmem %s73_s3, 512  ;;  %p4874_p9 = scmp.lt.s32.totalorder %s73_s3, %s73_s3 }
  0x23   :  { %p4870_p8 = scmp.ne.s32.totalorder %s73_s3, %s4869_s14  ;;  %p4875_p10 = scmp.lt.s32.totalorder %s4869_s14, %s4869_s14 }
  0x25   :  { %p4876_p11 = por %p4875_p10, %p4874_p9 }
  0x27   :  { %p4877_p12 = pnand %p4876_p11, %p4870_p8 }
  0x29   :  { %4880 = shalt.err (!%p4877_p12)
}
  0x2a   :  { %s4911_s21 = smov 128   ;;  %s5816_s1 = smov 8  }
  0x2b   :  { %78 = dma.hbm_to_vmem [thread:$0]  %s5810_s18, 512, %s73_s3, [#allocation6], %s4911_s21, %s4911_s21, %s5816_s1  }
  0x2c   :  { %s4913_s24 = smov [#allocation7]   ;;  %s4881_s27 = scalar_lea.hbm %s5811_s19, 16 }
  0x2d   :  { %s85_s2 = sshll.u32 %s4913_s24, 4  ;;  %p4882_p13 = scmp.ne.s32.totalorder %s5811_s19, %s4881_s27  ;;  %s86_s2 = int_to_ptr.vmem [resolvable:$true] %s85_s2 }
  0x2e   :  { %p4885_p0 = scmp.lt.u32.totalorder %s4881_s27, %s5811_s19 }
  0x30   :  { %p4887_p1 = pnand %p4885_p0, %p4882_p13 }
  0x32   :  { %4890 = shalt.err (!%p4887_p1)
}
  0x33   :  { %s4891_s0 = scalar_lea.vmem %s86_s2, 16  ;;  %s4895_s18 = scalar_lea.vmem %s86_s2, 32 }
  0x34   :  { %p4892_p2 = scmp.ne.s32.totalorder %s86_s2, %s4891_s0  ;;  %p4896_p3 = scmp.lt.s32.totalorder %s86_s2, %s86_s2 }
  0x35   :  { %p4897_p4 = scmp.lt.s32.totalorder %s4895_s18, %s4891_s0 }
  0x37   :  { %p4898_p5 = por %p4897_p4, %p4896_p3 }
  0x39   :  { %p4899_p6 = pnand %p4898_p5, %p4892_p2 }
  0x3b   :  { %4902 = shalt.err (!%p4899_p6)
}
  0x3c   :  { %88 = dma.hbm_to_vmem [thread:$0]  %s5811_s19, 16, %s86_s2, [#allocation8]  }
  0x3d   :  { %4905 = dma.done.wait [#allocation6], 512  }
  0x3e   :  { %4906 = vsyncadd [#allocation6], 4294966784 }
  0x3f   :  { %4907 = dma.done.wait [#allocation8], 16  }
  0x40   :  { %4908 = vsyncadd [#allocation8], 4294967280  ;;  %v109_v0 = vlaneseq  ;;  %s96_s21 = sld [smem:[#allocation4]]  ;;  %s5063_s22 = sld [smem:[#allocation4 + $0x1]]  ;;  %v4914_v1 = vmov 1966171168  }
  0x41   :  { %v107_v2 = vunpack.c.l.s4 %v4914_v1  ;;  %s5067_s23 = sld [smem:[#allocation4 + $0x2]]  ;;  %s5069_s24 = sld [smem:[#allocation4 + $0x3]]  ;;  %vm100_vm0 = vcmask 253952   ;;  %vm256_vm1 = vcmask 261120   ;;  %v4915_v60 = vmov 0.0  }
  0x42   :  { %v5065_v3 = vshrl.u32 %v109_v0, 7  ;;  %s5071_s25 = sld [smem:[#allocation4 + $0x4]]  ;;  %s5073_s19 = sld [smem:[#allocation4 + $0x5]]  ;;  %4375 = vmatprep.subr.mxu1 %v4915_v60  ;;  %vm4916_vm2 = vmmov 0   ;;  %v4117_v61 = vld [vmem:[%s5797_s5] ss:$0 sm:$0xff] }
  0x43   :  { %v108_v4 = vunpack.c.0.s8 %v107_v2  ;;  %s5075_s2 = sld [smem:[#allocation4 + $0x6]]  ;;  %s5077_s26 = sld [smem:[#allocation4 + $0x7]]  ;;  %4377 = vmatprep.mubr.msk.f32.mxu1 %vm4916_vm2, %v4915_v60  ;;  %vm341_vm3 = vcmask 64512   ;;  %vm1011_vm4 = vcmask 130048   ;;  %vm1013_vm5 = vcmask 195584  }
  0x44   :  { %s5080_s27 = sld [smem:[#allocation4 + $0x8]]  ;;  %s5082_s28 = sld [smem:[#allocation4 + $0x9]]  ;;  %vm1937_vm6 = vcmask 523264  }
  0x45   :  { %v111_v5 = vsub.s32 %v108_v4, %v5065_v3  ;;  %s5084_s4 = sld [smem:[#allocation4 + $0xa]]  ;;  %s5086_s29 = sld [smem:[#allocation4 + $0xb]] }
  0x46   :  { %s5842_s18 = sld [smem:[#allocation16_spill]]  ;;  %s5843_s15 = sld [smem:[#allocation13_spill]] }
  0x47   :  { %s5844_s12 = sld [smem:[#allocation14_spill]]  ;;  %s5155_s20 = sld [smem:[#allocation4 + $0xe]] }
  0x48   :  { %s4928_s9 = smov 16  }
  0x4c   :  { %v245_v6 = vld [vmem:[%s5842_s18] sm:$0xff]  ;;  %v246_v7 = vld [vmem:[%s5842_s18 + $0x8] sm:$0xff]  ;;  %v247_v8 = vld [vmem:[%s5842_s18 + $0x10] sm:$0xff]  ;;  %s97_s11 = scalar_lea.vmem %s5843_s15, %s96_s21  ;;  %s103_s1 = scalar_lea.vmem %s5843_s15, %s5063_s22 }
  0x4d   :  { %v4650_v9 = vpack.c.bf16 %v246_v7, %v245_v6  ;;  %v248_v10 = vld [vmem:[%s5842_s18 + $0x18] sm:$0xff]  ;;  %v95_v11 = vld [vmem:[%s5844_s12] sm:$0xff]  ;;  %s132_s17 = scalar_lea.vmem %s5843_s15, %s5067_s23  ;;  %s139_s21 = scalar_lea.vmem %s5843_s15, %s5069_s24 }
  0x4e   :  { %v98_v12 = vld [vmem:[%s97_s11] sm:$0x1]  ;;  %v4654_v13 = vpack.c.bf16 %v248_v10, %v247_v8  ;;  %v112_v15 = vrot.slane %v95_v11, %v111_v5  ;;  %s146_s30 = scalar_lea.vmem %s5843_s15, %s5071_s25  ;;  %v148_v16 = vcombine.high %v95_v11, %v95_v11  ;;  %s167_s23 = scalar_lea.vmem %s5843_s15, %s5073_s19 }
  0x4f   :  { %v99_v14 = vadd.f32 %v98_v12, %v95_v11  ;;  %4651 = vmatprep.subr.bf16.mxu0 %v4650_v9  ;;  %s181_s14 = scalar_lea.vmem %s5843_s15, %s5075_s2  ;;  %v104_v17 = vld [vmem:[%s103_s1] sm:$0x1]  ;;  %s195_s16 = scalar_lea.vmem %s5843_s15, %s5080_s27 }
  0x50   :  { %4653 = vmatpush3.bf16.msra.mxu0 %v4650_v9  ;;  %v113_v18 = vcombine.high %v112_v15, %v112_v15  ;;  %v120_v19 = vrot.slane %v112_v15, %v111_v5  ;;  %v133_v20 = vld [vmem:[%s132_s17] sm:$0x1]  ;;  %v155_v21 = vrot.slane %v148_v16, %v111_v5  ;;  %s200_s12 = scalar_lea.vmem %s5843_s15, %s5082_s28  ;;  %s205_s1 = scalar_lea.vmem %s5843_s15, %s5084_s4 }
  0x51   :  { %101 = vst.msk [vmem:[#allocation2] sm:$0x1] %vm100_vm0, %v99_v14  ;;  %4655 = vmatprep.subr.bf16.mxu0 %v4654_v13  ;;  %v140_v22 = vld [vmem:[%s139_s21] sm:$0x1]  ;;  %s210_s17 = scalar_lea.vmem %s5843_s15, %s5086_s29  ;;  %s188_s21 = scalar_lea.vmem %s5843_s15, %s5077_s26 }
  0x52   :  { %v147_v23 = vld [vmem:[%s146_s30] sm:$0x1]  ;;  %v127_v25 = vrot.slane %v113_v18, %v111_v5  ;;  %v134_v26 = vcombine.high %v120_v19, %v120_v19  ;;  %v162_v27 = vrot.slane %v155_v21, %v111_v5  ;;  %v169_v28 = vcombine.high %v155_v21, %v155_v21  ;;  %s5151_s30 = sld [smem:[#allocation4 + $0xc]]  ;;  %s5153_s4 = sld [smem:[#allocation4 + $0xd]] }
  0x53   :  { %v196_v24 = vld [vmem:[%s195_s16] sm:$0x1]  ;;  %s5167_s16 = sld [smem:[#allocation4 + $0xf]]  ;;  %s225_s22 = scalar_lea.vmem %s5843_s15, %s5155_s20  ;;  %v239_v18 = vsub.s32 0, %v5065_v3 }
  0x54   :  { %v201_v29 = vld [vmem:[%s200_s12] sm:$0x1]  ;;  %v197_v31 = vadd.f32 %v196_v24, %v95_v11  ;;  %4657 = vmatpush3.bf16.msra.mxu0 %v4654_v13  ;;  %v129_v33 = vadd.f32 %v127_v25, %v104_v17  ;;  %v136_v34 = vadd.f32 %v134_v26, %v133_v20  ;;  %v141_v35 = vcombine.high %v127_v25, %v127_v25  ;;  %s4917_s27 = smov 120   ;;  %s4918_s28 = smov 96  }
  0x55   :  { %v206_v30 = vld [vmem:[%s205_s1] sm:$0x1]  ;;  %v164_v36 = vadd.f32 %v162_v27, %v147_v23  ;;  %v176_v39 = vrot.slane %v169_v28, %v111_v5  ;;  %v183_v40 = vcombine.high %v162_v27, %v162_v27  ;;  %v202_v41 = vadd.f32 %v201_v29, %v127_v25  ;;  %4385 = vmatprep.subr.mxu0 %v4915_v60  ;;  %s4922_s20 = smov 112   ;;  %s4923_s29 = smov 104  }
  0x56   :  { %v211_v32 = vld [vmem:[%s210_s17] sm:$0x1]  ;;  %198 = vst.msk [vmem:[#allocation2 + $0x8] sm:$0x1] %vm100_vm0, %v197_v31  ;;  %v207_v42 = vadd.f32 %v206_v30, %v134_v26  ;;  %130 = vst.msk [vmem:[#allocation2 + $0x1] sm:$0x1] %vm100_vm0, %v129_v33  ;;  %v143_v43 = vadd.f32 %v141_v35, %v140_v22 }
  0x57   :  { %v168_v37 = vld [vmem:[%s167_s23] sm:$0x1]  ;;  %137 = vst.msk [vmem:[#allocation2 + $0x2] sm:$0x1] %vm100_vm0, %v136_v34  ;;  %165 = vst.msk [vmem:[#allocation2 + $0x4] sm:$0x1] %vm100_vm0, %v164_v36  ;;  %v212_v45 = vadd.f32 %v211_v32, %v141_v35  ;;  %v190_v48 = vcombine.high %v176_v39, %v176_v39 }
  0x58   :  { %v182_v38 = vld [vmem:[%s181_s14] sm:$0x1]  ;;  %v178_v46 = vadd.f32 %v176_v39, %v168_v37  ;;  %203 = vst.msk [vmem:[#allocation2 + $0x9] sm:$0x1] %vm100_vm0, %v202_v41  ;;  %208 = vst.msk [vmem:[#allocation2 + $0xa] sm:$0x1] %vm100_vm0, %v207_v42  ;;  %s215_s23 = scalar_lea.vmem %s5843_s15, %s5151_s30  ;;  %s220_s13 = scalar_lea.vmem %s5843_s15, %s5153_s4 }
  0x59   :  { %v189_v44 = vld [vmem:[%s188_s21] sm:$0x1]  ;;  %v185_v47 = vadd.f32 %v183_v40, %v182_v38  ;;  %144 = vst.msk [vmem:[#allocation2 + $0x3] sm:$0x1] %vm100_vm0, %v143_v43  ;;  %213 = vst.msk [vmem:[#allocation2 + $0xb] sm:$0x1] %vm100_vm0, %v212_v45  ;;  %s230_s3 = scalar_lea.vmem %s5843_s15, %s5167_s16 }
  0x5a   :  { %179 = vst.msk [vmem:[#allocation2 + $0x5] sm:$0x1] %vm100_vm0, %v178_v46  ;;  %v192_v49 = vadd.f32 %v190_v48, %v189_v44  ;;  %v216_v50 = vld [vmem:[%s215_s23] sm:$0x1]  ;;  %s4919_s21 = smov 80   ;;  %s4920_s30 = smov 88  }
  0x5b   :  { %186 = vst.msk [vmem:[#allocation2 + $0x6] sm:$0x1] %vm100_vm0, %v185_v47  ;;  %v217_v51 = vadd.f32 %v216_v50, %v162_v27  ;;  %v221_v52 = vld [vmem:[%s220_s13] sm:$0x1]  ;;  %s4921_s4 = smov 72   ;;  %s4924_s24 = smov 56  }
  0x5c   :  { %v226_v53 = vld [vmem:[%s225_s22] sm:$0x1]  ;;  %193 = vst.msk [vmem:[#allocation2 + $0x7] sm:$0x1] %vm100_vm0, %v192_v49  ;;  %v222_v54 = vadd.f32 %v221_v52, %v176_v39  ;;  %s4925_s26 = smov 64   ;;  %s5845_s19 = sld [smem:[#allocation15_spill]] }
  0x5d   :  { %v227_v55 = vadd.f32 %v226_v53, %v183_v40  ;;  %v231_v56 = vld [vmem:[%s230_s3] sm:$0x1]  ;;  %218 = vst.msk [vmem:[#allocation2 + $0xc] sm:$0x1] %vm100_vm0, %v217_v51  ;;  %v243_v32 = vsub.s32 1, %v5065_v3  ;;  %s4926_s2 = smov 40  }
  0x5e   :  { %v232_v57 = vadd.f32 %v231_v56, %v190_v48  ;;  %223 = vst.msk [vmem:[#allocation2 + $0xd] sm:$0x1] %vm100_vm0, %v222_v54  ;;  %s4927_s23 = smov 48   ;;  %s5846_s14 = smov 8  }
  0x5f   :  { %228 = vst.msk [vmem:[#allocation2 + $0xe] sm:$0x1] %vm100_vm0, %v227_v55  ;;  %s5825_s13 = smov 24   ;;  %s5848_s22 = sld [smem:[#allocation20_spill]] }
  0x60   :  { %233 = vst.msk [vmem:[#allocation2 + $0xf] sm:$0x1] %vm100_vm0, %v232_v57  ;;  %s5849_s16 = sld [smem:[#allocation17_spill]]  ;;  %s5850_s1 = sld [smem:[#allocation18_spill]] }
  0x61   :  { %s5852_s17 = sld [smem:[#allocation22_spill]] }
  0x62   :  { %v236_v19 = vld [vmem:[%s5845_s19] sm:$0x3]  ;;  %s5847_s19 = sld [smem:[#allocation19_spill]] }
  0x63   :  { %v5200_v58 = vld [vmem:[#allocation2] sm:$0xff]  ;;  %v5297_v20 = vrot.slane %v236_v19, %v239_v18  ;;  %v5307_v37 = vrot.slane %v236_v19, %v243_v32 }
  0x64   :  { %4372 = vmatprep.mubr.msk.f32.mxu0 %vm256_vm1, %v5200_v58 }
  0x67   :  { %v5204_v59 = vld [vmem:[#allocation2 + $0x8] sm:$0xff] }
  0x68   :  { %4373 = vmatmul.mubr.msk.f32.vlgmr.msra.gmra.mrb[0].mxu0 %vm256_vm1, %v5204_v59 }
  0x69   :  { %4387 = vmatprep.mubr.msk.f32.mxu0 %vm4916_vm2, %v4915_v60 }
 0x13b   :  { %v4374_v62 = vpop.f32.mrb[0].mxu0 }
 0x13c   :  { %v329_v63 = vpop.f32.mrb[1].mxu0  ;;  %v5231_v1 = vadd.f32 %v4374_v62, %v4117_v61 }
 0x13d   :  { %v5217_v0 = vadd.f32 %v4117_v61, %v329_v63 }
 0x13f   :  { %503 = vrot.lane.b32.xlu1 %v5217_v0, %s4917_s27  ;;  %339 = vrot.lane.b32.xlu0 %v5217_v0, %s4918_s28 }
 0x143   :  { %670 = vrot.lane.b32.xlu1 %v5217_v0, %s4919_s21  ;;  %505 = vrot.lane.b32.xlu0 %v5217_v0, %s4920_s30 }
 0x147   :  { %835 = vrot.lane.b32.xlu1 %v5217_v0, %s4921_s4  ;;  %668 = vrot.lane.b32.xlu0 %v5217_v0, %s4922_s20 }
 0x14b   :  { %1016 = vrot.lane.b32.xlu1 %v5231_v1, %s4918_s28  ;;  %833 = vrot.lane.b32.xlu0 %v5217_v0, %s4923_s29 }
 0x14f   :  { %1179 = vrot.lane.b32.xlu1 %v5231_v1, %s4917_s27  ;;  %1181 = vrot.lane.b32.xlu0 %v5231_v1, %s4920_s30 }
 0x153   :  { %1344 = vrot.lane.b32.xlu1 %v5231_v1, %s4922_s20  ;;  %1346 = vrot.lane.b32.xlu0 %v5231_v1, %s4919_s21 }
 0x157   :  { %1509 = vrot.lane.b32.xlu1 %v5231_v1, %s4923_s29  ;;  %1511 = vrot.lane.b32.xlu0 %v5231_v1, %s4921_s4 }
 0x15b   :  { %592 = vrot.lane.b32.xlu1 %v5217_v0, %s4924_s24  ;;  %427 = vrot.lane.b32.xlu0 %v5217_v0, %s4925_s26 }
 0x1b1   :  { %v504_v2 = vpop.permute.xlu1 %503  ;;  %v340_v4 = vpop.permute.xlu0 %339 }
 0x1b2   :  { %4376 = vmatpush3.xpose.msk.msra.mxu1 %vm341_vm3, %v340_v4 }
 0x1b3   :  { %4380 = vmatprep.subr.mxu1 %v4915_v60 }
 0x1b5   :  { %v671_v5 = vpop.permute.xlu1 %670  ;;  %4378 = vmatmul.mubr.msk.f32.vlgmr.msra.gmra.mrb[0].mxu1 %vm341_vm3, %v5217_v0  ;;  %v506_v6 = vpop.permute.xlu0 %505 }
 0x1b6   :  { %4386 = vmatpush3.xpose.msk.msra.mxu0 %vm341_vm3, %v506_v6  ;;  %4382 = vmatprep.mubr.msk.f32.mxu1 %vm4916_vm2, %v4915_v60 }
 0x1b7   :  { %4395 = vmatprep.subr.mxu0 %v4915_v60 }
 0x1b9   :  { %v836_v7 = vpop.permute.xlu1 %835  ;;  %4388 = vmatmul.mubr.msk.f32.vlgmr.msra.gmra.mrb[2].mxu0 %vm341_vm3, %v504_v2  ;;  %v669_v8 = vpop.permute.xlu0 %668 }
 0x1ba   :  { %4396 = vmatpush3.xpose.msk.msra.mxu0 %vm341_vm3, %v671_v5  ;;  %4397 = vmatprep.mubr.msk.f32.mxu0 %vm4916_vm2, %v4915_v60 }
 0x1bb   :  { %4405 = vmatprep.subr.mxu0 %v4915_v60 }
 0x1bd   :  { %4398 = vmatmul.mubr.msk.f32.vlgmr.msra.gmra.mrb[4].mxu0 %vm341_vm3, %v669_v8  ;;  %v834_v9 = vpop.permute.xlu0 %833  ;;  %v1017_v10 = vpop.permute.xlu1 %1016 }
 0x1be   :  { %4406 = vmatpush3.xpose.msk.msra.mxu0 %vm341_vm3, %v836_v7  ;;  %4407 = vmatprep.mubr.msk.f32.mxu0 %vm4916_vm2, %v4915_v60 }
 0x1bf   :  { %4415 = vmatprep.subr.mxu0 %v4915_v60 }
 0x1c1   :  { %4408 = vmatmul.mubr.msk.f32.vlgmr.msra.gmra.mrb[6].mxu0 %vm341_vm3, %v834_v9  ;;  %v1182_v11 = vpop.permute.xlu0 %1181  ;;  %v1180_v12 = vpop.permute.xlu1 %1179 }
 0x1c2   :  { %4416 = vmatpush3.xpose.msk.msra.mxu0 %vm341_vm3, %v1017_v10  ;;  %4417 = vmatprep.mubr.msk.f32.mxu0 %vm4916_vm2, %v4915_v60 }
 0x1c3   :  { %4425 = vmatprep.subr.mxu0 %v4915_v60 }
 0x1c5   :  { %4418 = vmatmul.mubr.msk.f32.vlgmr.msra.gmra.mrb[8].mxu0 %vm341_vm3, %v5231_v1  ;;  %v1347_v13 = vpop.permute.xlu0 %1346  ;;  %v1345_v15 = vpop.permute.xlu1 %1344 }
 0x1c6   :  { %4426 = vmatpush3.xpose.msk.msra.mxu0 %vm341_vm3, %v1182_v11  ;;  %4427 = vmatprep.mubr.msk.f32.mxu0 %vm4916_vm2, %v4915_v60 }
 0x1c7   :  { %4435 = vmatprep.subr.mxu0 %v4915_v60 }
 0x1c9   :  { %4428 = vmatmul.mubr.msk.f32.vlgmr.msra.gmra.mrb[10].mxu0 %vm341_vm3, %v1180_v12  ;;  %v1512_v14 = vpop.permute.xlu0 %1511  ;;  %v1510_v17 = vpop.permute.xlu1 %1509 }
 0x1ca   :  { %4436 = vmatpush3.xpose.msk.msra.mxu0 %vm341_vm3, %v1347_v13  ;;  %4437 = vmatprep.mubr.msk.f32.mxu0 %vm4916_vm2, %v4915_v60 }
 0x1cb   :  { %4445 = vmatprep.subr.mxu0 %v4915_v60 }
 0x1cd   :  { %4438 = vmatmul.mubr.msk.f32.vlgmr.msra.gmra.mrb[12].mxu0 %vm341_vm3, %v1345_v15  ;;  %v428_v16 = vpop.permute.xlu0 %427  ;;  %v5322_v54 = vpop.permute.xlu1 %592 }
 0x1ce   :  { %4381 = vmatpush3.msra.mxu1 %v428_v16  ;;  %4446 = vmatpush3.xpose.msk.msra.mxu0 %vm341_vm3, %v1512_v14 }
 0x1cf   :  { %4447 = vmatprep.mubr.msk.f32.mxu0 %vm4916_vm2, %v4915_v60  ;;  %4390 = vmatprep.subr.mxu1 %v4915_v60 }
 0x1d1   :  { %4448 = vmatmul.mubr.msk.f32.vlgmr.msra.gmra.mrb[14].mxu0 %vm341_vm3, %v1510_v17 }
 0x288   :  { %v412_v21 = vpop.f32.mrb[0].mxu1 }
 0x289   :  { %v413_v22 = vadd.f32 %v412_v21, %v5297_v20  ;;  %v4379_v23 = vpop.f32.mrb[1].mxu1 }
 0x28b   :  { %v416_v24 = vsel %vm341_vm3, %v413_v22, -inf }
 0x28c   :  { %417 = vmax.xlane.f32.xlu0 %v416_v24  ;;  %v577_v25 = vpop.f32.mrb[2].mxu0 }
 0x28d   :  { %v578_v26 = vadd.f32 %v577_v25, %v5297_v20  ;;  %v4389_v27 = vpop.f32.mrb[3].mxu0 }
 0x28f   :  { %v581_v28 = vsel %vm341_vm3, %v578_v26, -inf }
 0x290   :  { %582 = vmax.xlane.f32.xlu1 %v581_v28  ;;  %v742_v29 = vpop.f32.mrb[4].mxu0 }
 0x291   :  { %v743_v30 = vadd.f32 %v742_v29, %v5297_v20  ;;  %v4399_v31 = vpop.f32.mrb[5].mxu0 }
 0x293   :  { %v746_v33 = vsel %vm341_vm3, %v743_v30, -inf }
 0x294   :  { %747 = vmax.xlane.f32.xlu0 %v746_v33  ;;  %v907_v34 = vpop.f32.mrb[6].mxu0 }
 0x295   :  { %v908_v35 = vadd.f32 %v907_v34, %v5297_v20  ;;  %v4409_v36 = vpop.f32.mrb[7].mxu0 }
 0x297   :  { %v911_v38 = vsel %vm341_vm3, %v908_v35, -inf }
 0x298   :  { %912 = vmax.xlane.f32.xlu0 %v911_v38  ;;  %v1088_v39 = vpop.f32.mrb[8].mxu0 }
 0x299   :  { %v1089_v40 = vadd.f32 %v1088_v39, %v5307_v37  ;;  %v4419_v41 = vpop.f32.mrb[9].mxu0 }
 0x29b   :  { %v1092_v42 = vsel %vm341_vm3, %v1089_v40, -inf }
 0x29c   :  { %1093 = vmax.xlane.f32.xlu1 %v1092_v42  ;;  %v1253_v3 = vpop.f32.mrb[10].mxu0 }
 0x29d   :  { %v1254_v43 = vadd.f32 %v1253_v3, %v5307_v37  ;;  %v4429_v44 = vpop.f32.mrb[11].mxu0 }
 0x29f   :  { %v1257_v45 = vsel %vm341_vm3, %v1254_v43, -inf }
 0x2a0   :  { %1258 = vmax.xlane.f32.xlu0 %v1257_v45  ;;  %v1418_v46 = vpop.f32.mrb[12].mxu0 }
 0x2a1   :  { %v1419_v47 = vadd.f32 %v1418_v46, %v5307_v37  ;;  %v4439_v48 = vpop.f32.mrb[13].mxu0 }
 0x2a3   :  { %v1422_v49 = vsel %vm341_vm3, %v1419_v47, -inf }
 0x2a4   :  { %1423 = vmax.xlane.f32.xlu1 %v1422_v49  ;;  %v1583_v50 = vpop.f32.mrb[14].mxu0 }
 0x2a5   :  { %v1584_v51 = vadd.f32 %v1583_v50, %v5307_v37  ;;  %v4449_v52 = vpop.f32.mrb[15].mxu0 }
 0x2a7   :  { %v1587_v53 = vsel %vm341_vm3, %v1584_v51, -inf }
 0x2a8   :  { %1588 = vmax.xlane.f32.xlu0 %v1587_v53 }
 0x2b5   :  { %922 = vrot.lane.b32.xlu1 %v5217_v0, %s4926_s2 }
 0x2be   :  { %757 = vrot.lane.b32.xlu0 %v5217_v0, %s4927_s23 }
 0x319   :  { %v418_v55 = vpop.xlane.xlu0 %417 }
 0x31a   :  { %v419_v56 = vsub.f32 %v413_v22, %v418_v55 }
 0x31c   :  { %v420_v57 = vmul.f32 1.442695, %v419_v56 }
 0x31d   :  { %v583_v61 = vpop.xlane.xlu1 %582 }
 0x31e   :  { %4767 = vpow2.f32 %v420_v57  ;;  %v584_v62 = vsub.f32 %v578_v26, %v583_v61 }
 0x320   :  { %v585_v63 = vmul.f32 1.442695, %v584_v62 }
 0x321   :  { %v748_v2 = vpop.xlane.xlu0 %747 }
 0x322   :  { %4769 = vpow2.f32 %v585_v63  ;;  %v749_v4 = vsub.f32 %v743_v30, %v748_v2 }
 0x324   :  { %v750_v5 = vmul.f32 1.442695, %v749_v4 }
 0x325   :  { %v913_v6 = vpop.xlane.xlu0 %912 }
 0x326   :  { %4771 = vpow2.f32 %v750_v5  ;;  %v914_v7 = vsub.f32 %v908_v35, %v913_v6 }
 0x328   :  { %v4768_v8 = vpop.eup %4767  ;;  %v915_v9 = vmul.f32 1.442695, %v914_v7 }
 0x329   :  { %v422_v0 = vsel %vm341_vm3, %v4768_v8, 0.0  ;;  %v1094_v16 = vpop.xlane.xlu1 %1093 }
 0x32a   :  { %4773 = vpow2.f32 %v915_v9  ;;  %423 = vadd.xlane.f32.xlu1 %v422_v0  ;;  %v1095_v17 = vsub.f32 %v1089_v40, %v1094_v16  ;;  %v1690_v16 = vld [vmem:[%s5798_s6 + $0x8] sm:$0xff] }
 0x32c   :  { %v4770_v10 = vpop.eup %4769  ;;  %v1096_v22 = vmul.f32 1.442695, %v1095_v17 }
 0x32d   :  { %v587_v11 = vsel %vm341_vm3, %v4770_v10, 0.0  ;;  %v1259_v18 = vpop.xlane.xlu0 %1258 }
 0x32e   :  { %588 = vadd.xlane.f32.xlu0 %v587_v11  ;;  %v1260_v21 = vsub.f32 %v1254_v43, %v1259_v18  ;;  %4775 = vpow2.f32 %v1096_v22  ;;  %v1691_v18 = vld [vmem:[%s5798_s6 + $0x10] sm:$0xff] }
 0x330   :  { %v4772_v12 = vpop.eup %4771  ;;  %v1261_v25 = vmul.f32 1.442695, %v1260_v21 }
 0x331   :  { %v752_v13 = vsel %vm341_vm3, %v4772_v12, 0.0  ;;  %v1424_v19 = vpop.xlane.xlu1 %1423 }
 0x332   :  { %753 = vadd.xlane.f32.xlu1 %v752_v13  ;;  %v1425_v23 = vsub.f32 %v1419_v47, %v1424_v19  ;;  %4777 = vpow2.f32 %v1261_v25  ;;  %v1692_v19 = vld [vmem:[%s5798_s6 + $0x18] sm:$0xff] }
 0x333   :  { %v4662_v21 = vpack.c.bf16 %v1692_v19, %v1691_v18 }
 0x334   :  { %v5327_v14 = vpop.eup %4773  ;;  %v1426_v26 = vmul.f32 1.442695, %v1425_v23 }
 0x335   :  { %v917_v15 = vsel %vm341_vm3, %v5327_v14, 0.0  ;;  %v1589_v24 = vpop.xlane.xlu0 %1588  ;;  %v923_v38 = vpop.permute.xlu1 %922 }
 0x336   :  { %918 = vadd.xlane.f32.xlu0 %v917_v15  ;;  %v1590_v27 = vsub.f32 %v1584_v51, %v1589_v24  ;;  %4779 = vpow2.f32 %v1426_v26  ;;  %v1689_v15 = vld [vmem:[%s5798_s6] sm:$0xff] }
 0x337   :  { %v4658_v17 = vpack.c.bf16 %v1690_v16, %v1689_v15 }
 0x338   :  { %v1591_v28 = vmul.f32 1.442695, %v1590_v27  ;;  %v4776_v29 = vpop.eup %4775 }
 0x339   :  { %v1098_v31 = vsel %vm341_vm3, %v4776_v29, 0.0  ;;  %v758_v39 = vpop.permute.xlu0 %757  ;;  %4659 = vmatprep.subr.bf16.mxu0 %v4658_v17 }
 0x33a   :  { %4781 = vpow2.f32 %v1591_v28  ;;  %4661 = vmatpush3.bf16.msra.mxu0 %v4658_v17 }
 0x33b   :  { %4663 = vmatprep.subr.bf16.mxu0 %v4662_v21 }
 0x33c   :  { %v5335_v30 = vpop.eup %4777 }
 0x33d   :  { %v1263_v34 = vsel %vm341_vm3, %v5335_v30, 0.0 }
 0x33e   :  { %4665 = vmatpush3.bf16.msra.mxu0 %v4662_v21 }
 0x340   :  { %v5338_v32 = vpop.eup %4779 }
 0x341   :  { %v1428_v33 = vsel %vm341_vm3, %v5338_v32, 0.0 }
 0x343   :  { %1268 = vrot.lane.b32.xlu1 %v5231_v1, %s4924_s24 }
 0x344   :  { %v5344_v35 = vpop.eup %4781 }
 0x345   :  { %v1593_v36 = vsel %vm341_vm3, %v5344_v35, 0.0 }
 0x34c   :  { %1103 = vrot.lane.b32.xlu0 %v5231_v1, %s4925_s26 }
 0x367   :  { %1099 = vadd.xlane.f32.xlu1 %v1098_v31 }
 0x36b   :  { %1429 = vadd.xlane.f32.xlu1 %v1428_v33  ;;  %1264 = vadd.xlane.f32.xlu0 %v1263_v34 }
 0x36f   :  { %1594 = vadd.xlane.f32.xlu1 %v1593_v36 }
 0x380   :  { %1598 = vrot.lane.b32.xlu1 %v5231_v1, %s4926_s2 }
 0x381   :  { %1433 = vrot.lane.b32.xlu0 %v5231_v1, %s4927_s23 }
 0x3b7   :  { %v424_v40 = vpop.xlane.xlu1 %423 }
 0x3b8   :  { %4783 = vrcp.f32 %v424_v40 }
 0x3bb   :  { %v589_v41 = vpop.xlane.xlu0 %588 }
 0x3bc   :  { %4785 = vrcp.f32 %v589_v41 }
 0x3bf   :  { %v754_v42 = vpop.xlane.xlu1 %753 }
 0x3c0   :  { %4787 = vrcp.f32 %v754_v42 }
 0x3c2   :  { %v4784_v3 = vpop.eup %4783 }
 0x3c3   :  { %v426_v43 = vmul.f32 %v4784_v3, %v4768_v8  ;;  %v919_v44 = vpop.xlane.xlu0 %918  ;;  %v1269_v51 = vpop.permute.xlu1 %1268  ;;  %v4144_v3 = vld [vmem:[%s5799_s7] ss:$0 sm:$0xff] }
 0x3c4   :  { %4789 = vrcp.f32 %v919_v44 }
 0x3c5   :  { %4383 = vmatmul.mubr.msk.f32.vlgmr.msra.gmra.mrb[2].mxu1 %vm341_vm3, %v426_v43 }
 0x3c6   :  { %v4786_v45 = vpop.eup %4785  ;;  %4391 = vmatpush3.msra.mxu1 %v5322_v54  ;;  %4392 = vmatprep.mubr.msk.f32.mxu1 %vm4916_vm2, %v4915_v60 }
 0x3c7   :  { %v591_v1 = vmul.f32 %v4786_v45, %v4770_v10  ;;  %4400 = vmatprep.subr.mxu1 %v4915_v60  ;;  %v1104_v50 = vpop.permute.xlu0 %1103 }
 0x3c9   :  { %4393 = vmatmul.mubr.msk.f32.vlgmr.msra.gmra.mrb[4].mxu1 %vm341_vm3, %v591_v1 }
 0x3ca   :  { %v4788_v46 = vpop.eup %4787  ;;  %4401 = vmatpush3.msra.mxu1 %v758_v39  ;;  %4402 = vmatprep.mubr.msk.f32.mxu1 %vm4916_vm2, %v4915_v60 }
 0x3cb   :  { %v756_v47 = vmul.f32 %v4788_v46, %v4772_v12  ;;  %4410 = vmatprep.subr.mxu1 %v4915_v60 }
 0x3cd   :  { %4403 = vmatmul.mubr.msk.f32.vlgmr.msra.gmra.mrb[6].mxu1 %vm341_vm3, %v756_v47 }
 0x3ce   :  { %v4790_v48 = vpop.eup %4789  ;;  %4411 = vmatpush3.msra.mxu1 %v923_v38  ;;  %4412 = vmatprep.mubr.msk.f32.mxu1 %vm4916_vm2, %v4915_v60 }
 0x3cf   :  { %v921_v49 = vmul.f32 %v4790_v48, %v5327_v14  ;;  %4420 = vmatprep.subr.mxu1 %v4915_v60 }
 0x3d1   :  { %4413 = vmatmul.mubr.msk.f32.vlgmr.msra.gmra.mrb[8].mxu1 %vm341_vm3, %v921_v49 }
 0x3d2   :  { %4421 = vmatpush3.msra.mxu1 %v1104_v50  ;;  %4422 = vmatprep.mubr.msk.f32.mxu1 %vm4916_vm2, %v4915_v60 }
 0x3d3   :  { %4430 = vmatprep.subr.mxu1 %v4915_v60 }
 0x3f4   :  { %v1100_v52 = vpop.xlane.xlu1 %1099 }
 0x3f5   :  { %4791 = vrcp.f32 %v1100_v52 }
 0x3f8   :  { %v1430_v53 = vpop.xlane.xlu1 %1429  ;;  %v1265_v54 = vpop.xlane.xlu0 %1264 }
 0x3f9   :  { %4793 = vrcp.f32 %v1265_v54 }
 0x3fa   :  { %4795 = vrcp.f32 %v1430_v53 }
 0x3fc   :  { %v1595_v55 = vpop.xlane.xlu1 %1594  ;;  %v1434_v2 = vpop.permute.xlu0 %1433 }
 0x3fd   :  { %4797 = vrcp.f32 %v1595_v55 }
 0x3ff   :  { %v4792_v56 = vpop.eup %4791 }
 0x400   :  { %v1102_v57 = vmul.f32 %v4792_v56, %v4776_v29  ;;  %v1599_v6 = vpop.permute.xlu1 %1598 }
 0x402   :  { %4423 = vmatmul.mubr.msk.f32.vlgmr.msra.gmra.mrb[10].mxu1 %vm341_vm3, %v1102_v57 }
 0x403   :  { %4431 = vmatpush3.msra.mxu1 %v1269_v51  ;;  %4432 = vmatprep.mubr.msk.f32.mxu1 %vm4916_vm2, %v4915_v60  ;;  %v4794_v61 = vpop.eup %4793 }
 0x404   :  { %4440 = vmatprep.subr.mxu1 %v4915_v60  ;;  %v1267_v62 = vmul.f32 %v4794_v61, %v5335_v30  ;;  %v4796_v63 = vpop.eup %4795 }
 0x405   :  { %v1432_v4 = vmul.f32 %v4796_v63, %v5338_v32 }
 0x406   :  { %4433 = vmatmul.mubr.msk.f32.vlgmr.msra.gmra.mrb[12].mxu1 %vm341_vm3, %v1267_v62  ;;  %v1829_v62 = vld [vmem:[%s5800_s8 + $0x8] sm:$0xff] }
 0x407   :  { %4441 = vmatpush3.msra.mxu1 %v1434_v2  ;;  %4442 = vmatprep.mubr.msk.f32.mxu1 %vm4916_vm2, %v4915_v60  ;;  %v4798_v5 = vpop.eup %4797  ;;  %v1830_v2 = vld [vmem:[%s5800_s8 + $0x10] sm:$0xff] }
 0x408   :  { %4450 = vmatprep.subr.mxu1 %v4915_v60  ;;  %v1597_v7 = vmul.f32 %v4798_v5, %v5344_v35 }
 0x40a   :  { %4443 = vmatmul.mubr.msk.f32.vlgmr.msra.gmra.mrb[14].mxu1 %vm341_vm3, %v1432_v4  ;;  %v1831_v4 = vld [vmem:[%s5800_s8 + $0x18] sm:$0xff] }
 0x40b   :  { %4451 = vmatpush3.msra.mxu1 %v1599_v6  ;;  %4452 = vmatprep.mubr.msk.f32.mxu1 %vm4916_vm2, %v4915_v60  ;;  %v4670_v5 = vpack.c.bf16 %v1831_v4, %v1830_v2  ;;  %v1922_v6 = vld [vmem:[%s5802_s10] sm:$0xff]  ;;  %v4160_v2 = vld [vmem:[%s5842_s18 + $0x38] sm:$0xff] }
 0x40e   :  { %4453 = vmatmul.mubr.msk.f32.vlgmr.msra.gmra.mrb[16].mxu1 %vm341_vm3, %v1597_v7  ;;  %v1923_v7 = vld [vmem:[%s5802_s10 + $0x8] sm:$0xff] }
 0x498   :  { %v499_v8 = vpop.f32.mrb[2].mxu1 }
 0x499   :  { %v4384_v9 = vpop.f32.mrb[3].mxu1 }
 0x49a   :  { %v4674_v9 = vpack.c.bf16 %v1923_v7, %v1922_v6 }
 0x49c   :  { %v664_v0 = vpop.f32.mrb[4].mxu1  ;;  %4675 = vmatprep.subr.bf16.mxu0 %v4674_v9 }
 0x49d   :  { %999 = vrot.lane.b32.xlu0 %v664_v0, %s5846_s14  ;;  %v4394_v10 = vpop.f32.mrb[5].mxu1  ;;  %v1925_v0 = vld [vmem:[%s5802_s10 + $0x18] sm:$0xff] }
 0x4a0   :  { %v829_v11 = vpop.f32.mrb[6].mxu1 }
 0x4a1   :  { %1003 = vrot.lane.b32.xlu1 %v829_v11, %s4928_s9  ;;  %v4404_v12 = vpop.f32.mrb[7].mxu1  ;;  %v1926_v11 = vld [vmem:[%s5802_s10 + $0x20] sm:$0xff] }
 0x4a2   :  { %v1927_v12 = vld [vmem:[%s5802_s10 + $0x28] sm:$0xff] }
 0x4a4   :  { %v994_v13 = vpop.f32.mrb[8].mxu1 }
 0x4a5   :  { %1007 = vrot.lane.b32.xlu1 %v994_v13, %s5825_s13  ;;  %v4414_v14 = vpop.f32.mrb[9].mxu1  ;;  %v4682_v13 = vpack.c.bf16 %v1927_v12, %v1926_v11 }
 0x4d5   :  { %v1175_v22 = vpop.f32.mrb[10].mxu1 }
 0x4d6   :  { %v4424_v23 = vpop.f32.mrb[11].mxu1 }
 0x4d9   :  { %v1340_v24 = vpop.f32.mrb[12].mxu1 }
 0x4da   :  { %1675 = vrot.lane.b32.xlu0 %v1340_v24, %s5846_s14  ;;  %v4434_v25 = vpop.f32.mrb[13].mxu1  ;;  %v4148_v24 = vld [vmem:[%s5848_s22] ss:$0 sm:$0xff] }
 0x4dd   :  { %v1505_v26 = vpop.f32.mrb[14].mxu1 }
 0x4de   :  { %1679 = vrot.lane.b32.xlu0 %v1505_v26, %s4928_s9  ;;  %v4444_v27 = vpop.f32.mrb[15].mxu1 }
 0x4e1   :  { %v1670_v28 = vpop.f32.mrb[16].mxu1 }
 0x4e2   :  { %1683 = vrot.lane.b32.xlu1 %v1670_v28, %s5825_s13  ;;  %v4454_v29 = vpop.f32.mrb[17].mxu1  ;;  %s5851_s13 = sld [smem:[#allocation21_spill]] }
 0x4e8   :  { %v4155_v11 = vld [vmem:[%s5851_s13] ss:$0 sm:$0xff] }
 0x50f   :  { %v1000_v30 = vpop.permute.xlu0 %999 }
 0x510   :  { %v1010_v32 = vsel %vm341_vm3, %v499_v8, %v1000_v30  ;;  %v1924_v8 = vld [vmem:[%s5802_s10 + $0x10] sm:$0xff] }
 0x511   :  { %v4678_v10 = vpack.c.bf16 %v1925_v0, %v1924_v8 }
 0x513   :  { %v1004_v31 = vpop.permute.xlu1 %1003 }
 0x514   :  { %v1012_v33 = vsel %vm1011_vm4, %v1010_v32, %v1004_v31  ;;  %v1928_v31 = vld [vmem:[%s5802_s10 + $0x30] sm:$0xff]  ;;  %v1929_v32 = vld [vmem:[%s5802_s10 + $0x38] sm:$0xff] }
 0x517   :  { %v1008_v34 = vpop.permute.xlu1 %1007 }
 0x518   :  { %v1014_v35 = vsel %vm1013_vm5, %v1012_v33, %v1008_v34  ;;  %v4686_v33 = vpack.c.bf16 %v1929_v32, %v1928_v31  ;;  %v4149_v34 = vld [vmem:[%s5849_s16] ss:$0 sm:$0xff] }
 0x519   :  { %4463 = vmatprep.mubr.msk.f32.mxu0 %vm256_vm1, %v1014_v35 }
 0x54c   :  { %v1676_v36 = vpop.permute.xlu0 %1675 }
 0x54d   :  { %v1686_v39 = vsel %vm341_vm3, %v1175_v22, %v1676_v36  ;;  %v4147_v22 = vld [vmem:[%s5847_s19] ss:$0 sm:$0xff] }
 0x550   :  { %v1680_v38 = vpop.permute.xlu0 %1679 }
 0x551   :  { %v1687_v40 = vsel %vm1011_vm4, %v1686_v39, %v1680_v38 }
 0x554   :  { %v1684_v41 = vpop.permute.xlu1 %1683 }
 0x555   :  { %v1688_v42 = vsel %vm1013_vm5, %v1687_v40, %v1684_v41 }
 0x556   :  { %4464 = vmatmul.mubr.msk.f32.vlgmr.msra.gmra.mrb[16].mxu0 %vm256_vm1, %v1688_v42  ;;  %v4152_v42 = vld [vmem:[%s5850_s1] ss:$0 sm:$0xff] }
 0x557   :  { %4677 = vmatpush3.bf16.msra.mxu0 %v4674_v9 }
 0x558   :  { %4679 = vmatprep.subr.bf16.mxu0 %v4678_v10 }
 0x55b   :  { %4681 = vmatpush3.bf16.msra.mxu0 %v4678_v10 }
 0x55c   :  { %4683 = vmatprep.subr.bf16.mxu0 %v4682_v13 }
 0x55f   :  { %4685 = vmatpush3.bf16.msra.mxu0 %v4682_v13 }
 0x560   :  { %4687 = vmatprep.subr.bf16.mxu0 %v4686_v33 }
 0x563   :  { %4689 = vmatpush3.bf16.msra.mxu0 %v4686_v33 }
 0x564   :  { %4517 = vmatprep.subr.mxu0 %v4915_v60 }
 0x629   :  { %v4465_v43 = vpop.f32.mrb[16].mxu0 }
 0x62a   :  { %v1778_v44 = vadd.f32 %v4465_v43, %v4144_v3  ;;  %v1772_v45 = vpop.f32.mrb[17].mxu0 }
 0x62b   :  { %v1773_v1 = vadd.f32 %v4144_v3, %v1772_v45 }
 0x62c   :  { %v1782_v46 = vadd.f32 %v1778_v44, %v5204_v59 }
 0x62d   :  { %v1781_v47 = vadd.f32 %v1773_v1, %v5200_v58  ;;  %v1828_v58 = vld [vmem:[%s5800_s8] sm:$0xff] }
 0x62e   :  { %v1788_v48 = vsel %vm256_vm1, %v1782_v46, 0.0  ;;  %v4666_v63 = vpack.c.bf16 %v1829_v62, %v1828_v58  ;;  %v4158_v58 = vld [vmem:[%s5842_s18 + $0x28] sm:$0xff] }
 0x62f   :  { %1789 = vadd.xlane.f32.xlu1 %v1788_v48  ;;  %v1785_v49 = vsel %vm256_vm1, %v1781_v47, 0.0 }
 0x630   :  { %1786 = vadd.xlane.f32.xlu0 %v1785_v49  ;;  %4667 = vmatprep.subr.bf16.mxu1 %v4666_v63 }
 0x631   :  { %4669 = vmatpush3.bf16.msra.mxu1 %v4666_v63  ;;  %v4159_v63 = vld [vmem:[%s5842_s18 + $0x30] sm:$0xff] }
 0x632   :  { %4671 = vmatprep.subr.bf16.mxu1 %v4670_v5  ;;  %v4694_v4 = vpack.c.bf16 %v4160_v2, %v4159_v63 }
 0x635   :  { %4673 = vmatpush3.bf16.msra.mxu1 %v4670_v5 }
 0x6bc   :  { %v1790_v50 = vpop.xlane.xlu1 %1789 }
 0x6bd   :  { %v1793_v51 = vmul.f32 0.03125, %v1790_v50  ;;  %v1787_v52 = vpop.xlane.xlu0 %1786 }
 0x6be   :  { %v1792_v53 = vmul.f32 0.03125, %v1787_v52 }
 0x6bf   :  { %v1795_v54 = vsub.f32 %v1782_v46, %v1793_v51 }
 0x6c0   :  { %v1794_v55 = vsub.f32 %v1781_v47, %v1792_v53 }
 0x6c1   :  { %v1797_v61 = vmul.f32 %v1795_v54, %v1795_v54 }
 0x6c2   :  { %v1796_v56 = vmul.f32 %v1794_v55, %v1794_v55 }
 0x6c3   :  { %v1801_v59 = vsel %vm256_vm1, %v1797_v61, 0.0 }
 0x6c4   :  { %v1798_v57 = vsel %vm256_vm1, %v1796_v56, 0.0 }
 0x6c5   :  { %1799 = vadd.xlane.f32.xlu0 %v1798_v57 }
 0x6c9   :  { %1802 = vadd.xlane.f32.xlu0 %v1801_v59  ;;  %v4157_v59 = vld [vmem:[%s5842_s18 + $0x20] sm:$0xff] }
 0x6ca   :  { %v4690_v62 = vpack.c.bf16 %v4158_v58, %v4157_v59 }
 0x6cc   :  { %4691 = vmatprep.subr.bf16.mxu1 %v4690_v62 }
 0x752   :  { %v1800_v14 = vpop.xlane.xlu0 %1799 }
 0x753   :  { %v1804_v15 = vmul.f32 0.03125, %v1800_v14 }
 0x755   :  { %v1806_v16 = vadd.f32 1e-05, %v1804_v15  ;;  %v4156_v15 = vld [vmem:[%s5852_s17] ss:$0 sm:$0xff] }
 0x756   :  { %v1803_v17 = vpop.xlane.xlu0 %1802 }
 0x757   :  { %4799 = vrsqrt.f32 %v1806_v16  ;;  %v1805_v18 = vmul.f32 0.03125, %v1803_v17 }
 0x759   :  { %v1807_v19 = vadd.f32 1e-05, %v1805_v18 }
 0x75b   :  { %4801 = vrsqrt.f32 %v1807_v19 }
 0x761   :  { %v4800_v21 = vpop.eup %4799 }
 0x762   :  { %v1810_v23 = vmul.f32 %v4800_v21, %v1794_v55  ;;  %v4162_v21 = vld [vmem:[%s5797_s5 + $0x1] ss:$0 sm:$0xff]  ;;  %s5853_s5 = smov 24  }
 0x764   :  { %v1818_v25 = vmul.f32 %v4147_v22, %v1810_v23 }
 0x765   :  { %v4802_v26 = vpop.eup %4801 }
 0x766   :  { %v1811_v27 = vmul.f32 %v4802_v26, %v1795_v54  ;;  %v1826_v28 = vadd.f32 %v4148_v24, %v1818_v25 }
 0x768   :  { %v1819_v29 = vmul.f32 %v4147_v22, %v1811_v27  ;;  %4474 = vmatprep.mubr.msk.f32.mxu1 %vm256_vm1, %v1826_v28 }
 0x76a   :  { %v1827_v30 = vadd.f32 %v4148_v24, %v1819_v29 }
 0x76c   :  { %4475 = vmatmul.mubr.msk.f32.vlgmr.msra.gmra.mrb[18].mxu1 %vm256_vm1, %v1827_v30 }
 0x76d   :  { %4693 = vmatpush3.bf16.msra.mxu1 %v4690_v62 }
 0x76e   :  { %4695 = vmatprep.subr.bf16.mxu1 %v4694_v4 }
 0x771   :  { %4697 = vmatpush3.bf16.msra.mxu1 %v4694_v4 }
 0x772   :  { %4507 = vmatprep.subr.mxu1 %v4915_v60 }
 0x83f   :  { %v4476_v35 = vpop.f32.mrb[18].mxu1 }
 0x840   :  { %v1917_v36 = vadd.f32 %v4476_v35, %v4149_v34  ;;  %v1911_v38 = vpop.f32.mrb[19].mxu1 }
 0x841   :  { %v1912_v39 = vadd.f32 %v4149_v34, %v1911_v38 }
 0x842   :  { %v1921_v41 = vmax.f32 %v1917_v36, 0.0 }
 0x843   :  { %v1920_v40 = vmax.f32 %v1912_v39, 0.0 }
 0x845   :  { %4493 = vmatprep.mubr.msk.f32.mxu0 %vm1937_vm6, %v1920_v40 }
 0x846   :  { %4494 = vmatmul.mubr.msk.f32.vlgmr.msra.gmra.mrb[18].mxu0 %vm1937_vm6, %v1921_v41 }
 0x847   :  { %4519 = vmatprep.mubr.msk.f32.mxu0 %vm4916_vm2, %v4915_v60 }
 0x919   :  { %v4495_v3 = vpop.f32.mrb[18].mxu0 }
 0x91a   :  { %v2016_v43 = vadd.f32 %v4495_v3, %v4152_v42  ;;  %v2010_v44 = vpop.f32.mrb[19].mxu0 }
 0x91b   :  { %v2011_v45 = vadd.f32 %v4152_v42, %v2010_v44 }
 0x91c   :  { %v2020_v1 = vadd.f32 %v2016_v43, %v1827_v30 }
 0x91d   :  { %v2019_v46 = vadd.f32 %v2011_v45, %v1826_v28 }
 0x91e   :  { %v2026_v47 = vsel %vm256_vm1, %v2020_v1, 0.0 }
 0x91f   :  { %2027 = vadd.xlane.f32.xlu0 %v2026_v47  ;;  %v2023_v48 = vsel %vm256_vm1, %v2019_v46, 0.0 }
 0x920   :  { %2024 = vadd.xlane.f32.xlu1 %v2023_v48 }
 0x9ac   :  { %v2028_v49 = vpop.xlane.xlu0 %2027 }
 0x9ad   :  { %v2030_v50 = vmul.f32 0.03125, %v2028_v49  ;;  %v2025_v51 = vpop.xlane.xlu1 %2024 }
 0x9ae   :  { %v2029_v52 = vmul.f32 0.03125, %v2025_v51 }
 0x9af   :  { %v2032_v53 = vsub.f32 %v2020_v1, %v2030_v50 }
 0x9b0   :  { %v2031_v54 = vsub.f32 %v2019_v46, %v2029_v52 }
 0x9b1   :  { %v2034_v55 = vmul.f32 %v2032_v53, %v2032_v53 }
 0x9b2   :  { %v2033_v56 = vmul.f32 %v2031_v54, %v2031_v54 }
 0x9b3   :  { %v2038_v57 = vsel %vm256_vm1, %v2034_v55, 0.0 }
 0x9b4   :  { %2039 = vadd.xlane.f32.xlu0 %v2038_v57  ;;  %v2035_v61 = vsel %vm256_vm1, %v2033_v56, 0.0 }
 0x9b5   :  { %2036 = vadd.xlane.f32.xlu1 %v2035_v61 }
 0xa41   :  { %v2040_v5 = vpop.xlane.xlu0 %2039 }
 0xa42   :  { %v2042_v6 = vmul.f32 0.03125, %v2040_v5  ;;  %v2037_v7 = vpop.xlane.xlu1 %2036 }
 0xa43   :  { %v2041_v8 = vmul.f32 0.03125, %v2037_v7 }
 0xa44   :  { %v2044_v9 = vadd.f32 1e-05, %v2042_v6 }
 0xa45   :  { %v2043_v0 = vadd.f32 1e-05, %v2041_v8 }
 0xa46   :  { %4803 = vrsqrt.f32 %v2044_v9 }
 0xa47   :  { %4805 = vrsqrt.f32 %v2043_v0 }
 0xa50   :  { %v4804_v10 = vpop.eup %4803 }
 0xa51   :  { %v4806_v12 = vpop.eup %4805  ;;  %v2048_v13 = vmul.f32 %v4804_v10, %v2032_v53 }
 0xa52   :  { %v2047_v14 = vmul.f32 %v4806_v12, %v2031_v54 }
 0xa53   :  { %v2056_v16 = vmul.f32 %v4155_v11, %v2048_v13 }
 0xa54   :  { %v2055_v17 = vmul.f32 %v4155_v11, %v2047_v14 }
 0xa55   :  { %v5500_v19 = vadd.f32 %v4156_v15, %v2056_v16 }
 0xa56   :  { %v5498_v18 = vadd.f32 %v4156_v15, %v2055_v17 }
 0xa58   :  { %4504 = vmatprep.mubr.msk.f32.mxu1 %vm256_vm1, %v5498_v18 }
 0xa59   :  { %4505 = vmatmul.mubr.msk.f32.vlgmr.msra.gmra.mrb[20].mxu1 %vm256_vm1, %v5500_v19 }
 0xa5a   :  { %4509 = vmatprep.mubr.msk.f32.mxu1 %vm4916_vm2, %v4915_v60 }
 0xb2c   :  { %v4506_v22 = vpop.f32.mrb[20].mxu1 }
 0xb2d   :  { %v2150_v23 = vpop.f32.mrb[21].mxu1  ;;  %v5525_v25 = vadd.f32 %v4506_v22, %v4162_v21 }
 0xb2e   :  { %v5511_v24 = vadd.f32 %v4162_v21, %v2150_v23 }
 0xb30   :  { %2325 = vrot.lane.b32.xlu0 %v5511_v24, %s4920_s30  ;;  %2160 = vrot.lane.b32.xlu1 %v5511_v24, %s4918_s28 }
 0xb34   :  { %2488 = vrot.lane.b32.xlu0 %v5511_v24, %s4922_s20  ;;  %2323 = vrot.lane.b32.xlu1 %v5511_v24, %s4917_s27 }
 0xb38   :  { %2653 = vrot.lane.b32.xlu0 %v5511_v24, %s4923_s29  ;;  %2490 = vrot.lane.b32.xlu1 %v5511_v24, %s4919_s21 }
 0xb3c   :  { %2999 = vrot.lane.b32.xlu0 %v5525_v25, %s4920_s30  ;;  %2655 = vrot.lane.b32.xlu1 %v5511_v24, %s4921_s4  ;;  %s5855_s30 = sld [smem:[#allocation24_spill]] }
 0xb40   :  { %3164 = vrot.lane.b32.xlu0 %v5525_v25, %s4919_s21  ;;  %2834 = vrot.lane.b32.xlu1 %v5525_v25, %s4918_s28 }
 0xb44   :  { %3329 = vrot.lane.b32.xlu0 %v5525_v25, %s4921_s4  ;;  %2997 = vrot.lane.b32.xlu1 %v5525_v25, %s4917_s27 }
 0xb48   :  { %2247 = vrot.lane.b32.xlu0 %v5511_v24, %s4925_s26  ;;  %3162 = vrot.lane.b32.xlu1 %v5525_v25, %s4922_s20  ;;  %s5856_s20 = sld [smem:[#allocation25_spill]] }
 0xb4c   :  { %3327 = vrot.lane.b32.xlu1 %v5525_v25, %s4923_s29 }
 0xb50   :  { %2412 = vrot.lane.b32.xlu1 %v5511_v24, %s4924_s24 }
 0xba2   :  { %v2326_v26 = vpop.permute.xlu0 %2325  ;;  %v2161_v27 = vpop.permute.xlu1 %2160 }
 0xba3   :  { %4508 = vmatpush3.xpose.msk.msra.mxu1 %vm341_vm3, %v2161_v27  ;;  %4518 = vmatpush3.xpose.msk.msra.mxu0 %vm341_vm3, %v2326_v26 }
 0xba4   :  { %4527 = vmatprep.subr.mxu0 %v4915_v60  ;;  %4512 = vmatprep.subr.mxu1 %v4915_v60 }
 0xba6   :  { %v2489_v28 = vpop.permute.xlu0 %2488  ;;  %4510 = vmatmul.mubr.msk.f32.vlgmr.msra.gmra.mrb[22].mxu1 %vm341_vm3, %v5511_v24  ;;  %v2324_v29 = vpop.permute.xlu1 %2323 }
 0xba7   :  { %4520 = vmatmul.mubr.msk.f32.vlgmr.msra.gmra.mrb[20].mxu0 %vm341_vm3, %v2324_v29  ;;  %4514 = vmatprep.mubr.msk.f32.mxu1 %vm4916_vm2, %v4915_v60 }
 0xba8   :  { %4529 = vmatprep.mubr.msk.f32.mxu0 %vm4916_vm2, %v4915_v60 }
 0xbaa   :  { %v2654_v30 = vpop.permute.xlu0 %2653  ;;  %v2491_v31 = vpop.permute.xlu1 %2490 }
 0xbab   :  { %4528 = vmatpush3.xpose.msk.msra.mxu0 %vm341_vm3, %v2491_v31 }
 0xbac   :  { %4537 = vmatprep.subr.mxu0 %v4915_v60 }
 0xbae   :  { %v3000_v32 = vpop.permute.xlu0 %2999  ;;  %4530 = vmatmul.mubr.msk.f32.vlgmr.msra.gmra.mrb[22].mxu0 %vm341_vm3, %v2489_v28  ;;  %v2656_v33 = vpop.permute.xlu1 %2655 }
 0xbaf   :  { %4538 = vmatpush3.xpose.msk.msra.mxu0 %vm341_vm3, %v2656_v33  ;;  %4539 = vmatprep.mubr.msk.f32.mxu0 %vm4916_vm2, %v4915_v60 }
 0xbb0   :  { %4547 = vmatprep.subr.mxu0 %v4915_v60 }
 0xbb2   :  { %v3165_v34 = vpop.permute.xlu0 %3164  ;;  %4540 = vmatmul.mubr.msk.f32.vlgmr.msra.gmra.mrb[24].mxu0 %vm341_vm3, %v2654_v30  ;;  %v2835_v35 = vpop.permute.xlu1 %2834 }
 0xbb3   :  { %4548 = vmatpush3.xpose.msk.msra.mxu0 %vm341_vm3, %v2835_v35  ;;  %4549 = vmatprep.mubr.msk.f32.mxu0 %vm4916_vm2, %v4915_v60 }
 0xbb4   :  { %4557 = vmatprep.subr.mxu0 %v4915_v60 }
 0xbb6   :  { %v3330_v36 = vpop.permute.xlu0 %3329  ;;  %4550 = vmatmul.mubr.msk.f32.vlgmr.msra.gmra.mrb[26].mxu0 %vm341_vm3, %v5525_v25  ;;  %v2998_v38 = vpop.permute.xlu1 %2997 }
 0xbb7   :  { %4558 = vmatpush3.xpose.msk.msra.mxu0 %vm341_vm3, %v3000_v32  ;;  %4559 = vmatprep.mubr.msk.f32.mxu0 %vm4916_vm2, %v4915_v60 }
 0xbb8   :  { %4567 = vmatprep.subr.mxu0 %v4915_v60 }
 0xbba   :  { %v2248_v39 = vpop.permute.xlu0 %2247  ;;  %4560 = vmatmul.mubr.msk.f32.vlgmr.msra.gmra.mrb[28].mxu0 %vm341_vm3, %v2998_v38  ;;  %v3163_v40 = vpop.permute.xlu1 %3162 }
 0xbbb   :  { %4513 = vmatpush3.msra.mxu1 %v2248_v39  ;;  %4568 = vmatpush3.xpose.msk.msra.mxu0 %vm341_vm3, %v3165_v34 }
 0xbbc   :  { %4569 = vmatprep.mubr.msk.f32.mxu0 %vm4916_vm2, %v4915_v60  ;;  %4577 = vmatprep.subr.mxu0 %v4915_v60 }
 0xbbd   :  { %4522 = vmatprep.subr.mxu1 %v4915_v60 }
 0xbbe   :  { %4570 = vmatmul.mubr.msk.f32.vlgmr.msra.gmra.mrb[30].mxu0 %vm341_vm3, %v3163_v40  ;;  %v3328_v41 = vpop.permute.xlu1 %3327 }
 0xbbf   :  { %4578 = vmatpush3.xpose.msk.msra.mxu0 %vm341_vm3, %v3330_v36  ;;  %4579 = vmatprep.mubr.msk.f32.mxu0 %vm4916_vm2, %v4915_v60 }
 0xbc2   :  { %4580 = vmatmul.mubr.msk.f32.vlgmr.msra.gmra.mrb[32].mxu0 %vm341_vm3, %v3328_v41  ;;  %v5607_v10 = vpop.permute.xlu1 %2412 }
 0xc79   :  { %v2232_v42 = vpop.f32.mrb[22].mxu1 }
 0xc7a   :  { %v2233_v3 = vadd.f32 %v2232_v42, %v5297_v20  ;;  %v4511_v43 = vpop.f32.mrb[23].mxu1  ;;  %v2397_v44 = vpop.f32.mrb[20].mxu0 }
 0xc7b   :  { %v2398_v45 = vadd.f32 %v2397_v44, %v5297_v20  ;;  %v4521_v1 = vpop.f32.mrb[21].mxu0 }
 0xc7c   :  { %v2236_v46 = vsel %vm341_vm3, %v2233_v3, -inf }
 0xc7d   :  { %2237 = vmax.xlane.f32.xlu0 %v2236_v46  ;;  %v2401_v47 = vsel %vm341_vm3, %v2398_v45, -inf }
 0xc7e   :  { %2402 = vmax.xlane.f32.xlu1 %v2401_v47 }
 0xc81   :  { %v2562_v48 = vpop.f32.mrb[22].mxu0 }
 0xc82   :  { %v2563_v49 = vadd.f32 %v2562_v48, %v5297_v20  ;;  %v4531_v50 = vpop.f32.mrb[23].mxu0 }
 0xc84   :  { %v2566_v51 = vsel %vm341_vm3, %v2563_v49, -inf }
 0xc85   :  { %2567 = vmax.xlane.f32.xlu0 %v2566_v51  ;;  %v2727_v52 = vpop.f32.mrb[24].mxu0 }
 0xc86   :  { %v2728_v53 = vadd.f32 %v2727_v52, %v5297_v20  ;;  %v4541_v54 = vpop.f32.mrb[25].mxu0 }
 0xc88   :  { %v2731_v55 = vsel %vm341_vm3, %v2728_v53, -inf }
 0xc89   :  { %2732 = vmax.xlane.f32.xlu0 %v2731_v55  ;;  %v2906_v56 = vpop.f32.mrb[26].mxu0 }
 0xc8a   :  { %v2907_v57 = vadd.f32 %v2906_v56, %v5307_v37  ;;  %v4551_v61 = vpop.f32.mrb[27].mxu0 }
 0xc8c   :  { %v2910_v59 = vsel %vm341_vm3, %v2907_v57, -inf }
 0xc8d   :  { %2911 = vmax.xlane.f32.xlu1 %v2910_v59  ;;  %v3071_v58 = vpop.f32.mrb[28].mxu0 }
 0xc8e   :  { %v3072_v62 = vadd.f32 %v3071_v58, %v5307_v37  ;;  %v4561_v63 = vpop.f32.mrb[29].mxu0 }
 0xc90   :  { %v3075_v2 = vsel %vm341_vm3, %v3072_v62, -inf }
 0xc91   :  { %3076 = vmax.xlane.f32.xlu0 %v3075_v2  ;;  %v3236_v4 = vpop.f32.mrb[30].mxu0 }
 0xc92   :  { %v3237_v20 = vadd.f32 %v3236_v4, %v5307_v37  ;;  %v4571_v5 = vpop.f32.mrb[31].mxu0 }
 0xc94   :  { %v3240_v6 = vsel %vm341_vm3, %v3237_v20, -inf }
 0xc95   :  { %3241 = vmax.xlane.f32.xlu1 %v3240_v6  ;;  %v3401_v7 = vpop.f32.mrb[32].mxu0 }
 0xc96   :  { %v3402_v8 = vadd.f32 %v3401_v7, %v5307_v37  ;;  %v4581_v9 = vpop.f32.mrb[33].mxu0 }
 0xc98   :  { %v3405_v0 = vsel %vm341_vm3, %v3402_v8, -inf }
 0xc99   :  { %3406 = vmax.xlane.f32.xlu0 %v3405_v0 }
 0xca6   :  { %2742 = vrot.lane.b32.xlu1 %v5511_v24, %s4926_s2 }
 0xcaf   :  { %2577 = vrot.lane.b32.xlu0 %v5511_v24, %s4927_s23 }
 0xd0a   :  { %v2238_v11 = vpop.xlane.xlu0 %2237 }
 0xd0b   :  { %v2239_v12 = vsub.f32 %v2233_v3, %v2238_v11  ;;  %v2403_v13 = vpop.xlane.xlu1 %2402 }
 0xd0c   :  { %v2404_v14 = vsub.f32 %v2398_v45, %v2403_v13 }
 0xd0d   :  { %v2240_v15 = vmul.f32 1.442695, %v2239_v12 }
 0xd0e   :  { %v2405_v16 = vmul.f32 1.442695, %v2404_v14 }
 0xd0f   :  { %4807 = vpow2.f32 %v2240_v15 }
 0xd10   :  { %4809 = vpow2.f32 %v2405_v16 }
 0xd12   :  { %v2568_v37 = vpop.xlane.xlu0 %2567 }
 0xd13   :  { %v2569_v17 = vsub.f32 %v2563_v49, %v2568_v37 }
 0xd15   :  { %v2570_v21 = vmul.f32 1.442695, %v2569_v17 }
 0xd16   :  { %v2733_v22 = vpop.xlane.xlu0 %2732 }
 0xd17   :  { %4811 = vpow2.f32 %v2570_v21  ;;  %v2734_v23 = vsub.f32 %v2728_v53, %v2733_v22 }
 0xd19   :  { %v4808_v26 = vpop.eup %4807  ;;  %v2735_v27 = vmul.f32 1.442695, %v2734_v23 }
 0xd1a   :  { %v4810_v28 = vpop.eup %4809  ;;  %v2242_v24 = vsel %vm341_vm3, %v4808_v26, 0.0  ;;  %v2912_v34 = vpop.xlane.xlu1 %2911 }
 0xd1b   :  { %4813 = vpow2.f32 %v2735_v27  ;;  %2243 = vadd.xlane.f32.xlu1 %v2242_v24  ;;  %v2407_v29 = vsel %vm341_vm3, %v4810_v28, 0.0  ;;  %v2913_v35 = vsub.f32 %v2907_v57, %v2912_v34  ;;  %v4192_v34 = vld [vmem:[%s5798_s6 + $0x38] sm:$0xff] }
 0xd1c   :  { %2408 = vadd.xlane.f32.xlu0 %v2407_v29 }
 0xd1d   :  { %v2914_v40 = vmul.f32 1.442695, %v2913_v35 }
 0xd1e   :  { %v3077_v36 = vpop.xlane.xlu0 %3076 }
 0xd1f   :  { %v3078_v39 = vsub.f32 %v3072_v62, %v3077_v36  ;;  %4815 = vpow2.f32 %v2914_v40 }
 0xd21   :  { %v4812_v30 = vpop.eup %4811  ;;  %v3079_v3 = vmul.f32 1.442695, %v3078_v39 }
 0xd22   :  { %v2572_v31 = vsel %vm341_vm3, %v4812_v30, 0.0  ;;  %v3242_v38 = vpop.xlane.xlu1 %3241 }
 0xd23   :  { %2573 = vadd.xlane.f32.xlu1 %v2572_v31  ;;  %v3243_v41 = vsub.f32 %v3237_v20, %v3242_v38  ;;  %4817 = vpow2.f32 %v3079_v3  ;;  %v4190_v31 = vld [vmem:[%s5798_s6 + $0x28] sm:$0xff] }
 0xd25   :  { %v5612_v32 = vpop.eup %4813  ;;  %v3244_v43 = vmul.f32 1.442695, %v3243_v41 }
 0xd26   :  { %v2737_v33 = vsel %vm341_vm3, %v5612_v32, 0.0  ;;  %v3407_v42 = vpop.xlane.xlu0 %3406  ;;  %v2743_v53 = vpop.permute.xlu1 %2742 }
 0xd27   :  { %2738 = vadd.xlane.f32.xlu0 %v2737_v33  ;;  %v3408_v44 = vsub.f32 %v3402_v8, %v3407_v42  ;;  %4819 = vpow2.f32 %v3244_v43  ;;  %v4191_v33 = vld [vmem:[%s5798_s6 + $0x30] sm:$0xff] }
 0xd28   :  { %v4702_v35 = vpack.c.bf16 %v4192_v34, %v4191_v33  ;;  %v4199_v33 = vld [vmem:[%s5847_s19 + $0x1] ss:$0 sm:$0xff] }
 0xd29   :  { %v3409_v45 = vmul.f32 1.442695, %v3408_v44  ;;  %v4816_v1 = vpop.eup %4815 }
 0xd2a   :  { %v2916_v47 = vsel %vm341_vm3, %v4816_v1, 0.0  ;;  %v2578_v54 = vpop.permute.xlu0 %2577 }
 0xd2b   :  { %4821 = vpow2.f32 %v3409_v45 }
 0xd2d   :  { %v5620_v46 = vpop.eup %4817 }
 0xd2e   :  { %v3081_v49 = vsel %vm341_vm3, %v5620_v46, 0.0 }
 0xd31   :  { %v5623_v48 = vpop.eup %4819 }
 0xd32   :  { %v3246_v50 = vsel %vm341_vm3, %v5623_v48, 0.0 }
 0xd34   :  { %3086 = vrot.lane.b32.xlu1 %v5525_v25, %s4924_s24 }
 0xd35   :  { %v5629_v51 = vpop.eup %4821 }
 0xd36   :  { %v3411_v52 = vsel %vm341_vm3, %v5629_v51, 0.0 }
 0xd3d   :  { %2921 = vrot.lane.b32.xlu0 %v5525_v25, %s4925_s26 }
 0xd58   :  { %2917 = vadd.xlane.f32.xlu1 %v2916_v47 }
 0xd5c   :  { %3082 = vadd.xlane.f32.xlu0 %v3081_v49  ;;  %3247 = vadd.xlane.f32.xlu1 %v3246_v50 }
 0xd60   :  { %3412 = vadd.xlane.f32.xlu1 %v3411_v52 }
 0xd71   :  { %3416 = vrot.lane.b32.xlu1 %v5525_v25, %s4926_s2 }
 0xd72   :  { %3251 = vrot.lane.b32.xlu0 %v5525_v25, %s4927_s23 }
 0xda8   :  { %v2244_v55 = vpop.xlane.xlu1 %2243 }
 0xda9   :  { %4823 = vrcp.f32 %v2244_v55  ;;  %v2409_v56 = vpop.xlane.xlu0 %2408  ;;  %v4194_v55 = vld [vmem:[%s5799_s7 + $0x1] ss:$0 sm:$0xff] }
 0xdaa   :  { %4825 = vrcp.f32 %v2409_v56 }
 0xdb0   :  { %v2574_v57 = vpop.xlane.xlu1 %2573 }
 0xdb1   :  { %4827 = vrcp.f32 %v2574_v57 }
 0xdb3   :  { %v4824_v61 = vpop.eup %4823 }
 0xdb4   :  { %v2246_v59 = vmul.f32 %v4824_v61, %v4808_v26  ;;  %v2739_v58 = vpop.xlane.xlu0 %2738  ;;  %v4826_v62 = vpop.eup %4825 }
 0xdb5   :  { %4829 = vrcp.f32 %v2739_v58  ;;  %v2411_v25 = vmul.f32 %v4826_v62, %v4810_v28  ;;  %v3087_v6 = vpop.permute.xlu1 %3086 }
 0xdb6   :  { %4515 = vmatmul.mubr.msk.f32.vlgmr.msra.gmra.mrb[24].mxu1 %vm341_vm3, %v2246_v59 }
 0xdb7   :  { %4523 = vmatpush3.msra.mxu1 %v5607_v10  ;;  %4524 = vmatprep.mubr.msk.f32.mxu1 %vm4916_vm2, %v4915_v60 }
 0xdb8   :  { %4532 = vmatprep.subr.mxu1 %v4915_v60  ;;  %v2922_v5 = vpop.permute.xlu0 %2921 }
 0xdba   :  { %4525 = vmatmul.mubr.msk.f32.vlgmr.msra.gmra.mrb[26].mxu1 %vm341_vm3, %v2411_v25 }
 0xdbb   :  { %v4828_v63 = vpop.eup %4827  ;;  %4533 = vmatpush3.msra.mxu1 %v2578_v54  ;;  %4534 = vmatprep.mubr.msk.f32.mxu1 %vm4916_vm2, %v4915_v60 }
 0xdbc   :  { %v2576_v2 = vmul.f32 %v4828_v63, %v4812_v30  ;;  %4542 = vmatprep.subr.mxu1 %v4915_v60 }
 0xdbe   :  { %4535 = vmatmul.mubr.msk.f32.vlgmr.msra.gmra.mrb[28].mxu1 %vm341_vm3, %v2576_v2 }
 0xdbf   :  { %v4830_v4 = vpop.eup %4829  ;;  %4543 = vmatpush3.msra.mxu1 %v2743_v53  ;;  %4544 = vmatprep.mubr.msk.f32.mxu1 %vm4916_vm2, %v4915_v60 }
 0xdc0   :  { %v2741_v20 = vmul.f32 %v4830_v4, %v5612_v32  ;;  %4552 = vmatprep.subr.mxu1 %v4915_v60 }
 0xdc2   :  { %4545 = vmatmul.mubr.msk.f32.vlgmr.msra.gmra.mrb[30].mxu1 %vm341_vm3, %v2741_v20 }
 0xdc3   :  { %4553 = vmatpush3.msra.mxu1 %v2922_v5  ;;  %4554 = vmatprep.mubr.msk.f32.mxu1 %vm4916_vm2, %v4915_v60 }
 0xdc4   :  { %4562 = vmatprep.subr.mxu1 %v4915_v60 }
 0xde5   :  { %v2918_v7 = vpop.xlane.xlu1 %2917 }
 0xde6   :  { %4831 = vrcp.f32 %v2918_v7 }
 0xde9   :  { %v3083_v8 = vpop.xlane.xlu0 %3082  ;;  %v3248_v9 = vpop.xlane.xlu1 %3247 }
 0xdea   :  { %4833 = vrcp.f32 %v3083_v8 }
 0xdeb   :  { %4835 = vrcp.f32 %v3248_v9 }
 0xded   :  { %v3413_v0 = vpop.xlane.xlu1 %3412  ;;  %v3252_v15 = vpop.permute.xlu0 %3251 }
 0xdee   :  { %4837 = vrcp.f32 %v3413_v0 }
 0xdf0   :  { %v4832_v10 = vpop.eup %4831 }
 0xdf1   :  { %v2920_v11 = vmul.f32 %v4832_v10, %v4816_v1  ;;  %v3417_v17 = vpop.permute.xlu1 %3416  ;;  %v4202_v10 = vld [vmem:[%s5800_s8 + $0x28] sm:$0xff] }
 0xdf3   :  { %4555 = vmatmul.mubr.msk.f32.vlgmr.msra.gmra.mrb[32].mxu1 %vm341_vm3, %v2920_v11 }
 0xdf4   :  { %v4834_v12 = vpop.eup %4833  ;;  %4563 = vmatpush3.msra.mxu1 %v3087_v6  ;;  %4564 = vmatprep.mubr.msk.f32.mxu1 %vm4916_vm2, %v4915_v60 }
 0xdf5   :  { %v3085_v13 = vmul.f32 %v4834_v12, %v5620_v46  ;;  %4572 = vmatprep.subr.mxu1 %v4915_v60  ;;  %v4836_v14 = vpop.eup %4835  ;;  %v4203_v12 = vld [vmem:[%s5800_s8 + $0x30] sm:$0xff] }
 0xdf6   :  { %v3250_v16 = vmul.f32 %v4836_v14, %v5623_v48 }
 0xdf7   :  { %4565 = vmatmul.mubr.msk.f32.vlgmr.msra.gmra.mrb[34].mxu1 %vm341_vm3, %v3085_v13  ;;  %v4204_v13 = vld [vmem:[%s5800_s8 + $0x38] sm:$0xff] }
 0xdf8   :  { %4573 = vmatpush3.msra.mxu1 %v3252_v15  ;;  %4574 = vmatprep.mubr.msk.f32.mxu1 %vm4916_vm2, %v4915_v60  ;;  %v4838_v37 = vpop.eup %4837  ;;  %v4710_v14 = vpack.c.bf16 %v4204_v13, %v4203_v12  ;;  %v4209_v15 = vld [vmem:[%s5802_s10 + $0x40] sm:$0xff]  ;;  %v3986_v12 = vld [vmem:[#allocation5 + $0x8] sm:$0xff] }
 0xdf9   :  { %4582 = vmatprep.subr.mxu1 %v4915_v60  ;;  %v3415_v21 = vmul.f32 %v4838_v37, %v5629_v51  ;;  %v4211_v37 = vld [vmem:[%s5802_s10 + $0x50] sm:$0xff] }
 0xdfb   :  { %4575 = vmatmul.mubr.msk.f32.vlgmr.msra.gmra.mrb[36].mxu1 %vm341_vm3, %v3250_v16  ;;  %v4210_v16 = vld [vmem:[%s5802_s10 + $0x48] sm:$0xff] }
 0xdfc   :  { %4583 = vmatpush3.msra.mxu1 %v3417_v17  ;;  %4584 = vmatprep.mubr.msk.f32.mxu1 %vm4916_vm2, %v4915_v60  ;;  %v4189_v60 = vld [vmem:[%s5798_s6 + $0x20] sm:$0xff]  ;;  %v4714_v17 = vpack.c.bf16 %v4210_v16, %v4209_v15 }
 0xdfd   :  { %v4698_v32 = vpack.c.bf16 %v4190_v31, %v4189_v60 }
 0xdff   :  { %4585 = vmatmul.mubr.msk.f32.vlgmr.msra.gmra.mrb[38].mxu1 %vm341_vm3, %v3415_v21  ;;  %4699 = vmatprep.subr.bf16.mxu0 %v4698_v32  ;;  %v4212_v21 = vld [vmem:[%s5802_s10 + $0x58] sm:$0xff] }
 0xe00   :  { %4701 = vmatpush3.bf16.msra.mxu0 %v4698_v32 }
 0xe01   :  { %4703 = vmatprep.subr.bf16.mxu0 %v4702_v35 }
 0xe04   :  { %4705 = vmatpush3.bf16.msra.mxu0 %v4702_v35  ;;  %v4200_v35 = vld [vmem:[%s5848_s22 + $0x1] ss:$0 sm:$0xff] }
 0xe05   :  { %4715 = vmatprep.subr.bf16.mxu0 %v4714_v17 }
 0xe89   :  { %v2319_v22 = vpop.f32.mrb[24].mxu1 }
 0xe8a   :  { %v4516_v23 = vpop.f32.mrb[25].mxu1 }
 0xe8b   :  { %v4213_v23 = vld [vmem:[%s5802_s10 + $0x60] sm:$0xff] }
 0xe8d   :  { %v2484_v26 = vpop.f32.mrb[26].mxu1 }
 0xe8e   :  { %2819 = vrot.lane.b32.xlu0 %v2484_v26, %s5846_s14  ;;  %v4526_v27 = vpop.f32.mrb[27].mxu1  ;;  %v4214_v26 = vld [vmem:[%s5802_s10 + $0x68] sm:$0xff] }
 0xe8f   :  { %v4722_v27 = vpack.c.bf16 %v4214_v26, %v4213_v23  ;;  %v4223_v23 = vld [vmem:[%s5851_s13 + $0x1] ss:$0 sm:$0xff] }
 0xe91   :  { %v2649_v28 = vpop.f32.mrb[28].mxu1 }
 0xe92   :  { %2823 = vrot.lane.b32.xlu1 %v2649_v28, %s4928_s9  ;;  %v4536_v24 = vpop.f32.mrb[29].mxu1 }
 0xe95   :  { %v2814_v29 = vpop.f32.mrb[30].mxu1 }
 0xe96   :  { %2827 = vrot.lane.b32.xlu1 %v2814_v29, %s5853_s5  ;;  %v4546_v30 = vpop.f32.mrb[31].mxu1 }
 0xec6   :  { %v2993_v36 = vpop.f32.mrb[32].mxu1 }
 0xec7   :  { %v4556_v38 = vpop.f32.mrb[33].mxu1 }
 0xeca   :  { %v3158_v39 = vpop.f32.mrb[34].mxu1 }
 0xecb   :  { %3493 = vrot.lane.b32.xlu0 %v3158_v39, %s5846_s14  ;;  %v4566_v40 = vpop.f32.mrb[35].mxu1 }
 0xece   :  { %v3323_v41 = vpop.f32.mrb[36].mxu1 }
 0xecf   :  { %3497 = vrot.lane.b32.xlu0 %v3323_v41, %s4928_s9  ;;  %v4576_v42 = vpop.f32.mrb[37].mxu1 }
 0xed2   :  { %v3488_v3 = vpop.f32.mrb[38].mxu1 }
 0xed3   :  { %3501 = vrot.lane.b32.xlu1 %v3488_v3, %s5853_s5  ;;  %v4586_v43 = vpop.f32.mrb[39].mxu1  ;;  %v4215_v3 = vld [vmem:[%s5802_s10 + $0x70] sm:$0xff] }
 0xed4   :  { %v4216_v43 = vld [vmem:[%s5802_s10 + $0x78] sm:$0xff] }
 0xf00   :  { %v2820_v44 = vpop.permute.xlu0 %2819 }
 0xf01   :  { %v2830_v1 = vsel %vm341_vm3, %v2319_v22, %v2820_v44  ;;  %v4718_v22 = vpack.c.bf16 %v4212_v21, %v4211_v37  ;;  %v4726_v44 = vpack.c.bf16 %v4216_v43, %v4215_v3  ;;  %v4228_v3 = vld [vmem:[#allocation7] ss:$0 sm:$0xff] }
 0xf04   :  { %v2824_v45 = vpop.permute.xlu1 %2823 }
 0xf05   :  { %v2831_v46 = vsel %vm1011_vm4, %v2830_v1, %v2824_v45  ;;  %v4206_v45 = vld [vmem:[%s5849_s16 + $0x1] ss:$0 sm:$0xff] }
 0xf08   :  { %v2828_v47 = vpop.permute.xlu1 %2827 }
 0xf09   :  { %v2832_v48 = vsel %vm1013_vm5, %v2831_v46, %v2828_v47 }
 0xf0a   :  { %4595 = vmatprep.mubr.msk.f32.mxu0 %vm256_vm1, %v2832_v48 }
 0xf3d   :  { %v3494_v49 = vpop.permute.xlu0 %3493 }
 0xf3e   :  { %v3504_v51 = vsel %vm341_vm3, %v2993_v36, %v3494_v49 }
 0xf41   :  { %v3498_v50 = vpop.permute.xlu0 %3497 }
 0xf42   :  { %v3505_v52 = vsel %vm1011_vm4, %v3504_v51, %v3498_v50  ;;  %v4218_v51 = vld [vmem:[%s5850_s1 + $0x1] ss:$0 sm:$0xff]  ;;  %s5854_s1 = sld [smem:[#allocation23_spill]] }
 0xf45   :  { %v3502_v53 = vpop.permute.xlu1 %3501 }
 0xf46   :  { %v3506_v54 = vsel %vm1013_vm5, %v3505_v52, %v3502_v53 }
 0xf47   :  { %4596 = vmatmul.mubr.msk.f32.vlgmr.msra.gmra.mrb[34].mxu0 %vm256_vm1, %v3506_v54 }
 0xf48   :  { %4717 = vmatpush3.bf16.msra.mxu0 %v4714_v17 }
 0xf49   :  { %4719 = vmatprep.subr.bf16.mxu0 %v4718_v22 }
 0xf4c   :  { %4721 = vmatpush3.bf16.msra.mxu0 %v4718_v22 }
 0xf4d   :  { %4723 = vmatprep.subr.bf16.mxu0 %v4722_v27 }
 0xf50   :  { %4725 = vmatpush3.bf16.msra.mxu0 %v4722_v27 }
 0xf51   :  { %4727 = vmatprep.subr.bf16.mxu0 %v4726_v44 }
 0xf54   :  { %4729 = vmatpush3.bf16.msra.mxu0 %v4726_v44 }
0x101a   :  { %v4597_v56 = vpop.f32.mrb[34].mxu0 }
0x101b   :  { %v3598_v57 = vadd.f32 %v4597_v56, %v4194_v55  ;;  %v3592_v61 = vpop.f32.mrb[35].mxu0 }
0x101c   :  { %v3593_v59 = vadd.f32 %v4194_v55, %v3592_v61 }
0x101d   :  { %v3602_v58 = vadd.f32 %v3598_v57, %v5500_v19 }
0x101e   :  { %v3601_v62 = vadd.f32 %v3593_v59, %v5498_v18  ;;  %v4201_v18 = vld [vmem:[%s5800_s8 + $0x20] sm:$0xff] }
0x101f   :  { %v3610_v25 = vsel %vm256_vm1, %v3602_v58, 0.0  ;;  %v4706_v11 = vpack.c.bf16 %v4202_v10, %v4201_v18  ;;  %v3894_v18 = vld [vmem:[%s5854_s1 + $0x18] sm:$0xff] }
0x1020   :  { %3611 = vadd.xlane.f32.xlu1 %v3610_v25  ;;  %v3607_v63 = vsel %vm256_vm1, %v3601_v62, 0.0 }
0x1021   :  { %3608 = vadd.xlane.f32.xlu0 %v3607_v63  ;;  %4707 = vmatprep.subr.bf16.mxu1 %v4706_v11 }
0x1022   :  { %4709 = vmatpush3.bf16.msra.mxu1 %v4706_v11  ;;  %v3985_v11 = vld [vmem:[#allocation5] sm:$0xff] }
0x1023   :  { %4711 = vmatprep.subr.bf16.mxu1 %v4710_v14  ;;  %v4738_v13 = vpack.c.bf16 %v3986_v12, %v3985_v11 }
0x1026   :  { %4713 = vmatpush3.bf16.msra.mxu1 %v4710_v14 }
0x10ad   :  { %v3612_v2 = vpop.xlane.xlu1 %3611 }
0x10ae   :  { %v3614_v4 = vmul.f32 0.03125, %v3612_v2  ;;  %v3609_v20 = vpop.xlane.xlu0 %3608 }
0x10af   :  { %v3613_v5 = vmul.f32 0.03125, %v3609_v20 }
0x10b0   :  { %v3616_v6 = vsub.f32 %v3602_v58, %v3614_v4 }
0x10b1   :  { %v3615_v7 = vsub.f32 %v3601_v62, %v3613_v5 }
0x10b2   :  { %v3618_v0 = vmul.f32 %v3616_v6, %v3616_v6 }
0x10b3   :  { %v3617_v8 = vmul.f32 %v3615_v7, %v3615_v7 }
0x10b4   :  { %v3622_v19 = vsel %vm256_vm1, %v3618_v0, 0.0 }
0x10b5   :  { %v3619_v9 = vsel %vm256_vm1, %v3617_v8, 0.0  ;;  %v3891_v8 = vld [vmem:[%s5854_s1] sm:$0xff] }
0x10b6   :  { %3620 = vadd.xlane.f32.xlu0 %v3619_v9  ;;  %v3892_v9 = vld [vmem:[%s5854_s1 + $0x8] sm:$0xff] }
0x10b7   :  { %v4730_v0 = vpack.c.bf16 %v3892_v9, %v3891_v8 }
0x10b9   :  { %4731 = vmatprep.subr.bf16.mxu1 %v4730_v0 }
0x10ba   :  { %3623 = vadd.xlane.f32.xlu0 %v3622_v19  ;;  %v3893_v19 = vld [vmem:[%s5854_s1 + $0x10] sm:$0xff] }
0x10bb   :  { %v4734_v10 = vpack.c.bf16 %v3894_v18, %v3893_v19 }
0x1143   :  { %v3621_v28 = vpop.xlane.xlu0 %3620 }
0x1144   :  { %v3625_v24 = vmul.f32 0.03125, %v3621_v28 }
0x1146   :  { %v3627_v29 = vadd.f32 1e-05, %v3625_v24  ;;  %v4224_v24 = vld [vmem:[%s5852_s17 + $0x1] ss:$0 sm:$0xff] }
0x1147   :  { %v3624_v30 = vpop.xlane.xlu0 %3623 }
0x1148   :  { %4839 = vrsqrt.f32 %v3627_v29  ;;  %v3626_v60 = vmul.f32 0.03125, %v3624_v30 }
0x114a   :  { %v3628_v31 = vadd.f32 1e-05, %v3626_v60 }
0x114c   :  { %4841 = vrsqrt.f32 %v3628_v31 }
0x1152   :  { %v4840_v32 = vpop.eup %4839 }
0x1153   :  { %v3631_v34 = vmul.f32 %v4840_v32, %v3615_v7  ;;  %v3987_v32 = vld [vmem:[#allocation5 + $0x10] sm:$0xff] }
0x1155   :  { %v3639_v36 = vmul.f32 %v4199_v33, %v3631_v34 }
0x1156   :  { %v4842_v38 = vpop.eup %4841 }
0x1157   :  { %v3632_v39 = vmul.f32 %v4842_v38, %v3616_v6  ;;  %v3647_v40 = vadd.f32 %v4200_v35, %v3639_v36 }
0x1159   :  { %v3640_v41 = vmul.f32 %v4199_v33, %v3632_v39  ;;  %4606 = vmatprep.mubr.msk.f32.mxu1 %vm256_vm1, %v3647_v40  ;;  %v3988_v33 = vld [vmem:[#allocation5 + $0x18] sm:$0xff] }
0x115a   :  { %v4742_v34 = vpack.c.bf16 %v3988_v33, %v3987_v32 }
0x115b   :  { %v3648_v42 = vadd.f32 %v4200_v35, %v3640_v41  ;;  %v4225_v35 = vld [vmem:[%s5855_s30] ss:$0 sm:$0xff] }
0x115d   :  { %4607 = vmatmul.mubr.msk.f32.vlgmr.msra.gmra.mrb[40].mxu1 %vm256_vm1, %v3648_v42 }
0x115e   :  { %4733 = vmatpush3.bf16.msra.mxu1 %v4730_v0 }
0x115f   :  { %4735 = vmatprep.subr.bf16.mxu1 %v4734_v10 }
0x1162   :  { %4737 = vmatpush3.bf16.msra.mxu1 %v4734_v10 }
0x1163   :  { %4739 = vmatprep.subr.bf16.mxu1 %v4738_v13 }
0x1230   :  { %v4608_v1 = vpop.f32.mrb[40].mxu1 }
0x1231   :  { %v3740_v46 = vadd.f32 %v4608_v1, %v4206_v45  ;;  %v3734_v47 = vpop.f32.mrb[41].mxu1 }
0x1232   :  { %v3735_v48 = vadd.f32 %v4206_v45, %v3734_v47 }
0x1233   :  { %v3744_v50 = vmax.f32 %v3740_v46, 0.0 }
0x1234   :  { %v3743_v49 = vmax.f32 %v3735_v48, 0.0 }
0x1236   :  { %4625 = vmatprep.mubr.msk.f32.mxu0 %vm1937_vm6, %v3743_v49 }
0x1237   :  { %4626 = vmatmul.mubr.msk.f32.vlgmr.msra.gmra.mrb[36].mxu0 %vm1937_vm6, %v3744_v50 }
0x130a   :  { %v4627_v52 = vpop.f32.mrb[36].mxu0 }
0x130b   :  { %v3840_v53 = vadd.f32 %v4627_v52, %v4218_v51  ;;  %v3834_v54 = vpop.f32.mrb[37].mxu0 }
0x130c   :  { %v3835_v55 = vadd.f32 %v4218_v51, %v3834_v54 }
0x130d   :  { %v3844_v56 = vadd.f32 %v3840_v53, %v3648_v42 }
0x130e   :  { %v3843_v57 = vadd.f32 %v3835_v55, %v3647_v40 }
0x130f   :  { %v3852_v61 = vsel %vm256_vm1, %v3844_v56, 0.0 }
0x1310   :  { %3853 = vadd.xlane.f32.xlu0 %v3852_v61  ;;  %v3849_v59 = vsel %vm256_vm1, %v3843_v57, 0.0 }
0x1311   :  { %3850 = vadd.xlane.f32.xlu1 %v3849_v59 }
0x139d   :  { %v3854_v58 = vpop.xlane.xlu0 %3853 }
0x139e   :  { %v3856_v62 = vmul.f32 0.03125, %v3854_v58  ;;  %v3851_v25 = vpop.xlane.xlu1 %3850 }
0x139f   :  { %v3855_v63 = vmul.f32 0.03125, %v3851_v25 }
0x13a0   :  { %v3858_v2 = vsub.f32 %v3844_v56, %v3856_v62 }
0x13a1   :  { %v3857_v4 = vsub.f32 %v3843_v57, %v3855_v63 }
0x13a2   :  { %v3860_v20 = vmul.f32 %v3858_v2, %v3858_v2 }
0x13a3   :  { %v3859_v5 = vmul.f32 %v3857_v4, %v3857_v4 }
0x13a4   :  { %v3864_v6 = vsel %vm256_vm1, %v3860_v20, 0.0 }
0x13a5   :  { %3865 = vadd.xlane.f32.xlu0 %v3864_v6  ;;  %v3861_v7 = vsel %vm256_vm1, %v3859_v5, 0.0 }
0x13a6   :  { %3862 = vadd.xlane.f32.xlu1 %v3861_v7 }
0x1432   :  { %v3866_v14 = vpop.xlane.xlu0 %3865 }
0x1433   :  { %v3868_v15 = vmul.f32 0.03125, %v3866_v14  ;;  %v3863_v16 = vpop.xlane.xlu1 %3862 }
0x1434   :  { %v3867_v37 = vmul.f32 0.03125, %v3863_v16 }
0x1435   :  { %v3870_v17 = vadd.f32 1e-05, %v3868_v15 }
0x1436   :  { %v3869_v21 = vadd.f32 1e-05, %v3867_v37 }
0x1437   :  { %4843 = vrsqrt.f32 %v3870_v17 }
0x1438   :  { %4845 = vrsqrt.f32 %v3869_v21 }
0x1441   :  { %v4844_v22 = vpop.eup %4843 }
0x1442   :  { %v4846_v26 = vpop.eup %4845  ;;  %v3874_v27 = vmul.f32 %v4844_v22, %v3858_v2 }
0x1443   :  { %v3873_v28 = vmul.f32 %v4846_v26, %v3857_v4 }
0x1444   :  { %v3882_v29 = vmul.f32 %v4223_v23, %v3874_v27 }
0x1445   :  { %v3881_v30 = vmul.f32 %v4223_v23, %v3873_v28 }
0x1446   :  { %v3890_v31 = vadd.f32 %v4224_v24, %v3882_v29 }
0x1447   :  { %v3889_v60 = vadd.f32 %v4224_v24, %v3881_v30 }
0x1449   :  { %4636 = vmatprep.mubr.msk.f32.mxu1 %vm256_vm1, %v3889_v60 }
0x144a   :  { %4637 = vmatmul.mubr.msk.f32.vlgmr.msra.gmra.mrb[42].mxu1 %vm256_vm1, %v3890_v31 }
0x144b   :  { %4741 = vmatpush3.bf16.msra.mxu1 %v4738_v13 }
0x144c   :  { %4743 = vmatprep.subr.bf16.mxu1 %v4742_v34 }
0x144f   :  { %4745 = vmatpush3.bf16.msra.mxu1 %v4742_v34 }
0x151d   :  { %v4638_v36 = vpop.f32.mrb[42].mxu1 }
0x151e   :  { %v3980_v38 = vadd.f32 %v4638_v36, %v4225_v35  ;;  %v3974_v39 = vpop.f32.mrb[43].mxu1 }
0x151f   :  { %v3975_v40 = vadd.f32 %v4225_v35, %v3974_v39 }
0x1520   :  { %v3984_v42 = vmax.f32 %v3980_v38, 0.0 }
0x1521   :  { %v3983_v41 = vmax.f32 %v3975_v40, 0.0 }
0x1523   :  { %4647 = vmatprep.mubr.msk.f32.mxu1 %vm256_vm1, %v3983_v41 }
0x1524   :  { %4648 = vmatmul.mubr.msk.f32.vlgmr.msra.gmra.mrb[44].mxu1 %vm256_vm1, %v3984_v42 }
0x15f7   :  { %v4649_v43 = vpop.f32.mrb[44].mxu1 }
0x15f8   :  { %v4074_v44 = vadd.f32 %v4649_v43, %v4228_v3  ;;  %v4068_v45 = vpop.f32.mrb[45].mxu1 }
0x15f9   :  { %v4069_v1 = vadd.f32 %v4228_v3, %v4068_v45 }
0x15fa   :  { %4231 = vst [vmem:[%s5856_s20 + $0x8] sm:$0xff] %v4074_v44 }
0x15fb   :  { %4077 = vst [vmem:[%s5856_s20] sm:$0xff] %v4069_v1 }
0x15fc   :  { %4084 = vsyncpa [#allocation6], 1 }
0x15fd   :  { %4085 = vsyncpa [#allocation8], 1 }

</bundles_post_ra>
